<compile_context>
chip_gen: v5e
topology: v5e:2x2
jax: 0.10.0
libtpu: 0.0.40
codegen_flags: <defaults>
</compile_context>

<pallas_src>
import math
import numpy as np
import jax
import jax.numpy as jnp
from jax.experimental import pallas as pl
from jax.experimental.pallas import tpu as pltpu


# ----------------------------------------------------------------------------
# Fused decoder-stack kernel (grid = (num_layers,), activations live in VMEM)
# ----------------------------------------------------------------------------
def make_decoder_kernel(B, L, E, T, F, H, Hd):
    Dh = E // H

    def kernel(tgt_ref, enc_ref, feat_w_ref, feat_b_ref, img_pos_ref,
               sa_wqkv_ref, sa_bqkv_ref, sa_wo_ref, sa_bo_ref,
               ca_wq_ref, ca_bq_ref, ca_wkv_ref, ca_bkv_ref, ca_wo_ref, ca_bo_ref,
               ff_w1_ref, ff_b1_ref, ff_w2_ref, ff_b2_ref,
               ln_g_ref, ln_b_ref,
               out_ref,
               x_scr, mem_scr, kv_scr):
        l = pl.program_id(0)

        # ---- one-time init: load tgt activations, project image memory ----
        @pl.when(l == 0)
        def _init():
            x_scr[...] = tgt_ref[...]
            fw = feat_w_ref[...]            # (F, E) bf16
            fb = feat_b_ref[...]            # (1, E) f32
            ip = img_pos_ref[0]             # (T, E) f32
            for b in range(B):
                m_b = jnp.dot(enc_ref[b].astype(jnp.bfloat16), fw,
                              preferred_element_type=jnp.float32) + fb
                mem_scr[b] = m_b + ip

        # bf16 weights, f32 accumulate; elementwise math stays f32.
        def mm(x2d, w, bias):
            return jnp.dot(x2d.astype(jnp.bfloat16), w,
                           preferred_element_type=jnp.float32) + bias

        def add_ln(x2d, r2d, g, bta):
            y = x2d + r2d
            mu = jnp.mean(y, axis=-1, keepdims=True)
            var = jnp.mean((y - mu) ** 2, axis=-1, keepdims=True)
            return (y - mu) * jax.lax.rsqrt(var + 1e-5) * g + bta

        def mha(q3, k3, v3, causal):
            # q3: (B, Lq, E) already scaled; k3/v3: (B, Lk, E); all f32.
            Lq, Lk = q3.shape[1], k3.shape[1]
            if causal:
                row = jax.lax.broadcasted_iota(jnp.int32, (Lq, Lk), 0)
                col = jax.lax.broadcasted_iota(jnp.int32, (Lq, Lk), 1)
                bias = jnp.where(col > row, jnp.float32(-jnp.inf),
                                 jnp.float32(0.0))[None]
            outs = []
            for h in range(H):
                sl = slice(h * Dh, (h + 1) * Dh)
                s = jnp.einsum("bqd,bkd->bqk", q3[:, :, sl], k3[:, :, sl],
                               preferred_element_type=jnp.float32)
                if causal:
                    s = s + bias
                m = jnp.max(s, axis=-1, keepdims=True)
                p = jnp.exp(s - m)
                p = p * pl.reciprocal(jnp.sum(p, axis=-1, keepdims=True),
                                      approx=True)
                outs.append(jnp.einsum("bqk,bkd->bqd", p, v3[:, :, sl],
                                       preferred_element_type=jnp.float32))
            return jnp.concatenate(outs, axis=-1)        # (B, Lq, E)

        x2 = x_scr[...].reshape(B * L, E)                # (M, E) f32
        ln_g = ln_g_ref[0]                               # (3, E)
        ln_b = ln_b_ref[0]

        # ---- masked self-attention (fused QKV, scale folded into Q) ----
        qkv = mm(x2, sa_wqkv_ref[0], sa_bqkv_ref[0]).reshape(B, L, 3 * E)
        attn = mha(qkv[:, :, 0:E], qkv[:, :, E:2 * E], qkv[:, :, 2 * E:3 * E],
                   causal=True)
        sa = mm(attn.reshape(B * L, E), sa_wo_ref[0], sa_bo_ref[0])
        x2 = add_ln(x2, sa, ln_g[0:1, :], ln_b[0:1, :])

        # ---- cross-attention over projected image memory ----
        q3 = mm(x2, ca_wq_ref[0], ca_bq_ref[0]).reshape(B, L, E)
        wkv = ca_wkv_ref[0]                              # (E, 2E) bf16
        bkv = ca_bkv_ref[0]                              # (1, 2E) f32
        for b in range(B):
            kv_scr[b] = jnp.dot(mem_scr[b].astype(jnp.bfloat16), wkv,
                                preferred_element_type=jnp.float32) + bkv
        kv = kv_scr[...]                                 # (B, T, 2E)
        attn = mha(q3, kv[:, :, 0:E], kv[:, :, E:2 * E], causal=False)
        ca = mm(attn.reshape(B * L, E), ca_wo_ref[0], ca_bo_ref[0])
        x2 = add_ln(x2, ca, ln_g[1:2, :], ln_b[1:2, :])

        # ---- feed-forward (relu) ----
        h1 = jnp.maximum(mm(x2, ff_w1_ref[0], ff_b1_ref[0]), 0.0)
        ff = mm(h1, ff_w2_ref[0], ff_b2_ref[0])
        x2 = add_ln(x2, ff, ln_g[2:3, :], ln_b[2:3, :])

        x_scr[...] = x2.reshape(B, L, E)

        @pl.when(l == pl.num_programs(0) - 1)
        def _fin():
            out_ref[...] = x2.reshape(B, L, E)

    return kernel


def decoder_stack(tgt, enc, pk, cfg):
    B, L, E = tgt.shape
    T, F = enc.shape[1], enc.shape[2]
    H = cfg["num_heads"]
    Hd = cfg["hidden_dim"]
    nl = cfg["num_layers"]

    kernel = make_decoder_kernel(B, L, E, T, F, H, Hd)

    def const_spec(shape):
        n = len(shape)
        return pl.BlockSpec(shape, lambda l, n=n: (0,) * n)

    def per_layer(shape):
        n = len(shape)
        return pl.BlockSpec((1,) + shape, lambda l, n=n: (l,) + (0,) * n)

    in_specs = [
        const_spec((B, L, E)),        # tgt
        const_spec((B, T, F)),        # encoder features
        const_spec((F, E)),           # feat_w
        const_spec((1, E)),           # feat_b
        const_spec((1, T, E)),        # image_pos
        per_layer((E, 3 * E)),        # sa_wqkv
        per_layer((1, 3 * E)),        # sa_bqkv
        per_layer((E, E)),            # sa_wo
        per_layer((1, E)),            # sa_bo
        per_layer((E, E)),            # ca_wq
        per_layer((1, E)),            # ca_bq
        per_layer((E, 2 * E)),        # ca_wkv
        per_layer((1, 2 * E)),        # ca_bkv
        per_layer((E, E)),            # ca_wo
        per_layer((1, E)),            # ca_bo
        per_layer((E, Hd)),           # ff_w1
        per_layer((1, Hd)),           # ff_b1
        per_layer((Hd, E)),           # ff_w2
        per_layer((1, E)),            # ff_b2
        per_layer((3, E)),            # ln gammas
        per_layer((3, E)),            # ln betas
    ]

    return pl.pallas_call(
        kernel,
        out_shape=jax.ShapeDtypeStruct((B, L, E), jnp.float32),
        grid=(nl,),
        in_specs=in_specs,
        out_specs=pl.BlockSpec((B, L, E), lambda l: (0, 0, 0)),
        scratch_shapes=[
            pltpu.VMEM((B, L, E), jnp.float32),       # activation carry
            pltpu.VMEM((B, T, E), jnp.float32),       # projected image memory
            pltpu.VMEM((B, T, 2 * E), jnp.float32),   # cross-attn K/V
        ],
        compiler_params=pltpu.CompilerParams(
            dimension_semantics=("arbitrary",)),      # layers are sequential
    )(tgt, enc,
      pk["feat_w"], pk["feat_b"], pk["image_pos"],
      pk["sa_wqkv"], pk["sa_bqkv"], pk["sa_wo"], pk["sa_bo"],
      pk["ca_wq"], pk["ca_bq"], pk["ca_wkv"], pk["ca_bkv"], pk["ca_wo"], pk["ca_bo"],
      pk["ff_w1"], pk["ff_b1"], pk["ff_w2"], pk["ff_b2"],
      pk["ln_g"], pk["ln_b"])


# ----------------------------------------------------------------------------
# Final vocab projection: lane-dense (128-padded) output, tiled over vocab
# ----------------------------------------------------------------------------
def _logits_kernel(x_ref, w_ref, b_ref, o_ref):
    o_ref[...] = (jnp.dot(x_ref[...].astype(jnp.bfloat16), w_ref[...],
                          preferred_element_type=jnp.float32)
                  + b_ref[...]).astype(o_ref.dtype)


def logits_matmul(x2d, w_p, b_p, tile_n=128):
    M, E = x2d.shape
    Vp = w_p.shape[-1]
    return pl.pallas_call(
        _logits_kernel,
        out_shape=jax.ShapeDtypeStruct((M, Vp), jnp.float32),
        grid=(Vp // tile_n,),
        in_specs=[pl.BlockSpec((M, E), lambda j: (0, 0)),
                  pl.BlockSpec((E, tile_n), lambda j: (0, j)),
                  pl.BlockSpec((1, tile_n), lambda j: (0, j))],
        out_specs=pl.BlockSpec((M, tile_n), lambda j: (0, j)),
        compiler_params=pltpu.CompilerParams(
            dimension_semantics=("parallel",)),
    )(x2d, w_p, b_p)


# ----------------------------------------------------------------------------
# Forward pass (plain-JAX glue: embedding gather + pos enc only)
# ----------------------------------------------------------------------------
def transformer_decoder_forward(pk, encoder_features, tgt_input, cfg):
    E = cfg["embed_dim"]
    V = cfg["vocab_size"]
    B, L = tgt_input.shape

    tgt = jnp.take(pk["embedding"], tgt_input, axis=0) * math.sqrt(E)
    tgt = tgt + pk["pos_enc"][:, :L, :]
    # TODO(synk): dropout and tgt_key_padding_mask are eval-time no-ops here.

    x = decoder_stack(tgt.astype(jnp.float32),
                      encoder_features.astype(jnp.float32), pk, cfg)

    logits_p = logits_matmul(x.reshape(B * L, E), pk["out_w"], pk["out_b"])
    return logits_p[:, :V].reshape(B, L, V)


# ----------------------------------------------------------------------------
# Deterministic parameter init + packing into the fused-kernel layout
# ----------------------------------------------------------------------------
def sinusoidal_pos_encoding(max_len, d_model):
    pe = np.zeros((max_len, d_model), dtype=np.float32)
    position = np.arange(0, max_len, dtype=np.float32)[:, None]
    div_term = np.exp(
        np.arange(0, d_model, 2, dtype=np.float32) * (-math.log(10000.0) / d_model))
    pe[:, 0::2] = np.sin(position * div_term)
    pe[:, 1::2] = np.cos(position * div_term)
    return jnp.asarray(pe)[None, :, :]


def init_params(key, cfg):
    E, Hd, V = cfg["embed_dim"], cfg["hidden_dim"], cfg["vocab_size"]
    F, T, nl = cfg["feature_dim"], cfg["num_image_tokens"], cfg["num_layers"]

    def nxt():
        nonlocal key
        key, sub = jax.random.split(key)
        return sub

    def w(shape, scale=0.02):
        return (scale * jax.random.normal(nxt(), shape)).astype(jnp.float32)

    def attn_params():
        return {"w_q": w((E, E)), "b_q": jnp.zeros((E,), jnp.float32),
                "w_k": w((E, E)), "b_k": jnp.zeros((E,), jnp.float32),
                "w_v": w((E, E)), "b_v": jnp.zeros((E,), jnp.float32),
                "w_o": w((E, E)), "b_o": jnp.zeros((E,), jnp.float32)}

    layers = []
    for _ in range(nl):
        layers.append({
            "self_attn": attn_params(), "cross_attn": attn_params(),
            "ff_w1": w((E, Hd)), "ff_b1": jnp.zeros((Hd,), jnp.float32),
            "ff_w2": w((Hd, E)), "ff_b2": jnp.zeros((E,), jnp.float32),
            "ln1_g": jnp.ones((E,), jnp.float32), "ln1_b": jnp.zeros((E,), jnp.float32),
            "ln2_g": jnp.ones((E,), jnp.float32), "ln2_b": jnp.zeros((E,), jnp.float32),
            "ln3_g": jnp.ones((E,), jnp.float32), "ln3_b": jnp.zeros((E,), jnp.float32),
        })

    return {"embedding": w((V, E), scale=1.0),
            "pos_enc": sinusoidal_pos_encoding(cfg["max_length"], E),
            "feat_w": w((F, E)), "feat_b": jnp.zeros((E,), jnp.float32),
            "image_pos": w((1, T, E), scale=1.0),
            "layers": layers,
            "out_w": w((E, V)), "out_b": jnp.zeros((V,), jnp.float32)}


def pack_params(p, cfg):
    E, H = cfg["embed_dim"], cfg["num_heads"]
    Dh = E // H
    scale = jnp.float32(1.0 / math.sqrt(Dh))
    bf = jnp.bfloat16

    def stack(fn):
        return jnp.stack([fn(lp) for lp in p["layers"]], axis=0)

    packed = {
        "embedding": p["embedding"],
        "pos_enc": p["pos_enc"],
        "feat_w": p["feat_w"].astype(bf),
        "feat_b": p["feat_b"].reshape(1, E),
        "image_pos": p["image_pos"],
        # self-attn: fused QKV, 1/sqrt(Dh) folded into Q weight & bias
        "sa_wqkv": stack(lambda lp: jnp.concatenate(
            [lp["self_attn"]["w_q"] * scale, lp["self_attn"]["w_k"],
             lp["self_attn"]["w_v"]], axis=1)).astype(bf),
        "sa_bqkv": stack(lambda lp: jnp.concatenate(
            [lp["self_attn"]["b_q"] * scale, lp["self_attn"]["b_k"],
             lp["self_attn"]["b_v"]]).reshape(1, 3 * E)),
        "sa_wo": stack(lambda lp: lp["self_attn"]["w_o"]).astype(bf),
        "sa_bo": stack(lambda lp: lp["self_attn"]["b_o"].reshape(1, E)),
        # cross-attn: Q separate, fused KV
        "ca_wq": stack(lambda lp: lp["cross_attn"]["w_q"] * scale).astype(bf),
        "ca_bq": stack(lambda lp: (lp["cross_attn"]["b_q"] * scale).reshape(1, E)),
        "ca_wkv": stack(lambda lp: jnp.concatenate(
            [lp["cross_attn"]["w_k"], lp["cross_attn"]["w_v"]], axis=1)).astype(bf),
        "ca_bkv": stack(lambda lp: jnp.concatenate(
            [lp["cross_attn"]["b_k"], lp["cross_attn"]["b_v"]]).reshape(1, 2 * E)),
        "ca_wo": stack(lambda lp: lp["cross_attn"]["w_o"]).astype(bf),
        "ca_bo": stack(lambda lp: lp["cross_attn"]["b_o"].reshape(1, E)),
        # FFN
        "ff_w1": stack(lambda lp: lp["ff_w1"]).astype(bf),
        "ff_b1": stack(lambda lp: lp["ff_b1"].reshape(1, -1)),
        "ff_w2": stack(lambda lp: lp["ff_w2"]).astype(bf),
        "ff_b2": stack(lambda lp: lp["ff_b2"].reshape(1, E)),
        # LayerNorm params (norm1 / norm2 / norm3)
        "ln_g": stack(lambda lp: jnp.stack([lp["ln1_g"], lp["ln2_g"], lp["ln3_g"]])),
        "ln_b": stack(lambda lp: jnp.stack([lp["ln1_b"], lp["ln2_b"], lp["ln3_b"]])),
    }
    # final vocab projection, zero-padded to a lane-dense multiple of 128
    V = cfg["vocab_size"]
    Vp = ((V + 127) // 128) * 128
    out_w = jnp.zeros((E, Vp), jnp.float32).at[:, :V].set(p["out_w"])
    out_b = jnp.zeros((1, Vp), jnp.float32).at[:, :V].set(p["out_b"].reshape(1, V))
    packed["out_w"] = out_w.astype(bf)
    packed["out_b"] = out_b
    return packed


# ----------------------------------------------------------------------------
# Main
# ----------------------------------------------------------------------------
if __name__ == "__main__":
    cfg = dict(
        embed_dim=32, num_heads=4, hidden_dim=64, vocab_size=50,
        num_layers=2, max_length=16, feature_dim=48, num_image_tokens=49,
    )
    B, L = 2, 8

    key = jax.random.PRNGKey(0)
    key, k_feat, k_tok, k_param = jax.random.split(key, 4)

    encoder_features = jax.random.normal(
        k_feat, (B, cfg["num_image_tokens"], cfg["feature_dim"]), dtype=jnp.float32)
    tgt_input = jax.random.randint(k_tok, (B, L), 0, cfg["vocab_size"],
                                   dtype=jnp.int32)

    params = init_params(k_param, cfg)
    packed = pack_params(params, cfg)

    fwd = jax.jit(lambda p, ef, ti: transformer_decoder_forward(p, ef, ti, cfg))
    logits = fwd(packed, encoder_features, tgt_input)
    jax.block_until_ready(logits)

    assert logits.shape == (B, L, cfg["vocab_size"])
    assert bool(jnp.all(jnp.isfinite(logits)))
    print("KERNEL_OK")
</pallas_src>

<mosaic_0001>
module attributes {stable_mosaic.version = 11 : i64} {
  func.func @_logits_kernel(%arg0: i32, %arg1: memref<16x32xf32, #tpu.memory_space<vmem>>, %arg2: memref<32x128xbf16, #tpu.memory_space<vmem>>, %arg3: memref<1x128xf32, #tpu.memory_space<vmem>>, %arg4: memref<16x128xf32, #tpu.memory_space<vmem>>) attributes {dimension_semantics = [#tpu.dimension_semantics<parallel>], iteration_bounds = array<i64: 1>, scalar_prefetch = 0 : i64, scratch_operands = 0 : i64, tpu.core_type = #tpu.core_type<tc>, window_params = [{pipeline_mode = #tpu.pipeline_mode<synchronous>, transform_indices = @transform_0, window_bounds = array<i64: 16, 32>}, {transform_indices = @transform_1, window_bounds = array<i64: 32, 128>}, {transform_indices = @transform_2, window_bounds = array<i64: 1, 128>}, {transform_indices = @transform_3, window_bounds = array<i64: 16, 128>}]} {
    %c0 = arith.constant 0 : index
    %c0_0 = arith.constant 0 : index
    %0 = vector.load %arg1[%c0, %c0_0] : memref<16x32xf32, #tpu.memory_space<vmem>>, vector<16x32xf32>
    %1 = arith.truncf %0 : vector<16x32xf32> to vector<16x32xbf16>
    %c0_1 = arith.constant 0 : index
    %c0_2 = arith.constant 0 : index
    %2 = vector.load %arg2[%c0_1, %c0_2] : memref<32x128xbf16, #tpu.memory_space<vmem>>, vector<32x128xbf16>
    %cst = arith.constant dense<0.000000e+00> : vector<16x128xf32>
    %3 = tpu.matmul %1, %2, %cst {dimension_numbers = #tpu.dot_dimension_numbers<[1], [0], [0], [1], [0, 0, 1, 1], [], []>} : vector<16x32xbf16>, vector<32x128xbf16>, vector<16x128xf32> -> vector<16x128xf32>
    %c0_3 = arith.constant 0 : index
    %c0_4 = arith.constant 0 : index
    %4 = vector.load %arg3[%c0_3, %c0_4] : memref<1x128xf32, #tpu.memory_space<vmem>>, vector<1x128xf32>
    %5 = vector.broadcast %4 : vector<1x128xf32> to vector<16x128xf32>
    %6 = arith.addf %3, %5 : vector<16x128xf32>
    %c0_5 = arith.constant 0 : index
    %c0_6 = arith.constant 0 : index
    %7 = vector.load %arg4[%c0_5, %c0_6] : memref<16x128xf32, #tpu.memory_space<vmem>>, vector<16x128xf32>
    tpu.vector_store %arg4[%c0_5, %c0_6], %6 {strides = array<i32>} : memref<16x128xf32, #tpu.memory_space<vmem>>, vector<16x128xf32>,
    return
  }
  func.func @transform_0(%arg0: i32) -> (i32, i32) {
    %c0_i32 = arith.constant 0 : i32
    %c0_i32_0 = arith.constant 0 : i32
    %c0_i32_1 = arith.constant 0 : i32
    return %c0_i32, %c0_i32_0 : i32, i32
  }
  func.func @transform_1(%arg0: i32) -> (i32, i32) {
    %c0_i32 = arith.constant 0 : i32
    %c0_i32_0 = arith.constant 0 : i32
    return %c0_i32, %arg0 : i32, i32
  }
  func.func @transform_2(%arg0: i32) -> (i32, i32) {
    %c0_i32 = arith.constant 0 : i32
    %c0_i32_0 = arith.constant 0 : i32
    return %c0_i32, %arg0 : i32, i32
  }
  func.func @transform_3(%arg0: i32) -> (i32, i32) {
    %c0_i32 = arith.constant 0 : i32
    %c0_i32_0 = arith.constant 0 : i32
    return %c0_i32, %arg0 : i32, i32
  }
}

module attributes {stable_mosaic.version = 11 : i64} {
  func.func @kernel(%arg0: i32, %arg1: memref<2x8x32xf32, #tpu.memory_space<vmem>>, %arg2: memref<2x49x48xf32, #tpu.memory_space<vmem>>, %arg3: memref<48x32xbf16, #tpu.memory_space<vmem>>, %arg4: memref<1x32xf32, #tpu.memory_space<vmem>>, %arg5: memref<1x49x32xf32, #tpu.memory_space<vmem>>, %arg6: memref<1x32x96xbf16, #tpu.memory_space<vmem>>, %arg7: memref<1x1x96xf32, #tpu.memory_space<vmem>>, %arg8: memref<1x32x32xbf16, #tpu.memory_space<vmem>>, %arg9: memref<1x1x32xf32, #tpu.memory_space<vmem>>, %arg10: memref<1x32x32xbf16, #tpu.memory_space<vmem>>, %arg11: memref<1x1x32xf32, #tpu.memory_space<vmem>>, %arg12: memref<1x32x64xbf16, #tpu.memory_space<vmem>>, %arg13: memref<1x1x64xf32, #tpu.memory_space<vmem>>, %arg14: memref<1x32x32xbf16, #tpu.memory_space<vmem>>, %arg15: memref<1x1x32xf32, #tpu.memory_space<vmem>>, %arg16: memref<1x32x64xbf16, #tpu.memory_space<vmem>>, %arg17: memref<1x1x64xf32, #tpu.memory_space<vmem>>, %arg18: memref<1x64x32xbf16, #tpu.memory_space<vmem>>, %arg19: memref<1x1x32xf32, #tpu.memory_space<vmem>>, %arg20: memref<1x3x32xf32, #tpu.memory_space<vmem>>, %arg21: memref<1x3x32xf32, #tpu.memory_space<vmem>>, %arg22: memref<2x8x32xf32, #tpu.memory_space<vmem>>, %arg23: memref<2x8x32xf32, #tpu.memory_space<vmem>>, %arg24: memref<2x49x32xf32, #tpu.memory_space<vmem>>, %arg25: memref<2x49x64xf32, #tpu.memory_space<vmem>>) attributes {dimension_semantics = [#tpu.dimension_semantics<arbitrary>], iteration_bounds = array<i64: 2>, scalar_prefetch = 0 : i64, scratch_operands = 3 : i64, tpu.core_type = #tpu.core_type<tc>, window_params = [{pipeline_mode = #tpu.pipeline_mode<synchronous>, transform_indices = @transform_0, window_bounds = array<i64: 2, 8, 32>}, {pipeline_mode = #tpu.pipeline_mode<synchronous>, transform_indices = @transform_1, window_bounds = array<i64: 2, 49, 48>}, {pipeline_mode = #tpu.pipeline_mode<synchronous>, transform_indices = @transform_2, window_bounds = array<i64: 48, 32>}, {pipeline_mode = #tpu.pipeline_mode<synchronous>, transform_indices = @transform_3, window_bounds = array<i64: 1, 32>}, {pipeline_mode = #tpu.pipeline_mode<synchronous>, transform_indices = @transform_4, window_bounds = array<i64: 1, 49, 32>}, {transform_indices = @transform_5, window_bounds = array<i64: 1, 32, 96>}, {transform_indices = @transform_6, window_bounds = array<i64: 1, 1, 96>}, {transform_indices = @transform_7, window_bounds = array<i64: 1, 32, 32>}, {transform_indices = @transform_8, window_bounds = array<i64: 1, 1, 32>}, {transform_indices = @transform_9, window_bounds = array<i64: 1, 32, 32>}, {transform_indices = @transform_10, window_bounds = array<i64: 1, 1, 32>}, {transform_indices = @transform_11, window_bounds = array<i64: 1, 32, 64>}, {transform_indices = @transform_12, window_bounds = array<i64: 1, 1, 64>}, {transform_indices = @transform_13, window_bounds = array<i64: 1, 32, 32>}, {transform_indices = @transform_14, window_bounds = array<i64: 1, 1, 32>}, {transform_indices = @transform_15, window_bounds = array<i64: 1, 32, 64>}, {transform_indices = @transform_16, window_bounds = array<i64: 1, 1, 64>}, {transform_indices = @transform_17, window_bounds = array<i64: 1, 64, 32>}, {transform_indices = @transform_18, window_bounds = array<i64: 1, 1, 32>}, {transform_indices = @transform_19, window_bounds = array<i64: 1, 3, 32>}, {transform_indices = @transform_20, window_bounds = array<i64: 1, 3, 32>}, {pipeline_mode = #tpu.pipeline_mode<synchronous>, transform_indices = @transform_21, window_bounds = array<i64: 2, 8, 32>}]} {
    %c0_i32 = arith.constant 0 : i32
    %0 = arith.cmpi eq, %arg0, %c0_i32 : i32
    %1 = arith.extui %0 : i1 to i32
    %c0_i32_0 = arith.constant 0 : i32
    %2 = arith.cmpi ne, %1, %c0_i32_0 : i32
    scf.if %2 {
      %c0_126 = arith.constant 0 : index
      %c0_127 = arith.constant 0 : index
      %c0_128 = arith.constant 0 : index
      %308 = vector.load %arg1[%c0_126, %c0_127, %c0_128] : memref<2x8x32xf32, #tpu.memory_space<vmem>>, vector<2x8x32xf32>
      %c0_129 = arith.constant 0 : index
      %c0_130 = arith.constant 0 : index
      %c0_131 = arith.constant 0 : index
      %309 = vector.load %arg23[%c0_129, %c0_130, %c0_131] : memref<2x8x32xf32, #tpu.memory_space<vmem>>, vector<2x8x32xf32>
      tpu.vector_store %arg23[%c0_129, %c0_130, %c0_131], %308 {strides = array<i32>} : memref<2x8x32xf32, #tpu.memory_space<vmem>>, vector<2x8x32xf32>,
      %c0_132 = arith.constant 0 : index
      %c0_133 = arith.constant 0 : index
      %310 = vector.load %arg3[%c0_132, %c0_133] : memref<48x32xbf16, #tpu.memory_space<vmem>>, vector<48x32xbf16>
      %c0_134 = arith.constant 0 : index
      %c0_135 = arith.constant 0 : index
      %311 = vector.load %arg4[%c0_134, %c0_135] : memref<1x32xf32, #tpu.memory_space<vmem>>, vector<1x32xf32>
      %c0_136 = arith.constant 0 : index
      %c0_137 = arith.constant 0 : index
      %c0_138 = arith.constant 0 : index
      %312 = vector.load %arg5[%c0_136, %c0_137, %c0_138] : memref<1x49x32xf32, #tpu.memory_space<vmem>>, vector<1x49x32xf32>
      %313 = vector.shape_cast %312 : vector<1x49x32xf32> to vector<49x32xf32>
      %c0_139 = arith.constant 0 : index
      %c0_140 = arith.constant 0 : index
      %c0_141 = arith.constant 0 : index
      %314 = vector.load %arg2[%c0_139, %c0_140, %c0_141] : memref<2x49x48xf32, #tpu.memory_space<vmem>>, vector<1x49x48xf32>
      %315 = vector.shape_cast %314 : vector<1x49x48xf32> to vector<49x48xf32>
      %316 = arith.truncf %315 : vector<49x48xf32> to vector<49x48xbf16>
      %cst_142 = arith.constant dense<0.000000e+00> : vector<49x32xf32>
      %317 = tpu.matmul %316, %310, %cst_142 {dimension_numbers = #tpu.dot_dimension_numbers<[1], [0], [0], [1], [0, 0, 1, 1], [], []>} : vector<49x48xbf16>, vector<48x32xbf16>, vector<49x32xf32> -> vector<49x32xf32>
      %318 = vector.broadcast %311 : vector<1x32xf32> to vector<49x32xf32>
      %319 = arith.addf %317, %318 : vector<49x32xf32>
      %320 = arith.addf %319, %313 : vector<49x32xf32>
      %c0_143 = arith.constant 0 : index
      %c0_144 = arith.constant 0 : index
      %c0_145 = arith.constant 0 : index
      %321 = vector.load %arg24[%c0_143, %c0_144, %c0_145] : memref<2x49x32xf32, #tpu.memory_space<vmem>>, vector<1x49x32xf32>
      %322 = vector.shape_cast %321 : vector<1x49x32xf32> to vector<49x32xf32>
      %323 = vector.shape_cast %320 : vector<49x32xf32> to vector<1x49x32xf32>
      tpu.vector_store %arg24[%c0_143, %c0_144, %c0_145], %323 {strides = array<i32>} : memref<2x49x32xf32, #tpu.memory_space<vmem>>, vector<1x49x32xf32>,
      %c1_146 = arith.constant 1 : index
      %c0_147 = arith.constant 0 : index
      %c0_148 = arith.constant 0 : index
      %324 = vector.load %arg2[%c1_146, %c0_147, %c0_148] : memref<2x49x48xf32, #tpu.memory_space<vmem>>, vector<1x49x48xf32>
      %325 = vector.shape_cast %324 : vector<1x49x48xf32> to vector<49x48xf32>
      %326 = arith.truncf %325 : vector<49x48xf32> to vector<49x48xbf16>
      %cst_149 = arith.constant dense<0.000000e+00> : vector<49x32xf32>
      %327 = tpu.matmul %326, %310, %cst_149 {dimension_numbers = #tpu.dot_dimension_numbers<[1], [0], [0], [1], [0, 0, 1, 1], [], []>} : vector<49x48xbf16>, vector<48x32xbf16>, vector<49x32xf32> -> vector<49x32xf32>
      %328 = vector.broadcast %311 : vector<1x32xf32> to vector<49x32xf32>
      %329 = arith.addf %327, %328 : vector<49x32xf32>
      %330 = arith.addf %329, %313 : vector<49x32xf32>
      %c1_150 = arith.constant 1 : index
      %c0_151 = arith.constant 0 : index
      %c0_152 = arith.constant 0 : index
      %331 = vector.load %arg24[%c1_150, %c0_151, %c0_152] : memref<2x49x32xf32, #tpu.memory_space<vmem>>, vector<1x49x32xf32>
      %332 = vector.shape_cast %331 : vector<1x49x32xf32> to vector<49x32xf32>
      %333 = vector.shape_cast %330 : vector<49x32xf32> to vector<1x49x32xf32>
      tpu.vector_store %arg24[%c1_150, %c0_151, %c0_152], %333 {strides = array<i32>} : memref<2x49x32xf32, #tpu.memory_space<vmem>>, vector<1x49x32xf32>,
    } else {
    }
    %c0 = arith.constant 0 : index
    %c0_1 = arith.constant 0 : index
    %c0_2 = arith.constant 0 : index
    %3 = vector.load %arg23[%c0, %c0_1, %c0_2] : memref<2x8x32xf32, #tpu.memory_space<vmem>>, vector<2x8x32xf32>
    %4 = vector.shape_cast %3 : vector<2x8x32xf32> to vector<16x32xf32>
    %c0_3 = arith.constant 0 : index
    %c0_4 = arith.constant 0 : index
    %c0_5 = arith.constant 0 : index
    %5 = vector.load %arg20[%c0_3, %c0_4, %c0_5] : memref<1x3x32xf32, #tpu.memory_space<vmem>>, vector<1x3x32xf32>
    %6 = vector.shape_cast %5 : vector<1x3x32xf32> to vector<3x32xf32>
    %c0_6 = arith.constant 0 : index
    %c0_7 = arith.constant 0 : index
    %c0_8 = arith.constant 0 : index
    %7 = vector.load %arg21[%c0_6, %c0_7, %c0_8] : memref<1x3x32xf32, #tpu.memory_space<vmem>>, vector<1x3x32xf32>
    %8 = vector.shape_cast %7 : vector<1x3x32xf32> to vector<3x32xf32>
    %c0_9 = arith.constant 0 : index
    %c0_10 = arith.constant 0 : index
    %c0_11 = arith.constant 0 : index
    %9 = vector.load %arg6[%c0_9, %c0_10, %c0_11] : memref<1x32x96xbf16, #tpu.memory_space<vmem>>, vector<1x32x96xbf16>
    %10 = vector.shape_cast %9 : vector<1x32x96xbf16> to vector<32x96xbf16>
    %c0_12 = arith.constant 0 : index
    %c0_13 = arith.constant 0 : index
    %c0_14 = arith.constant 0 : index
    %11 = vector.load %arg7[%c0_12, %c0_13, %c0_14] : memref<1x1x96xf32, #tpu.memory_space<vmem>>, vector<1x1x96xf32>
    %12 = vector.shape_cast %11 : vector<1x1x96xf32> to vector<1x96xf32>
    %13 = arith.truncf %4 : vector<16x32xf32> to vector<16x32xbf16>
    %cst = arith.constant dense<0.000000e+00> : vector<16x96xf32>
    %14 = tpu.matmul %13, %10, %cst {dimension_numbers = #tpu.dot_dimension_numbers<[1], [0], [0], [1], [0, 0, 1, 1], [], []>} : vector<16x32xbf16>, vector<32x96xbf16>, vector<16x96xf32> -> vector<16x96xf32>
    %15 = vector.broadcast %12 : vector<1x96xf32> to vector<16x96xf32>
    %16 = arith.addf %14, %15 : vector<16x96xf32>
    %17 = vector.shape_cast %16 : vector<16x96xf32> to vector<2x8x96xf32>
    %18 = vector.extract_strided_slice %17 {offsets = [0, 0, 0], sizes = [2, 8, 32], strides = [1, 1, 1]} : vector<2x8x96xf32> to vector<2x8x32xf32>
    %19 = vector.extract_strided_slice %17 {offsets = [0, 0, 32], sizes = [2, 8, 32], strides = [1, 1, 1]} : vector<2x8x96xf32> to vector<2x8x32xf32>
    %20 = vector.extract_strided_slice %17 {offsets = [0, 0, 64], sizes = [2, 8, 32], strides = [1, 1, 1]} : vector<2x8x96xf32> to vector<2x8x32xf32>
    %21 = tpu.iota {dimensions = array<i32: 0>} : vector<8x8xi32>
    %22 = tpu.iota {dimensions = array<i32: 1>} : vector<8x8xi32>
    %23 = arith.cmpi sgt, %22, %21 : vector<8x8xi32>
    %cst_15 = arith.constant 0xFF800000 : f32
    %cst_16 = arith.constant 0.000000e+00 : f32
    %24 = vector.broadcast %cst_15 : f32 to vector<8x8xf32>
    %25 = vector.broadcast %cst_16 : f32 to vector<8x8xf32>
    %26 = arith.select %23, %24, %25 : vector<8x8xi1>, vector<8x8xf32>
    %27 = vector.shape_cast %26 : vector<8x8xf32> to vector<1x8x8xf32>
    %28 = vector.extract_strided_slice %18 {offsets = [0, 0, 0], sizes = [2, 8, 8], strides = [1, 1, 1]} : vector<2x8x32xf32> to vector<2x8x8xf32>
    %29 = vector.extract_strided_slice %19 {offsets = [0, 0, 0], sizes = [2, 8, 8], strides = [1, 1, 1]} : vector<2x8x32xf32> to vector<2x8x8xf32>
    "tpu.trace_start"() <{level = 10 : i32, message = "bqd,bkd->bqk"}> : () -> ()
    %cst_17 = arith.constant dense<0.000000e+00> : vector<2x8x8xf32>
    %30 = tpu.matmul %28, %29, %cst_17 {dimension_numbers = #tpu.dot_dimension_numbers<[2], [2], [1], [1], [0, 0, 0, 1, 1, 1], [0], [0]>} : vector<2x8x8xf32>, vector<2x8x8xf32>, vector<2x8x8xf32> -> vector<2x8x8xf32>
    "tpu.trace_stop"() : () -> ()
    %31 = vector.broadcast %27 : vector<1x8x8xf32> to vector<2x8x8xf32>
    %32 = arith.addf %30, %31 : vector<2x8x8xf32>
    %cst_18 = arith.constant dense<0xFF800000> : vector<2x8xf32>
    %33 = vector.multi_reduction <maximumf>, %32, %cst_18 [2] : vector<2x8x8xf32> to vector<2x8xf32>
    %34 = vector.shape_cast %33 : vector<2x8xf32> to vector<2x8x1xf32>
    %35 = vector.broadcast %34 : vector<2x8x1xf32> to vector<2x8x8xf32>
    %36 = arith.subf %32, %35 : vector<2x8x8xf32>
    %37 = math.exp %36 : vector<2x8x8xf32>
    %cst_19 = arith.constant dense<0.000000e+00> : vector<2x8xf32>
    %38 = vector.multi_reduction <add>, %37, %cst_19 [2] : vector<2x8x8xf32> to vector<2x8xf32>
    %39 = vector.shape_cast %38 : vector<2x8xf32> to vector<2x8x1xf32>
    %40 = tpu.reciprocal %39 {approx = true} : vector<2x8x1xf32> -> vector<2x8x1xf32>
    %41 = vector.broadcast %40 : vector<2x8x1xf32> to vector<2x8x8xf32>
    %42 = arith.mulf %37, %41 : vector<2x8x8xf32>
    %43 = vector.extract_strided_slice %20 {offsets = [0, 0, 0], sizes = [2, 8, 8], strides = [1, 1, 1]} : vector<2x8x32xf32> to vector<2x8x8xf32>
    "tpu.trace_start"() <{level = 10 : i32, message = "bqk,bkd->bqd"}> : () -> ()
    %cst_20 = arith.constant dense<0.000000e+00> : vector<2x8x8xf32>
    %44 = tpu.matmul %42, %43, %cst_20 {dimension_numbers = #tpu.dot_dimension_numbers<[2], [1], [1], [2], [0, 0, 0, 1, 1, 2], [0], [0]>} : vector<2x8x8xf32>, vector<2x8x8xf32>, vector<2x8x8xf32> -> vector<2x8x8xf32>
    "tpu.trace_stop"() : () -> ()
    %45 = vector.extract_strided_slice %18 {offsets = [0, 0, 8], sizes = [2, 8, 8], strides = [1, 1, 1]} : vector<2x8x32xf32> to vector<2x8x8xf32>
    %46 = vector.extract_strided_slice %19 {offsets = [0, 0, 8], sizes = [2, 8, 8], strides = [1, 1, 1]} : vector<2x8x32xf32> to vector<2x8x8xf32>
    "tpu.trace_start"() <{level = 10 : i32, message = "bqd,bkd->bqk"}> : () -> ()
    %cst_21 = arith.constant dense<0.000000e+00> : vector<2x8x8xf32>
    %47 = tpu.matmul %45, %46, %cst_21 {dimension_numbers = #tpu.dot_dimension_numbers<[2], [2], [1], [1], [0, 0, 0, 1, 1, 1], [0], [0]>} : vector<2x8x8xf32>, vector<2x8x8xf32>, vector<2x8x8xf32> -> vector<2x8x8xf32>
    "tpu.trace_stop"() : () -> ()
    %48 = vector.broadcast %27 : vector<1x8x8xf32> to vector<2x8x8xf32>
    %49 = arith.addf %47, %48 : vector<2x8x8xf32>
    %cst_22 = arith.constant dense<0xFF800000> : vector<2x8xf32>
    %50 = vector.multi_reduction <maximumf>, %49, %cst_22 [2] : vector<2x8x8xf32> to vector<2x8xf32>
    %51 = vector.shape_cast %50 : vector<2x8xf32> to vector<2x8x1xf32>
    %52 = vector.broadcast %51 : vector<2x8x1xf32> to vector<2x8x8xf32>
    %53 = arith.subf %49, %52 : vector<2x8x8xf32>
    %54 = math.exp %53 : vector<2x8x8xf32>
    %cst_23 = arith.constant dense<0.000000e+00> : vector<2x8xf32>
    %55 = vector.multi_reduction <add>, %54, %cst_23 [2] : vector<2x8x8xf32> to vector<2x8xf32>
    %56 = vector.shape_cast %55 : vector<2x8xf32> to vector<2x8x1xf32>
    %57 = tpu.reciprocal %56 {approx = true} : vector<2x8x1xf32> -> vector<2x8x1xf32>
    %58 = vector.broadcast %57 : vector<2x8x1xf32> to vector<2x8x8xf32>
    %59 = arith.mulf %54, %58 : vector<2x8x8xf32>
    %60 = vector.extract_strided_slice %20 {offsets = [0, 0, 8], sizes = [2, 8, 8], strides = [1, 1, 1]} : vector<2x8x32xf32> to vector<2x8x8xf32>
    "tpu.trace_start"() <{level = 10 : i32, message = "bqk,bkd->bqd"}> : () -> ()
    %cst_24 = arith.constant dense<0.000000e+00> : vector<2x8x8xf32>
    %61 = tpu.matmul %59, %60, %cst_24 {dimension_numbers = #tpu.dot_dimension_numbers<[2], [1], [1], [2], [0, 0, 0, 1, 1, 2], [0], [0]>} : vector<2x8x8xf32>, vector<2x8x8xf32>, vector<2x8x8xf32> -> vector<2x8x8xf32>
    "tpu.trace_stop"() : () -> ()
    %62 = vector.extract_strided_slice %18 {offsets = [0, 0, 16], sizes = [2, 8, 8], strides = [1, 1, 1]} : vector<2x8x32xf32> to vector<2x8x8xf32>
    %63 = vector.extract_strided_slice %19 {offsets = [0, 0, 16], sizes = [2, 8, 8], strides = [1, 1, 1]} : vector<2x8x32xf32> to vector<2x8x8xf32>
    "tpu.trace_start"() <{level = 10 : i32, message = "bqd,bkd->bqk"}> : () -> ()
    %cst_25 = arith.constant dense<0.000000e+00> : vector<2x8x8xf32>
    %64 = tpu.matmul %62, %63, %cst_25 {dimension_numbers = #tpu.dot_dimension_numbers<[2], [2], [1], [1], [0, 0, 0, 1, 1, 1], [0], [0]>} : vector<2x8x8xf32>, vector<2x8x8xf32>, vector<2x8x8xf32> -> vector<2x8x8xf32>
    "tpu.trace_stop"() : () -> ()
    %65 = vector.broadcast %27 : vector<1x8x8xf32> to vector<2x8x8xf32>
    %66 = arith.addf %64, %65 : vector<2x8x8xf32>
    %cst_26 = arith.constant dense<0xFF800000> : vector<2x8xf32>
    %67 = vector.multi_reduction <maximumf>, %66, %cst_26 [2] : vector<2x8x8xf32> to vector<2x8xf32>
    %68 = vector.shape_cast %67 : vector<2x8xf32> to vector<2x8x1xf32>
    %69 = vector.broadcast %68 : vector<2x8x1xf32> to vector<2x8x8xf32>
    %70 = arith.subf %66, %69 : vector<2x8x8xf32>
    %71 = math.exp %70 : vector<2x8x8xf32>
    %cst_27 = arith.constant dense<0.000000e+00> : vector<2x8xf32>
    %72 = vector.multi_reduction <add>, %71, %cst_27 [2] : vector<2x8x8xf32> to vector<2x8xf32>
    %73 = vector.shape_cast %72 : vector<2x8xf32> to vector<2x8x1xf32>
    %74 = tpu.reciprocal %73 {approx = true} : vector<2x8x1xf32> -> vector<2x8x1xf32>
    %75 = vector.broadcast %74 : vector<2x8x1xf32> to vector<2x8x8xf32>
    %76 = arith.mulf %71, %75 : vector<2x8x8xf32>
    %77 = vector.extract_strided_slice %20 {offsets = [0, 0, 16], sizes = [2, 8, 8], strides = [1, 1, 1]} : vector<2x8x32xf32> to vector<2x8x8xf32>
    "tpu.trace_start"() <{level = 10 : i32, message = "bqk,bkd->bqd"}> : () -> ()
    %cst_28 = arith.constant dense<0.000000e+00> : vector<2x8x8xf32>
    %78 = tpu.matmul %76, %77, %cst_28 {dimension_numbers = #tpu.dot_dimension_numbers<[2], [1], [1], [2], [0, 0, 0, 1, 1, 2], [0], [0]>} : vector<2x8x8xf32>, vector<2x8x8xf32>, vector<2x8x8xf32> -> vector<2x8x8xf32>
    "tpu.trace_stop"() : () -> ()
    %79 = vector.extract_strided_slice %18 {offsets = [0, 0, 24], sizes = [2, 8, 8], strides = [1, 1, 1]} : vector<2x8x32xf32> to vector<2x8x8xf32>
    %80 = vector.extract_strided_slice %19 {offsets = [0, 0, 24], sizes = [2, 8, 8], strides = [1, 1, 1]} : vector<2x8x32xf32> to vector<2x8x8xf32>
    "tpu.trace_start"() <{level = 10 : i32, message = "bqd,bkd->bqk"}> : () -> ()
    %cst_29 = arith.constant dense<0.000000e+00> : vector<2x8x8xf32>
    %81 = tpu.matmul %79, %80, %cst_29 {dimension_numbers = #tpu.dot_dimension_numbers<[2], [2], [1], [1], [0, 0, 0, 1, 1, 1], [0], [0]>} : vector<2x8x8xf32>, vector<2x8x8xf32>, vector<2x8x8xf32> -> vector<2x8x8xf32>
    "tpu.trace_stop"() : () -> ()
    %82 = vector.broadcast %27 : vector<1x8x8xf32> to vector<2x8x8xf32>
    %83 = arith.addf %81, %82 : vector<2x8x8xf32>
    %cst_30 = arith.constant dense<0xFF800000> : vector<2x8xf32>
    %84 = vector.multi_reduction <maximumf>, %83, %cst_30 [2] : vector<2x8x8xf32> to vector<2x8xf32>
    %85 = vector.shape_cast %84 : vector<2x8xf32> to vector<2x8x1xf32>
    %86 = vector.broadcast %85 : vector<2x8x1xf32> to vector<2x8x8xf32>
    %87 = arith.subf %83, %86 : vector<2x8x8xf32>
    %88 = math.exp %87 : vector<2x8x8xf32>
    %cst_31 = arith.constant dense<0.000000e+00> : vector<2x8xf32>
    %89 = vector.multi_reduction <add>, %88, %cst_31 [2] : vector<2x8x8xf32> to vector<2x8xf32>
    %90 = vector.shape_cast %89 : vector<2x8xf32> to vector<2x8x1xf32>
    %91 = tpu.reciprocal %90 {approx = true} : vector<2x8x1xf32> -> vector<2x8x1xf32>
    %92 = vector.broadcast %91 : vector<2x8x1xf32> to vector<2x8x8xf32>
    %93 = arith.mulf %88, %92 : vector<2x8x8xf32>
    %94 = vector.extract_strided_slice %20 {offsets = [0, 0, 24], sizes = [2, 8, 8], strides = [1, 1, 1]} : vector<2x8x32xf32> to vector<2x8x8xf32>
    "tpu.trace_start"() <{level = 10 : i32, message = "bqk,bkd->bqd"}> : () -> ()
    %cst_32 = arith.constant dense<0.000000e+00> : vector<2x8x8xf32>
    %95 = tpu.matmul %93, %94, %cst_32 {dimension_numbers = #tpu.dot_dimension_numbers<[2], [1], [1], [2], [0, 0, 0, 1, 1, 2], [0], [0]>} : vector<2x8x8xf32>, vector<2x8x8xf32>, vector<2x8x8xf32> -> vector<2x8x8xf32>
    "tpu.trace_stop"() : () -> ()
    %96 = tpu.concatenate %44, %61, %78, %95 in 2 : vector<2x8x8xf32>, vector<2x8x8xf32>, vector<2x8x8xf32>, vector<2x8x8xf32> -> vector<2x8x32xf32>
    %97 = vector.shape_cast %96 : vector<2x8x32xf32> to vector<16x32xf32>
    %c0_33 = arith.constant 0 : index
    %c0_34 = arith.constant 0 : index
    %c0_35 = arith.constant 0 : index
    %98 = vector.load %arg8[%c0_33, %c0_34, %c0_35] : memref<1x32x32xbf16, #tpu.memory_space<vmem>>, vector<1x32x32xbf16>
    %99 = vector.shape_cast %98 : vector<1x32x32xbf16> to vector<32x32xbf16>
    %c0_36 = arith.constant 0 : index
    %c0_37 = arith.constant 0 : index
    %c0_38 = arith.constant 0 : index
    %100 = vector.load %arg9[%c0_36, %c0_37, %c0_38] : memref<1x1x32xf32, #tpu.memory_space<vmem>>, vector<1x1x32xf32>
    %101 = vector.shape_cast %100 : vector<1x1x32xf32> to vector<1x32xf32>
    %102 = arith.truncf %97 : vector<16x32xf32> to vector<16x32xbf16>
    %cst_39 = arith.constant dense<0.000000e+00> : vector<16x32xf32>
    %103 = tpu.matmul %102, %99, %cst_39 {dimension_numbers = #tpu.dot_dimension_numbers<[1], [0], [0], [1], [0, 0, 1, 1], [], []>} : vector<16x32xbf16>, vector<32x32xbf16>, vector<16x32xf32> -> vector<16x32xf32>
    %104 = vector.broadcast %101 : vector<1x32xf32> to vector<16x32xf32>
    %105 = arith.addf %103, %104 : vector<16x32xf32>
    %106 = vector.extract_strided_slice %6 {offsets = [0, 0], sizes = [1, 32], strides = [1, 1]} : vector<3x32xf32> to vector<1x32xf32>
    %107 = vector.extract_strided_slice %8 {offsets = [0, 0], sizes = [1, 32], strides = [1, 1]} : vector<3x32xf32> to vector<1x32xf32>
    %108 = arith.addf %4, %105 : vector<16x32xf32>
    %cst_40 = arith.constant dense<0.000000e+00> : vector<16xf32>
    %109 = vector.multi_reduction <add>, %108, %cst_40 [1] : vector<16x32xf32> to vector<16xf32>
    %110 = vector.shape_cast %109 : vector<16xf32> to vector<16x1xf32>
    %cst_41 = arith.constant 3.200000e+01 : f32
    %111 = vector.broadcast %cst_41 : f32 to vector<16x1xf32>
    %112 = arith.divf %110, %111 : vector<16x1xf32>
    %113 = vector.broadcast %112 : vector<16x1xf32> to vector<16x32xf32>
    %114 = arith.subf %108, %113 : vector<16x32xf32>
    %115 = arith.mulf %114, %114 : vector<16x32xf32>
    %cst_42 = arith.constant dense<0.000000e+00> : vector<16xf32>
    %116 = vector.multi_reduction <add>, %115, %cst_42 [1] : vector<16x32xf32> to vector<16xf32>
    %117 = vector.shape_cast %116 : vector<16xf32> to vector<16x1xf32>
    %cst_43 = arith.constant 3.200000e+01 : f32
    %118 = vector.broadcast %cst_43 : f32 to vector<16x1xf32>
    %119 = arith.divf %117, %118 : vector<16x1xf32>
    %120 = vector.broadcast %112 : vector<16x1xf32> to vector<16x32xf32>
    %121 = arith.subf %108, %120 : vector<16x32xf32>
    %cst_44 = arith.constant 9.99999974E-6 : f32
    %122 = vector.broadcast %cst_44 : f32 to vector<16x1xf32>
    %123 = arith.addf %119, %122 : vector<16x1xf32>
    %124 = math.rsqrt %123 : vector<16x1xf32>
    %125 = vector.broadcast %124 : vector<16x1xf32> to vector<16x32xf32>
    %126 = arith.mulf %121, %125 : vector<16x32xf32>
    %127 = vector.broadcast %106 : vector<1x32xf32> to vector<16x32xf32>
    %128 = arith.mulf %126, %127 : vector<16x32xf32>
    %129 = vector.broadcast %107 : vector<1x32xf32> to vector<16x32xf32>
    %130 = arith.addf %128, %129 : vector<16x32xf32>
    %c0_45 = arith.constant 0 : index
    %c0_46 = arith.constant 0 : index
    %c0_47 = arith.constant 0 : index
    %131 = vector.load %arg10[%c0_45, %c0_46, %c0_47] : memref<1x32x32xbf16, #tpu.memory_space<vmem>>, vector<1x32x32xbf16>
    %132 = vector.shape_cast %131 : vector<1x32x32xbf16> to vector<32x32xbf16>
    %c0_48 = arith.constant 0 : index
    %c0_49 = arith.constant 0 : index
    %c0_50 = arith.constant 0 : index
    %133 = vector.load %arg11[%c0_48, %c0_49, %c0_50] : memref<1x1x32xf32, #tpu.memory_space<vmem>>, vector<1x1x32xf32>
    %134 = vector.shape_cast %133 : vector<1x1x32xf32> to vector<1x32xf32>
    %135 = arith.truncf %130 : vector<16x32xf32> to vector<16x32xbf16>
    %cst_51 = arith.constant dense<0.000000e+00> : vector<16x32xf32>
    %136 = tpu.matmul %135, %132, %cst_51 {dimension_numbers = #tpu.dot_dimension_numbers<[1], [0], [0], [1], [0, 0, 1, 1], [], []>} : vector<16x32xbf16>, vector<32x32xbf16>, vector<16x32xf32> -> vector<16x32xf32>
    %137 = vector.broadcast %134 : vector<1x32xf32> to vector<16x32xf32>
    %138 = arith.addf %136, %137 : vector<16x32xf32>
    %139 = vector.shape_cast %138 : vector<16x32xf32> to vector<2x8x32xf32>
    %c0_52 = arith.constant 0 : index
    %c0_53 = arith.constant 0 : index
    %c0_54 = arith.constant 0 : index
    %140 = vector.load %arg12[%c0_52, %c0_53, %c0_54] : memref<1x32x64xbf16, #tpu.memory_space<vmem>>, vector<1x32x64xbf16>
    %141 = vector.shape_cast %140 : vector<1x32x64xbf16> to vector<32x64xbf16>
    %c0_55 = arith.constant 0 : index
    %c0_56 = arith.constant 0 : index
    %c0_57 = arith.constant 0 : index
    %142 = vector.load %arg13[%c0_55, %c0_56, %c0_57] : memref<1x1x64xf32, #tpu.memory_space<vmem>>, vector<1x1x64xf32>
    %143 = vector.shape_cast %142 : vector<1x1x64xf32> to vector<1x64xf32>
    %c0_58 = arith.constant 0 : index
    %c0_59 = arith.constant 0 : index
    %c0_60 = arith.constant 0 : index
    %144 = vector.load %arg24[%c0_58, %c0_59, %c0_60] : memref<2x49x32xf32, #tpu.memory_space<vmem>>, vector<1x49x32xf32>
    %145 = vector.shape_cast %144 : vector<1x49x32xf32> to vector<49x32xf32>
    %146 = arith.truncf %145 : vector<49x32xf32> to vector<49x32xbf16>
    %cst_61 = arith.constant dense<0.000000e+00> : vector<49x64xf32>
    %147 = tpu.matmul %146, %141, %cst_61 {dimension_numbers = #tpu.dot_dimension_numbers<[1], [0], [0], [1], [0, 0, 1, 1], [], []>} : vector<49x32xbf16>, vector<32x64xbf16>, vector<49x64xf32> -> vector<49x64xf32>
    %148 = vector.broadcast %143 : vector<1x64xf32> to vector<49x64xf32>
    %149 = arith.addf %147, %148 : vector<49x64xf32>
    %c0_62 = arith.constant 0 : index
    %c0_63 = arith.constant 0 : index
    %c0_64 = arith.constant 0 : index
    %150 = vector.load %arg25[%c0_62, %c0_63, %c0_64] : memref<2x49x64xf32, #tpu.memory_space<vmem>>, vector<1x49x64xf32>
    %151 = vector.shape_cast %150 : vector<1x49x64xf32> to vector<49x64xf32>
    %152 = vector.shape_cast %149 : vector<49x64xf32> to vector<1x49x64xf32>
    tpu.vector_store %arg25[%c0_62, %c0_63, %c0_64], %152 {strides = array<i32>} : memref<2x49x64xf32, #tpu.memory_space<vmem>>, vector<1x49x64xf32>,
    %c1 = arith.constant 1 : index
    %c0_65 = arith.constant 0 : index
    %c0_66 = arith.constant 0 : index
    %153 = vector.load %arg24[%c1, %c0_65, %c0_66] : memref<2x49x32xf32, #tpu.memory_space<vmem>>, vector<1x49x32xf32>
    %154 = vector.shape_cast %153 : vector<1x49x32xf32> to vector<49x32xf32>
    %155 = arith.truncf %154 : vector<49x32xf32> to vector<49x32xbf16>
    %cst_67 = arith.constant dense<0.000000e+00> : vector<49x64xf32>
    %156 = tpu.matmul %155, %141, %cst_67 {dimension_numbers = #tpu.dot_dimension_numbers<[1], [0], [0], [1], [0, 0, 1, 1], [], []>} : vector<49x32xbf16>, vector<32x64xbf16>, vector<49x64xf32> -> vector<49x64xf32>
    %157 = vector.broadcast %143 : vector<1x64xf32> to vector<49x64xf32>
    %158 = arith.addf %156, %157 : vector<49x64xf32>
    %c1_68 = arith.constant 1 : index
    %c0_69 = arith.constant 0 : index
    %c0_70 = arith.constant 0 : index
    %159 = vector.load %arg25[%c1_68, %c0_69, %c0_70] : memref<2x49x64xf32, #tpu.memory_space<vmem>>, vector<1x49x64xf32>
    %160 = vector.shape_cast %159 : vector<1x49x64xf32> to vector<49x64xf32>
    %161 = vector.shape_cast %158 : vector<49x64xf32> to vector<1x49x64xf32>
    tpu.vector_store %arg25[%c1_68, %c0_69, %c0_70], %161 {strides = array<i32>} : memref<2x49x64xf32, #tpu.memory_space<vmem>>, vector<1x49x64xf32>,
    %c0_71 = arith.constant 0 : index
    %c0_72 = arith.constant 0 : index
    %c0_73 = arith.constant 0 : index
    %162 = vector.load %arg25[%c0_71, %c0_72, %c0_73] : memref<2x49x64xf32, #tpu.memory_space<vmem>>, vector<2x49x64xf32>
    %163 = vector.extract_strided_slice %162 {offsets = [0, 0, 0], sizes = [2, 49, 32], strides = [1, 1, 1]} : vector<2x49x64xf32> to vector<2x49x32xf32>
    %164 = vector.extract_strided_slice %162 {offsets = [0, 0, 32], sizes = [2, 49, 32], strides = [1, 1, 1]} : vector<2x49x64xf32> to vector<2x49x32xf32>
    %165 = vector.extract_strided_slice %139 {offsets = [0, 0, 0], sizes = [2, 8, 8], strides = [1, 1, 1]} : vector<2x8x32xf32> to vector<2x8x8xf32>
    %166 = vector.extract_strided_slice %163 {offsets = [0, 0, 0], sizes = [2, 49, 8], strides = [1, 1, 1]} : vector<2x49x32xf32> to vector<2x49x8xf32>
    "tpu.trace_start"() <{level = 10 : i32, message = "bqd,bkd->bqk"}> : () -> ()
    %cst_74 = arith.constant dense<0.000000e+00> : vector<2x8x49xf32>
    %167 = tpu.matmul %165, %166, %cst_74 {dimension_numbers = #tpu.dot_dimension_numbers<[2], [2], [1], [1], [0, 0, 0, 1, 1, 1], [0], [0]>} : vector<2x8x8xf32>, vector<2x49x8xf32>, vector<2x8x49xf32> -> vector<2x8x49xf32>
    "tpu.trace_stop"() : () -> ()
    %cst_75 = arith.constant dense<0xFF800000> : vector<2x8xf32>
    %168 = vector.multi_reduction <maximumf>, %167, %cst_75 [2] : vector<2x8x49xf32> to vector<2x8xf32>
    %169 = vector.shape_cast %168 : vector<2x8xf32> to vector<2x8x1xf32>
    %170 = vector.broadcast %169 : vector<2x8x1xf32> to vector<2x8x49xf32>
    %171 = arith.subf %167, %170 : vector<2x8x49xf32>
    %172 = math.exp %171 : vector<2x8x49xf32>
    %cst_76 = arith.constant dense<0.000000e+00> : vector<2x8xf32>
    %173 = vector.multi_reduction <add>, %172, %cst_76 [2] : vector<2x8x49xf32> to vector<2x8xf32>
    %174 = vector.shape_cast %173 : vector<2x8xf32> to vector<2x8x1xf32>
    %175 = tpu.reciprocal %174 {approx = true} : vector<2x8x1xf32> -> vector<2x8x1xf32>
    %176 = vector.broadcast %175 : vector<2x8x1xf32> to vector<2x8x49xf32>
    %177 = arith.mulf %172, %176 : vector<2x8x49xf32>
    %178 = vector.extract_strided_slice %164 {offsets = [0, 0, 0], sizes = [2, 49, 8], strides = [1, 1, 1]} : vector<2x49x32xf32> to vector<2x49x8xf32>
    "tpu.trace_start"() <{level = 10 : i32, message = "bqk,bkd->bqd"}> : () -> ()
    %cst_77 = arith.constant dense<0.000000e+00> : vector<2x8x8xf32>
    %179 = tpu.matmul %177, %178, %cst_77 {dimension_numbers = #tpu.dot_dimension_numbers<[2], [1], [1], [2], [0, 0, 0, 1, 1, 2], [0], [0]>} : vector<2x8x49xf32>, vector<2x49x8xf32>, vector<2x8x8xf32> -> vector<2x8x8xf32>
    "tpu.trace_stop"() : () -> ()
    %180 = vector.extract_strided_slice %139 {offsets = [0, 0, 8], sizes = [2, 8, 8], strides = [1, 1, 1]} : vector<2x8x32xf32> to vector<2x8x8xf32>
    %181 = vector.extract_strided_slice %163 {offsets = [0, 0, 8], sizes = [2, 49, 8], strides = [1, 1, 1]} : vector<2x49x32xf32> to vector<2x49x8xf32>
    "tpu.trace_start"() <{level = 10 : i32, message = "bqd,bkd->bqk"}> : () -> ()
    %cst_78 = arith.constant dense<0.000000e+00> : vector<2x8x49xf32>
    %182 = tpu.matmul %180, %181, %cst_78 {dimension_numbers = #tpu.dot_dimension_numbers<[2], [2], [1], [1], [0, 0, 0, 1, 1, 1], [0], [0]>} : vector<2x8x8xf32>, vector<2x49x8xf32>, vector<2x8x49xf32> -> vector<2x8x49xf32>
    "tpu.trace_stop"() : () -> ()
    %cst_79 = arith.constant dense<0xFF800000> : vector<2x8xf32>
    %183 = vector.multi_reduction <maximumf>, %182, %cst_79 [2] : vector<2x8x49xf32> to vector<2x8xf32>
    %184 = vector.shape_cast %183 : vector<2x8xf32> to vector<2x8x1xf32>
    %185 = vector.broadcast %184 : vector<2x8x1xf32> to vector<2x8x49xf32>
    %186 = arith.subf %182, %185 : vector<2x8x49xf32>
    %187 = math.exp %186 : vector<2x8x49xf32>
    %cst_80 = arith.constant dense<0.000000e+00> : vector<2x8xf32>
    %188 = vector.multi_reduction <add>, %187, %cst_80 [2] : vector<2x8x49xf32> to vector<2x8xf32>
    %189 = vector.shape_cast %188 : vector<2x8xf32> to vector<2x8x1xf32>
    %190 = tpu.reciprocal %189 {approx = true} : vector<2x8x1xf32> -> vector<2x8x1xf32>
    %191 = vector.broadcast %190 : vector<2x8x1xf32> to vector<2x8x49xf32>
    %192 = arith.mulf %187, %191 : vector<2x8x49xf32>
    %193 = vector.extract_strided_slice %164 {offsets = [0, 0, 8], sizes = [2, 49, 8], strides = [1, 1, 1]} : vector<2x49x32xf32> to vector<2x49x8xf32>
    "tpu.trace_start"() <{level = 10 : i32, message = "bqk,bkd->bqd"}> : () -> ()
    %cst_81 = arith.constant dense<0.000000e+00> : vector<2x8x8xf32>
    %194 = tpu.matmul %192, %193, %cst_81 {dimension_numbers = #tpu.dot_dimension_numbers<[2], [1], [1], [2], [0, 0, 0, 1, 1, 2], [0], [0]>} : vector<2x8x49xf32>, vector<2x49x8xf32>, vector<2x8x8xf32> -> vector<2x8x8xf32>
    "tpu.trace_stop"() : () -> ()
    %195 = vector.extract_strided_slice %139 {offsets = [0, 0, 16], sizes = [2, 8, 8], strides = [1, 1, 1]} : vector<2x8x32xf32> to vector<2x8x8xf32>
    %196 = vector.extract_strided_slice %163 {offsets = [0, 0, 16], sizes = [2, 49, 8], strides = [1, 1, 1]} : vector<2x49x32xf32> to vector<2x49x8xf32>
    "tpu.trace_start"() <{level = 10 : i32, message = "bqd,bkd->bqk"}> : () -> ()
    %cst_82 = arith.constant dense<0.000000e+00> : vector<2x8x49xf32>
    %197 = tpu.matmul %195, %196, %cst_82 {dimension_numbers = #tpu.dot_dimension_numbers<[2], [2], [1], [1], [0, 0, 0, 1, 1, 1], [0], [0]>} : vector<2x8x8xf32>, vector<2x49x8xf32>, vector<2x8x49xf32> -> vector<2x8x49xf32>
    "tpu.trace_stop"() : () -> ()
    %cst_83 = arith.constant dense<0xFF800000> : vector<2x8xf32>
    %198 = vector.multi_reduction <maximumf>, %197, %cst_83 [2] : vector<2x8x49xf32> to vector<2x8xf32>
    %199 = vector.shape_cast %198 : vector<2x8xf32> to vector<2x8x1xf32>
    %200 = vector.broadcast %199 : vector<2x8x1xf32> to vector<2x8x49xf32>
    %201 = arith.subf %197, %200 : vector<2x8x49xf32>
    %202 = math.exp %201 : vector<2x8x49xf32>
    %cst_84 = arith.constant dense<0.000000e+00> : vector<2x8xf32>
    %203 = vector.multi_reduction <add>, %202, %cst_84 [2] : vector<2x8x49xf32> to vector<2x8xf32>
    %204 = vector.shape_cast %203 : vector<2x8xf32> to vector<2x8x1xf32>
    %205 = tpu.reciprocal %204 {approx = true} : vector<2x8x1xf32> -> vector<2x8x1xf32>
    %206 = vector.broadcast %205 : vector<2x8x1xf32> to vector<2x8x49xf32>
    %207 = arith.mulf %202, %206 : vector<2x8x49xf32>
    %208 = vector.extract_strided_slice %164 {offsets = [0, 0, 16], sizes = [2, 49, 8], strides = [1, 1, 1]} : vector<2x49x32xf32> to vector<2x49x8xf32>
    "tpu.trace_start"() <{level = 10 : i32, message = "bqk,bkd->bqd"}> : () -> ()
    %cst_85 = arith.constant dense<0.000000e+00> : vector<2x8x8xf32>
    %209 = tpu.matmul %207, %208, %cst_85 {dimension_numbers = #tpu.dot_dimension_numbers<[2], [1], [1], [2], [0, 0, 0, 1, 1, 2], [0], [0]>} : vector<2x8x49xf32>, vector<2x49x8xf32>, vector<2x8x8xf32> -> vector<2x8x8xf32>
    "tpu.trace_stop"() : () -> ()
    %210 = vector.extract_strided_slice %139 {offsets = [0, 0, 24], sizes = [2, 8, 8], strides = [1, 1, 1]} : vector<2x8x32xf32> to vector<2x8x8xf32>
    %211 = vector.extract_strided_slice %163 {offsets = [0, 0, 24], sizes = [2, 49, 8], strides = [1, 1, 1]} : vector<2x49x32xf32> to vector<2x49x8xf32>
    "tpu.trace_start"() <{level = 10 : i32, message = "bqd,bkd->bqk"}> : () -> ()
    %cst_86 = arith.constant dense<0.000000e+00> : vector<2x8x49xf32>
    %212 = tpu.matmul %210, %211, %cst_86 {dimension_numbers = #tpu.dot_dimension_numbers<[2], [2], [1], [1], [0, 0, 0, 1, 1, 1], [0], [0]>} : vector<2x8x8xf32>, vector<2x49x8xf32>, vector<2x8x49xf32> -> vector<2x8x49xf32>
    "tpu.trace_stop"() : () -> ()
    %cst_87 = arith.constant dense<0xFF800000> : vector<2x8xf32>
    %213 = vector.multi_reduction <maximumf>, %212, %cst_87 [2] : vector<2x8x49xf32> to vector<2x8xf32>
    %214 = vector.shape_cast %213 : vector<2x8xf32> to vector<2x8x1xf32>
    %215 = vector.broadcast %214 : vector<2x8x1xf32> to vector<2x8x49xf32>
    %216 = arith.subf %212, %215 : vector<2x8x49xf32>
    %217 = math.exp %216 : vector<2x8x49xf32>
    %cst_88 = arith.constant dense<0.000000e+00> : vector<2x8xf32>
    %218 = vector.multi_reduction <add>, %217, %cst_88 [2] : vector<2x8x49xf32> to vector<2x8xf32>
    %219 = vector.shape_cast %218 : vector<2x8xf32> to vector<2x8x1xf32>
    %220 = tpu.reciprocal %219 {approx = true} : vector<2x8x1xf32> -> vector<2x8x1xf32>
    %221 = vector.broadcast %220 : vector<2x8x1xf32> to vector<2x8x49xf32>
    %222 = arith.mulf %217, %221 : vector<2x8x49xf32>
    %223 = vector.extract_strided_slice %164 {offsets = [0, 0, 24], sizes = [2, 49, 8], strides = [1, 1, 1]} : vector<2x49x32xf32> to vector<2x49x8xf32>
    "tpu.trace_start"() <{level = 10 : i32, message = "bqk,bkd->bqd"}> : () -> ()
    %cst_89 = arith.constant dense<0.000000e+00> : vector<2x8x8xf32>
    %224 = tpu.matmul %222, %223, %cst_89 {dimension_numbers = #tpu.dot_dimension_numbers<[2], [1], [1], [2], [0, 0, 0, 1, 1, 2], [0], [0]>} : vector<2x8x49xf32>, vector<2x49x8xf32>, vector<2x8x8xf32> -> vector<2x8x8xf32>
    "tpu.trace_stop"() : () -> ()
    %225 = tpu.concatenate %179, %194, %209, %224 in 2 : vector<2x8x8xf32>, vector<2x8x8xf32>, vector<2x8x8xf32>, vector<2x8x8xf32> -> vector<2x8x32xf32>
    %226 = vector.shape_cast %225 : vector<2x8x32xf32> to vector<16x32xf32>
    %c0_90 = arith.constant 0 : index
    %c0_91 = arith.constant 0 : index
    %c0_92 = arith.constant 0 : index
    %227 = vector.load %arg14[%c0_90, %c0_91, %c0_92] : memref<1x32x32xbf16, #tpu.memory_space<vmem>>, vector<1x32x32xbf16>
    %228 = vector.shape_cast %227 : vector<1x32x32xbf16> to vector<32x32xbf16>
    %c0_93 = arith.constant 0 : index
    %c0_94 = arith.constant 0 : index
    %c0_95 = arith.constant 0 : index
    %229 = vector.load %arg15[%c0_93, %c0_94, %c0_95] : memref<1x1x32xf32, #tpu.memory_space<vmem>>, vector<1x1x32xf32>
    %230 = vector.shape_cast %229 : vector<1x1x32xf32> to vector<1x32xf32>
    %231 = arith.truncf %226 : vector<16x32xf32> to vector<16x32xbf16>
    %cst_96 = arith.constant dense<0.000000e+00> : vector<16x32xf32>
    %232 = tpu.matmul %231, %228, %cst_96 {dimension_numbers = #tpu.dot_dimension_numbers<[1], [0], [0], [1], [0, 0, 1, 1], [], []>} : vector<16x32xbf16>, vector<32x32xbf16>, vector<16x32xf32> -> vector<16x32xf32>
    %233 = vector.broadcast %230 : vector<1x32xf32> to vector<16x32xf32>
    %234 = arith.addf %232, %233 : vector<16x32xf32>
    %235 = vector.extract_strided_slice %6 {offsets = [1, 0], sizes = [1, 32], strides = [1, 1]} : vector<3x32xf32> to vector<1x32xf32>
    %236 = vector.extract_strided_slice %8 {offsets = [1, 0], sizes = [1, 32], strides = [1, 1]} : vector<3x32xf32> to vector<1x32xf32>
    %237 = arith.addf %130, %234 : vector<16x32xf32>
    %cst_97 = arith.constant dense<0.000000e+00> : vector<16xf32>
    %238 = vector.multi_reduction <add>, %237, %cst_97 [1] : vector<16x32xf32> to vector<16xf32>
    %239 = vector.shape_cast %238 : vector<16xf32> to vector<16x1xf32>
    %cst_98 = arith.constant 3.200000e+01 : f32
    %240 = vector.broadcast %cst_98 : f32 to vector<16x1xf32>
    %241 = arith.divf %239, %240 : vector<16x1xf32>
    %242 = vector.broadcast %241 : vector<16x1xf32> to vector<16x32xf32>
    %243 = arith.subf %237, %242 : vector<16x32xf32>
    %244 = arith.mulf %243, %243 : vector<16x32xf32>
    %cst_99 = arith.constant dense<0.000000e+00> : vector<16xf32>
    %245 = vector.multi_reduction <add>, %244, %cst_99 [1] : vector<16x32xf32> to vector<16xf32>
    %246 = vector.shape_cast %245 : vector<16xf32> to vector<16x1xf32>
    %cst_100 = arith.constant 3.200000e+01 : f32
    %247 = vector.broadcast %cst_100 : f32 to vector<16x1xf32>
    %248 = arith.divf %246, %247 : vector<16x1xf32>
    %249 = vector.broadcast %241 : vector<16x1xf32> to vector<16x32xf32>
    %250 = arith.subf %237, %249 : vector<16x32xf32>
    %cst_101 = arith.constant 9.99999974E-6 : f32
    %251 = vector.broadcast %cst_101 : f32 to vector<16x1xf32>
    %252 = arith.addf %248, %251 : vector<16x1xf32>
    %253 = math.rsqrt %252 : vector<16x1xf32>
    %254 = vector.broadcast %253 : vector<16x1xf32> to vector<16x32xf32>
    %255 = arith.mulf %250, %254 : vector<16x32xf32>
    %256 = vector.broadcast %235 : vector<1x32xf32> to vector<16x32xf32>
    %257 = arith.mulf %255, %256 : vector<16x32xf32>
    %258 = vector.broadcast %236 : vector<1x32xf32> to vector<16x32xf32>
    %259 = arith.addf %257, %258 : vector<16x32xf32>
    %c0_102 = arith.constant 0 : index
    %c0_103 = arith.constant 0 : index
    %c0_104 = arith.constant 0 : index
    %260 = vector.load %arg16[%c0_102, %c0_103, %c0_104] : memref<1x32x64xbf16, #tpu.memory_space<vmem>>, vector<1x32x64xbf16>
    %261 = vector.shape_cast %260 : vector<1x32x64xbf16> to vector<32x64xbf16>
    %c0_105 = arith.constant 0 : index
    %c0_106 = arith.constant 0 : index
    %c0_107 = arith.constant 0 : index
    %262 = vector.load %arg17[%c0_105, %c0_106, %c0_107] : memref<1x1x64xf32, #tpu.memory_space<vmem>>, vector<1x1x64xf32>
    %263 = vector.shape_cast %262 : vector<1x1x64xf32> to vector<1x64xf32>
    %264 = arith.truncf %259 : vector<16x32xf32> to vector<16x32xbf16>
    %cst_108 = arith.constant dense<0.000000e+00> : vector<16x64xf32>
    %265 = tpu.matmul %264, %261, %cst_108 {dimension_numbers = #tpu.dot_dimension_numbers<[1], [0], [0], [1], [0, 0, 1, 1], [], []>} : vector<16x32xbf16>, vector<32x64xbf16>, vector<16x64xf32> -> vector<16x64xf32>
    %266 = vector.broadcast %263 : vector<1x64xf32> to vector<16x64xf32>
    %267 = arith.addf %265, %266 : vector<16x64xf32>
    %cst_109 = arith.constant 0.000000e+00 : f32
    %268 = vector.broadcast %cst_109 : f32 to vector<16x64xf32>
    %269 = arith.maximumf %267, %268 : vector<16x64xf32>
    %c0_110 = arith.constant 0 : index
    %c0_111 = arith.constant 0 : index
    %c0_112 = arith.constant 0 : index
    %270 = vector.load %arg18[%c0_110, %c0_111, %c0_112] : memref<1x64x32xbf16, #tpu.memory_space<vmem>>, vector<1x64x32xbf16>
    %271 = vector.shape_cast %270 : vector<1x64x32xbf16> to vector<64x32xbf16>
    %c0_113 = arith.constant 0 : index
    %c0_114 = arith.constant 0 : index
    %c0_115 = arith.constant 0 : index
    %272 = vector.load %arg19[%c0_113, %c0_114, %c0_115] : memref<1x1x32xf32, #tpu.memory_space<vmem>>, vector<1x1x32xf32>
    %273 = vector.shape_cast %272 : vector<1x1x32xf32> to vector<1x32xf32>
    %274 = arith.truncf %269 : vector<16x64xf32> to vector<16x64xbf16>
    %cst_116 = arith.constant dense<0.000000e+00> : vector<16x32xf32>
    %275 = tpu.matmul %274, %271, %cst_116 {dimension_numbers = #tpu.dot_dimension_numbers<[1], [0], [0], [1], [0, 0, 1, 1], [], []>} : vector<16x64xbf16>, vector<64x32xbf16>, vector<16x32xf32> -> vector<16x32xf32>
    %276 = vector.broadcast %273 : vector<1x32xf32> to vector<16x32xf32>
    %277 = arith.addf %275, %276 : vector<16x32xf32>
    %278 = vector.extract_strided_slice %6 {offsets = [2, 0], sizes = [1, 32], strides = [1, 1]} : vector<3x32xf32> to vector<1x32xf32>
    %279 = vector.extract_strided_slice %8 {offsets = [2, 0], sizes = [1, 32], strides = [1, 1]} : vector<3x32xf32> to vector<1x32xf32>
    %280 = arith.addf %259, %277 : vector<16x32xf32>
    %cst_117 = arith.constant dense<0.000000e+00> : vector<16xf32>
    %281 = vector.multi_reduction <add>, %280, %cst_117 [1] : vector<16x32xf32> to vector<16xf32>
    %282 = vector.shape_cast %281 : vector<16xf32> to vector<16x1xf32>
    %cst_118 = arith.constant 3.200000e+01 : f32
    %283 = vector.broadcast %cst_118 : f32 to vector<16x1xf32>
    %284 = arith.divf %282, %283 : vector<16x1xf32>
    %285 = vector.broadcast %284 : vector<16x1xf32> to vector<16x32xf32>
    %286 = arith.subf %280, %285 : vector<16x32xf32>
    %287 = arith.mulf %286, %286 : vector<16x32xf32>
    %cst_119 = arith.constant dense<0.000000e+00> : vector<16xf32>
    %288 = vector.multi_reduction <add>, %287, %cst_119 [1] : vector<16x32xf32> to vector<16xf32>
    %289 = vector.shape_cast %288 : vector<16xf32> to vector<16x1xf32>
    %cst_120 = arith.constant 3.200000e+01 : f32
    %290 = vector.broadcast %cst_120 : f32 to vector<16x1xf32>
    %291 = arith.divf %289, %290 : vector<16x1xf32>
    %292 = vector.broadcast %284 : vector<16x1xf32> to vector<16x32xf32>
    %293 = arith.subf %280, %292 : vector<16x32xf32>
    %cst_121 = arith.constant 9.99999974E-6 : f32
    %294 = vector.broadcast %cst_121 : f32 to vector<16x1xf32>
    %295 = arith.addf %291, %294 : vector<16x1xf32>
    %296 = math.rsqrt %295 : vector<16x1xf32>
    %297 = vector.broadcast %296 : vector<16x1xf32> to vector<16x32xf32>
    %298 = arith.mulf %293, %297 : vector<16x32xf32>
    %299 = vector.broadcast %278 : vector<1x32xf32> to vector<16x32xf32>
    %300 = arith.mulf %298, %299 : vector<16x32xf32>
    %301 = vector.broadcast %279 : vector<1x32xf32> to vector<16x32xf32>
    %302 = arith.addf %300, %301 : vector<16x32xf32>
    %303 = vector.shape_cast %302 : vector<16x32xf32> to vector<2x8x32xf32>
    %c0_122 = arith.constant 0 : index
    %c0_123 = arith.constant 0 : index
    %c0_124 = arith.constant 0 : index
    %304 = vector.load %arg23[%c0_122, %c0_123, %c0_124] : memref<2x8x32xf32, #tpu.memory_space<vmem>>, vector<2x8x32xf32>
    tpu.vector_store %arg23[%c0_122, %c0_123, %c0_124], %303 {strides = array<i32>} : memref<2x8x32xf32, #tpu.memory_space<vmem>>, vector<2x8x32xf32>,
    %c1_i32 = arith.constant 1 : i32
    %305 = arith.cmpi eq, %arg0, %c1_i32 : i32
    %306 = arith.extui %305 : i1 to i32
    %c0_i32_125 = arith.constant 0 : i32
    %307 = arith.cmpi ne, %306, %c0_i32_125 : i32
    scf.if %307 {
      %308 = vector.shape_cast %302 : vector<16x32xf32> to vector<2x8x32xf32>
      %c0_126 = arith.constant 0 : index
      %c0_127 = arith.constant 0 : index
      %c0_128 = arith.constant 0 : index
      %309 = vector.load %arg22[%c0_126, %c0_127, %c0_128] : memref<2x8x32xf32, #tpu.memory_space<vmem>>, vector<2x8x32xf32>
      tpu.vector_store %arg22[%c0_126, %c0_127, %c0_128], %308 {strides = array<i32>} : memref<2x8x32xf32, #tpu.memory_space<vmem>>, vector<2x8x32xf32>,
    } else {
    }
    return
  }
  func.func @transform_0(%arg0: i32) -> (i32, i32, i32) {
    %c0_i32 = arith.constant 0 : i32
    %c0_i32_0 = arith.constant 0 : i32
    %c0_i32_1 = arith.constant 0 : i32
    %c0_i32_2 = arith.constant 0 : i32
    return %c0_i32, %c0_i32_0, %c0_i32_1 : i32, i32, i32
  }
  func.func @transform_1(%arg0: i32) -> (i32, i32, i32) {
    %c0_i32 = arith.constant 0 : i32
    %c0_i32_0 = arith.constant 0 : i32
    %c0_i32_1 = arith.constant 0 : i32
    %c0_i32_2 = arith.constant 0 : i32
    return %c0_i32, %c0_i32_0, %c0_i32_1 : i32, i32, i32
  }
  func.func @transform_2(%arg0: i32) -> (i32, i32) {
    %c0_i32 = arith.constant 0 : i32
    %c0_i32_0 = arith.constant 0 : i32
    %c0_i32_1 = arith.constant 0 : i32
    return %c0_i32, %c0_i32_0 : i32, i32
  }
  func.func @transform_3(%arg0: i32) -> (i32, i32) {
    %c0_i32 = arith.constant 0 : i32
    %c0_i32_0 = arith.constant 0 : i32
    %c0_i32_1 = arith.constant 0 : i32
    return %c0_i32, %c0_i32_0 : i32, i32
  }
  func.func @transform_4(%arg0: i32) -> (i32, i32, i32) {
    %c0_i32 = arith.constant 0 : i32
    %c0_i32_0 = arith.constant 0 : i32
    %c0_i32_1 = arith.constant 0 : i32
    %c0_i32_2 = arith.constant 0 : i32
    return %c0_i32, %c0_i32_0, %c0_i32_1 : i32, i32, i32
  }
  func.func @transform_5(%arg0: i32) -> (i32, i32, i32) {
    %c0_i32 = arith.constant 0 : i32
    %c0_i32_0 = arith.constant 0 : i32
    %c0_i32_1 = arith.constant 0 : i32
    return %arg0, %c0_i32, %c0_i32_0 : i32, i32, i32
  }
  func.func @transform_6(%arg0: i32) -> (i32, i32, i32) {
    %c0_i32 = arith.constant 0 : i32
    %c0_i32_0 = arith.constant 0 : i32
    %c0_i32_1 = arith.constant 0 : i32
    return %arg0, %c0_i32, %c0_i32_0 : i32, i32, i32
  }
  func.func @transform_7(%arg0: i32) -> (i32, i32, i32) {
    %c0_i32 = arith.constant 0 : i32
    %c0_i32_0 = arith.constant 0 : i32
    %c0_i32_1 = arith.constant 0 : i32
    return %arg0, %c0_i32, %c0_i32_0 : i32, i32, i32
  }
  func.func @transform_8(%arg0: i32) -> (i32, i32, i32) {
    %c0_i32 = arith.constant 0 : i32
    %c0_i32_0 = arith.constant 0 : i32
    %c0_i32_1 = arith.constant 0 : i32
    return %arg0, %c0_i32, %c0_i32_0 : i32, i32, i32
  }
  func.func @transform_9(%arg0: i32) -> (i32, i32, i32) {
    %c0_i32 = arith.constant 0 : i32
    %c0_i32_0 = arith.constant 0 : i32
    %c0_i32_1 = arith.constant 0 : i32
    return %arg0, %c0_i32, %c0_i32_0 : i32, i32, i32
  }
  func.func @transform_10(%arg0: i32) -> (i32, i32, i32) {
    %c0_i32 = arith.constant 0 : i32
    %c0_i32_0 = arith.constant 0 : i32
    %c0_i32_1 = arith.constant 0 : i32
    return %arg0, %c0_i32, %c0_i32_0 : i32, i32, i32
  }
  func.func @transform_11(%arg0: i32) -> (i32, i32, i32) {
    %c0_i32 = arith.constant 0 : i32
    %c0_i32_0 = arith.constant 0 : i32
    %c0_i32_1 = arith.constant 0 : i32
    return %arg0, %c0_i32, %c0_i32_0 : i32, i32, i32
  }
  func.func @transform_12(%arg0: i32) -> (i32, i32, i32) {
    %c0_i32 = arith.constant 0 : i32
    %c0_i32_0 = arith.constant 0 : i32
    %c0_i32_1 = arith.constant 0 : i32
    return %arg0, %c0_i32, %c0_i32_0 : i32, i32, i32
  }
  func.func @transform_13(%arg0: i32) -> (i32, i32, i32) {
    %c0_i32 = arith.constant 0 : i32
    %c0_i32_0 = arith.constant 0 : i32
    %c0_i32_1 = arith.constant 0 : i32
    return %arg0, %c0_i32, %c0_i32_0 : i32, i32, i32
  }
  func.func @transform_14(%arg0: i32) -> (i32, i32, i32) {
    %c0_i32 = arith.constant 0 : i32
    %c0_i32_0 = arith.constant 0 : i32
    %c0_i32_1 = arith.constant 0 : i32
    return %arg0, %c0_i32, %c0_i32_0 : i32, i32, i32
  }
  func.func @transform_15(%arg0: i32) -> (i32, i32, i32) {
    %c0_i32 = arith.constant 0 : i32
    %c0_i32_0 = arith.constant 0 : i32
    %c0_i32_1 = arith.constant 0 : i32
    return %arg0, %c0_i32, %c0_i32_0 : i32, i32, i32
  }
  func.func @transform_16(%arg0: i32) -> (i32, i32, i32) {
    %c0_i32 = arith.constant 0 : i32
    %c0_i32_0 = arith.constant 0 : i32
    %c0_i32_1 = arith.constant 0 : i32
    return %arg0, %c0_i32, %c0_i32_0 : i32, i32, i32
  }
  func.func @transform_17(%arg0: i32) -> (i32, i32, i32) {
    %c0_i32 = arith.constant 0 : i32
    %c0_i32_0 = arith.constant 0 : i32
    %c0_i32_1 = arith.constant 0 : i32
    return %arg0, %c0_i32, %c0_i32_0 : i32, i32, i32
  }
  func.func @transform_18(%arg0: i32) -> (i32, i32, i32) {
    %c0_i32 = arith.constant 0 : i32
    %c0_i32_0 = arith.constant 0 : i32
    %c0_i32_1 = arith.constant 0 : i32
    return %arg0, %c0_i32, %c0_i32_0 : i32, i32, i32
  }
  func.func @transform_19(%arg0: i32) -> (i32, i32, i32) {
    %c0_i32 = arith.constant 0 : i32
    %c0_i32_0 = arith.constant 0 : i32
    %c0_i32_1 = arith.constant 0 : i32
    return %arg0, %c0_i32, %c0_i32_0 : i32, i32, i32
  }
  func.func @transform_20(%arg0: i32) -> (i32, i32, i32) {
    %c0_i32 = arith.constant 0 : i32
    %c0_i32_0 = arith.constant 0 : i32
    %c0_i32_1 = arith.constant 0 : i32
    return %arg0, %c0_i32, %c0_i32_0 : i32, i32, i32
  }
  func.func @transform_21(%arg0: i32) -> (i32, i32, i32) {
    %c0_i32 = arith.constant 0 : i32
    %c0_i32_0 = arith.constant 0 : i32
    %c0_i32_1 = arith.constant 0 : i32
    %c0_i32_2 = arith.constant 0 : i32
    return %c0_i32, %c0_i32_0, %c0_i32_1 : i32, i32, i32
  }
}

</mosaic_0001>

<bundles_post_ra>
// kernel: _lambda_.3
= control target key start
LH: loop header
LB: loop body
LE: loop exit
PB: predicated region body
PF: predicated region fallthrough
CT: control target
= control target key end

     0   :  { %vm38_vm0 = vcmask 261120   ;;  %s115_s1 = inlined_call_operand.vmem [shape: bf16[32,128], index: 1, kind: input, shape index: {}]   ;;  %s116_s0 = inlined_call_operand.vmem [shape: f32[16,32], index: 0, kind: input, shape index: {}]   ;;  %s117_s2 = inlined_call_operand.vmem [shape: f32[1,128], index: 2, kind: input, shape index: {}]   ;;  %s118_s3 = inlined_call_operand.vmem [shape: f32[16,128], index: 3, kind: output, shape index: {}]  }
   0x1   :  { %v72_v0 = vld [vmem:[%s115_s1 + $0x8] sm:$0xff]  ;;  %v71_v1 = vld [vmem:[%s115_s1] sm:$0xff] }
   0x2   :  { %48 = vmatpush.bf16.msra.mxu0 %v72_v0  ;;  %v15_v2 = vld [vmem:[%s116_s0] sm:$0xff]  ;;  %v16_v3 = vld [vmem:[%s116_s0 + $0x8] sm:$0xff] }
   0x3   :  { %v17_v4 = vpack.c.bf16 %v16_v3, %v15_v2  ;;  %v73_v5 = vld [vmem:[%s117_s2] ss:$0 sm:$0xff] }
   0x6   :  { %49 = vmatpush.bf16.msra.mxu0 %v71_v1 }
   0x9   :  { %70 = vmatmul.msk.bf16.vlgmr.msra.gmra.mxu0 %vm38_vm0, %v17_v4 }
  0x86   :  { %v51_v6 = vpop.f32.mrf.mxu0 }
  0x87   :  { %v52_v7 = vadd.f32 %v73_v5, %v51_v6 }
  0x89   :  { %56 = vst [vmem:[%s118_s3] sm:$0xff] %v52_v7 }
  0x8e   :  { %v53_v8 = vpop.f32.mrf.mxu0 }
  0x8f   :  { %v54_v9 = vadd.f32 %v73_v5, %v53_v8 }
  0x91   :  { %57 = vst [vmem:[%s118_s3 + $0x8] sm:$0xff] %v54_v9 }

// kernel: _lambda_.2
= control target key start
LH: loop header
LB: loop body
LE: loop exit
PB: predicated region body
PF: predicated region fallthrough
CT: control target
= control target key end

     0   :  { %s4827_s0 = inlined_call_operand.vmem [shape: f32[2,8,32], index: 0, kind: input, shape index: {}]   ;;  %s4828_s1 = inlined_call_operand.vmem [shape: f32[2,49,48], index: 1, kind: input, shape index: {}]   ;;  %s4829_s2 = inlined_call_operand.vmem [shape: bf16[48,32], index: 2, kind: input, shape index: {}]   ;;  %s4830_s3 = inlined_call_operand.vmem [shape: f32[1,32], index: 3, kind: input, shape index: {}]   ;;  %s4831_s4 = inlined_call_operand.vmem [shape: f32[1,49,32], index: 4, kind: input, shape index: {}]   ;;  %s4832_s5 = inlined_call_operand.vmem [shape: bf16[2,32,96], index: 5, kind: input, shape index: {}]   ;;  %s4833_s6 = inlined_call_operand.vmem [shape: f32[2,1,96], index: 6, kind: input, shape index: {}]   ;;  %s4834_s7 = inlined_call_operand.vmem [shape: bf16[2,32,32], index: 7, kind: input, shape index: {}]   ;;  %s4835_s8 = inlined_call_operand.vmem [shape: f32[2,1,32], index: 8, kind: input, shape index: {}]   ;;  %s4836_s9 = inlined_call_operand.vmem [shape: bf16[2,32,32], index: 9, kind: input, shape index: {}]   ;;  %s4837_s10 = inlined_call_operand.vmem [shape: f32[2,1,32], index: 10, kind: input, shape index: {}]   ;;  %s4838_s11 = inlined_call_operand.vmem [shape: bf16[2,32,64], index: 11, kind: input, shape index: {}]   ;;  %s4839_s12 = inlined_call_operand.vmem [shape: f32[2,1,64], index: 12, kind: input, shape index: {}]   ;;  %s4840_s13 = inlined_call_operand.vmem [shape: bf16[2,32,32], index: 13, kind: input, shape index: {}]   ;;  %s4841_s14 = inlined_call_operand.vmem [shape: f32[2,1,32], index: 14, kind: input, shape index: {}]   ;;  %s4842_s15 = inlined_call_operand.vmem [shape: bf16[2,32,64], index: 15, kind: input, shape index: {}]   ;;  %s4843_s16 = inlined_call_operand.vmem [shape: f32[2,1,64], index: 16, kind: input, shape index: {}]   ;;  %s4844_s17 = inlined_call_operand.vmem [shape: bf16[2,64,32], index: 17, kind: input, shape index: {}]   ;;  %s4845_s18 = inlined_call_operand.vmem [shape: f32[2,1,32], index: 18, kind: input, shape index: {}]   ;;  %s4846_s19 = inlined_call_operand.vmem [shape: f32[2,3,32], index: 19, kind: input, shape index: {}]   ;;  %s4847_s20 = inlined_call_operand.vmem [shape: f32[2,3,32], index: 20, kind: input, shape index: {}]   ;;  %s4848_s21 = inlined_call_operand.vmem [shape: f32[2,8,32], index: 21, kind: output, shape index: {}]  }
   0x1   :  { %4857 = sst [smem:[#allocation7_spill]] %s4827_s0 }
   0x2   :  { %4858 = sst [smem:[#allocation8_spill]] %s4828_s1 }
   0x3   :  { %4859 = sst [smem:[#allocation9_spill]] %s4829_s2  ;;  %s3944_s2 = smov 0  }
   0x4   :  { %4860 = sst [smem:[#allocation10_spill]] %s4830_s3 }
   0x5   :  { %4861 = sst [smem:[#allocation11_spill]] %s4831_s4 }
   0x6   :  { %4862 = sst [smem:[#allocation12_spill]] %s4832_s5 }
   0x7   :  { %4863 = sst [smem:[#allocation13_spill]] %s4833_s6 }
   0x8   :  { %4864 = sst [smem:[#allocation14_spill]] %s4834_s7 }
   0x9   :  { %4865 = sst [smem:[#allocation15_spill]] %s4836_s9 }
   0xa   :  { %4866 = sst [smem:[#allocation16_spill]] %s4838_s11 }
   0xb   :  { %4867 = sst [smem:[#allocation17_spill]] %s4840_s13 }
   0xc   :  { %4868 = sst [smem:[#allocation18_spill]] %s4841_s14 }
   0xd   :  { %4869 = sst [smem:[#allocation19_spill]] %s4842_s15 }
   0xe   :  { %4870 = sst [smem:[#allocation20_spill]] %s4847_s20 }
   0xf   :  { %4871 = sst [smem:[#allocation21_spill]] %s4848_s21 }
  0x10 LB: > { %4872 = sst [smem:[#allocation5_spill]] %s3816_s2  ;;  %s3950_s25 = sadd.s32 4294967295, %s3816_s2   ;;  %s3816_s2 = sphi %s3944_s2, %s31_s2  }
  0x11   : > { %4873 = sst [smem:[#allocation6_spill]] %s3950_s25  ;;  %p3276_p0 = scmp.ge.s32.totalorder %s3816_s2, 1 }
  0x12   : > { %p716_p1 = scmp.lt.s32.totalorder %s3816_s2, 3 }
  0x14   : > { %p717_p2 = pnand %p3276_p0, %p716_p1 }
  0x15   : > { %p830_p3 = scmp.lt.s32.totalorder (!%p717_p2), %s3950_s25, 1  ;;  %s4875_s30 = sld [smem:[#allocation12_spill]] (!%p717_p2) }
  0x16   : > { %720 = sbr.rel (%p717_p2) target bundleno = 4820 (0x12d4), region = 104  ;;  %s4876_s7 = sld [smem:[#allocation14_spill]] (!%p717_p2) }
  0x17   : > { %s4877_s9 = sld [smem:[#allocation15_spill]] (!%p717_p2) }
  0x18   : > { %s4878_s11 = sld [smem:[#allocation16_spill]] (!%p717_p2) }
  0x19   : > { %s4879_s13 = sld [smem:[#allocation17_spill]] (!%p717_p2) }
  0x1a   : > { %s4881_s15 = sld [smem:[#allocation19_spill]] (!%p717_p2) }
  0x1b   : > { %s3956_s26 = scalar_select %p830_p3, %s3950_s25, 1 }
  0x1c   : > { %s4882_s4 = sld [smem:[#allocation20_spill]] }
  0x1d   : > { %s3506_s27 = sshll.u32 %s3956_s26, 4  ;;  %s3512_s22 = sshll.u32 %s3956_s26, 5 }
  0x1e   : > { %s3966_s5 = scalar_lea.vmem %s4875_s30, %s3506_s27  ;;  %s3971_s1 = scalar_lea.vmem %s4876_s7, %s3506_s27 }
  0x1f   : > { %s3980_s3 = scalar_lea.vmem %s4877_s9, %s3506_s27  ;;  %s3989_s6 = scalar_lea.vmem %s4878_s11, %s3506_s27 }
  0x20   : > { %s3998_s21 = scalar_lea.vmem %s4879_s13, %s3506_s27  ;;  %s4007_s0 = scalar_lea.vmem %s4881_s15, %s3506_s27 }
  0x21   : > { %s4017_s2 = scalar_lea.vmem %s4844_s17, %s3512_s22  ;;  %s3291_s25 = sshll.u32 %s3956_s26, 2 }
  0x22   : > { %s4027_s27 = scalar_lea.vmem %s4846_s19, %s3291_s25  ;;  %s4032_s30 = scalar_lea.vmem %s4882_s4, %s3291_s25 }
  0x23   : > { %s4883_s11 = sld [smem:[#allocation6_spill]] }
  0x29   : > { %p3293_p4 = scmp.ne.s32.totalorder %s4883_s11, 0 }
  0x2a   : > { %s4884_s23 = sld [smem:[#allocation9_spill]] (!%p3293_p4) }
  0x2b   : > { %898 = sbr.rel (%p3293_p4) target bundleno = 217 (0xd9), region = 108  ;;  %s4885_s11 = sld [smem:[#allocation8_spill]] (!%p3293_p4) }
  0x2c   : > { %s4886_s9 = sld [smem:[#allocation7_spill]] (!%p3293_p4) }
  0x2d   : > { %s4887_s25 = sld [smem:[#allocation10_spill]] (!%p3293_p4) }
  0x30   : > { %v3515_v0 = vld [vmem:[%s4884_s23 + $0x10] sm:$0xff]  ;;  %v3514_v1 = vld [vmem:[%s4884_s23 + $0x8] sm:$0xff]  ;;  %v3513_v2 = vld [vmem:[%s4884_s23] sm:$0xff]  ;;  %vm901_vm0 = vcmask 261120   ;;  %vm950_vm1 = vcmask 392192   ;;  %vm1004_vm2 = vcmask 253952  }
  0x31   : > { %968 = vmatpush.bf16.msra.mxu0 %v3515_v0  ;;  %3532 = vmatpush.bf16.msra.mxu2 %v3515_v0  ;;  %v918_v3 = vld [vmem:[%s4885_s11] sm:$0xff]  ;;  %v919_v4 = vld [vmem:[%s4885_s11 + $0x8] sm:$0xff]  ;;  %v3310_v8 = vld [vmem:[%s4885_s11 + $0x38] sm:$0xff] }
  0x32   : > { %1035 = vmatpush.bf16.msra.mxu1 %v3515_v0  ;;  %3535 = vmatpush.bf16.msra.mxu3 %v3515_v0  ;;  %v922_v5 = vld [vmem:[%s4885_s11 + $0x20] sm:$0xff]  ;;  %v923_v6 = vld [vmem:[%s4885_s11 + $0x28] sm:$0xff]  ;;  %v3314_v11 = vld [vmem:[%s4885_s11 + $0x58] sm:$0xff]  ;;  %v925_v13 = vpack.c.bf16 %v919_v4, %v918_v3 }
  0x33   : > { %v899_v7 = vld [vmem:[%s4886_s9] sm:$0xff]  ;;  %v900_v9 = vld [vmem:[%s4886_s9 + $0x8] sm:$0xff]  ;;  %v927_v14 = vpack.c.bf16 %v923_v6, %v922_v5  ;;  %v920_v17 = vld [vmem:[%s4885_s11 + $0x10] sm:$0xff]  ;;  %s4888_s9 = sld [smem:[#allocation11_spill]] }
  0x34   : > { %902 = vst.msk [vmem:[#allocation2] sm:$0xff] %vm901_vm0, %v899_v7  ;;  %v3311_v10 = vld [vmem:[%s4885_s11 + $0x40] sm:$0xff]  ;;  %v921_v18 = vld [vmem:[%s4885_s11 + $0x18] sm:$0xff]  ;;  %v924_v19 = vld [vmem:[%s4885_s11 + $0x30] sm:$0x1] }
  0x35   : > { %969 = vmatpush.bf16.msra.mxu0 %v3514_v1  ;;  %3533 = vmatpush.bf16.msra.mxu2 %v3514_v1  ;;  %v3315_v12 = vld [vmem:[%s4885_s11 + $0x60] sm:$0xff]  ;;  %903 = vst.msk [vmem:[#allocation2 + $0x8] sm:$0xff] %vm901_vm0, %v900_v9  ;;  %v1014_v15 = vpack.c.bf16 %v3311_v10, %v3310_v8  ;;  %v3312_v20 = vld [vmem:[%s4885_s11 + $0x48] sm:$0xff]  ;;  %v3313_v21 = vld [vmem:[%s4885_s11 + $0x50] sm:$0xff]  ;;  %v926_v23 = vpack.c.bf16 %v921_v18, %v920_v17 }
  0x36   : > { %1036 = vmatpush.bf16.msra.mxu1 %v3514_v1  ;;  %3536 = vmatpush.bf16.msra.mxu3 %v3514_v1  ;;  %v1016_v16 = vpack.c.bf16 %v3315_v12, %v3314_v11  ;;  %v3316_v22 = vld [vmem:[%s4885_s11 + $0x68] sm:$0x1]  ;;  %v928_v24 = vpack.c.bf16 %v924_v19, %v924_v19  ;;  %v1015_v25 = vpack.c.bf16 %v3313_v21, %v3312_v20  ;;  %v3562_v27 = vld [vmem:[%s4887_s25] ss:$0 sm:$0xff] }
  0x37   : > { %v1017_v26 = vpack.c.bf16 %v3316_v22, %v3316_v22 }
  0x39   : > { %970 = vmatpush.bf16.msra.mxu0 %v3513_v2  ;;  %3534 = vmatpush.bf16.msra.mxu2 %v3513_v2  ;;  %v911_v28 = vld [vmem:[%s4888_s9] sm:$0xff]  ;;  %v912_v40 = vld [vmem:[%s4888_s9 + $0x8] sm:$0xff]  ;;  %v913_v54 = vld [vmem:[%s4888_s9 + $0x10] sm:$0xff] }
  0x3a   : > { %1037 = vmatpush.bf16.msra.mxu1 %v3513_v2  ;;  %3537 = vmatpush.bf16.msra.mxu3 %v3513_v2  ;;  %v915_v35 = vld [vmem:[%s4888_s9 + $0x20] sm:$0xff]  ;;  %v916_v49 = vld [vmem:[%s4888_s9 + $0x28] sm:$0xff]  ;;  %v917_v63 = vld [vmem:[%s4888_s9 + $0x30] sm:$0x1] }
  0x3b   : > { %v914_v4 = vld [vmem:[%s4888_s9 + $0x18] sm:$0xff] }
  0x3c   : > { %3306 = vmatmul.msk.bf16.vlgmr.msra.gmra.mxu0 %vm950_vm1, %v925_v13  ;;  %3308 = vmatmul.msk.bf16.vlgmr.msra.gmra.mxu2 %vm950_vm1, %v927_v14 }
  0x3d   : > { %3317 = vmatmul.msk.bf16.vlgmr.msra.gmra.mxu1 %vm950_vm1, %v1014_v15  ;;  %3319 = vmatmul.msk.bf16.vlgmr.msra.gmra.mxu3 %vm950_vm1, %v1016_v16 }
  0x4c   : > { %3307 = vmatmul.msk.bf16.gmra.mxu0 %vm950_vm1, %v926_v23  ;;  %3309 = vmatmul.msk.bf16.gmra.mxu2 %vm950_vm1, %v928_v24 }
  0x4d   : > { %3318 = vmatmul.msk.bf16.gmra.mxu1 %vm950_vm1, %v1015_v25  ;;  %3320 = vmatmul.msk.bf16.gmra.mxu3 %vm950_vm1, %v1017_v26 }
  0xb9   : > { %v972_v29 = vpop.f32.mrf.mxu0 }
  0xba   : > { %v973_v30 = vadd.f32 %v3562_v27, %v972_v29  ;;  %v1039_v31 = vpop.f32.mrf.mxu1 }
  0xbb   : > { %v1040_v32 = vadd.f32 %v3562_v27, %v1039_v31 }
  0xbc   : > { %v991_v33 = vadd.f32 %v973_v30, %v911_v28 }
  0xbd   : > { %v1058_v34 = vadd.f32 %v1040_v32, %v911_v28 }
  0xbe   : > { %998 = vst.msk [vmem:[#allocation3] sm:$0xff] %vm901_vm0, %v991_v33 }
  0xbf   : > { %1066 = vst.msk [vmem:[#allocation3 + $0x38] sm:$0xff] %vm901_vm0, %v1058_v34  ;;  %v982_v36 = vpop.f32.mrf.mxu2 }
  0xc0   : > { %v983_v37 = vadd.f32 %v3562_v27, %v982_v36  ;;  %v1049_v38 = vpop.f32.mrf.mxu3 }
  0xc1   : > { %v1050_v39 = vadd.f32 %v3562_v27, %v1049_v38  ;;  %v974_v41 = vpop.f32.mrf.mxu0 }
  0xc2   : > { %v995_v42 = vadd.f32 %v983_v37, %v915_v35  ;;  %v975_v43 = vadd.f32 %v3562_v27, %v974_v41  ;;  %v1041_v44 = vpop.f32.mrf.mxu1 }
  0xc3   : > { %v1062_v45 = vadd.f32 %v1050_v39, %v915_v35  ;;  %v1042_v46 = vadd.f32 %v3562_v27, %v1041_v44 }
  0xc4   : > { %1002 = vst.msk [vmem:[#allocation3 + $0x20] sm:$0xff] %vm901_vm0, %v995_v42  ;;  %v992_v47 = vadd.f32 %v975_v43, %v912_v40 }
  0xc5   : > { %1070 = vst.msk [vmem:[#allocation3 + $0x58] sm:$0xff] %vm901_vm0, %v1062_v45  ;;  %v1059_v48 = vadd.f32 %v1042_v46, %v912_v40 }
  0xc6   : > { %999 = vst.msk [vmem:[#allocation3 + $0x8] sm:$0xff] %vm901_vm0, %v992_v47 }
  0xc7   : > { %1067 = vst.msk [vmem:[#allocation3 + $0x40] sm:$0xff] %vm901_vm0, %v1059_v48  ;;  %v984_v50 = vpop.f32.mrf.mxu2 }
  0xc8   : > { %v985_v51 = vadd.f32 %v3562_v27, %v984_v50  ;;  %v1051_v52 = vpop.f32.mrf.mxu3 }
  0xc9   : > { %v1052_v53 = vadd.f32 %v3562_v27, %v1051_v52  ;;  %v977_v55 = vpop.f32.mrf.mxu0 }
  0xca   : > { %v996_v56 = vadd.f32 %v985_v51, %v916_v49  ;;  %v978_v57 = vadd.f32 %v3562_v27, %v977_v55  ;;  %v1044_v58 = vpop.f32.mrf.mxu1 }
  0xcb   : > { %v1063_v59 = vadd.f32 %v1052_v53, %v916_v49  ;;  %v1045_v60 = vadd.f32 %v3562_v27, %v1044_v58 }
  0xcc   : > { %1003 = vst.msk [vmem:[#allocation3 + $0x28] sm:$0xff] %vm901_vm0, %v996_v56  ;;  %v993_v61 = vadd.f32 %v978_v57, %v913_v54 }
  0xcd   : > { %1071 = vst.msk [vmem:[#allocation3 + $0x60] sm:$0xff] %vm901_vm0, %v1063_v59  ;;  %v1060_v62 = vadd.f32 %v1045_v60, %v913_v54 }
  0xce   : > { %1000 = vst.msk [vmem:[#allocation3 + $0x10] sm:$0xff] %vm901_vm0, %v993_v61 }
  0xcf   : > { %1068 = vst.msk [vmem:[#allocation3 + $0x48] sm:$0xff] %vm901_vm0, %v1060_v62  ;;  %v987_v0 = vpop.f32.mrf.mxu2 }
  0xd0   : > { %v988_v1 = vadd.f32 %v3562_v27, %v987_v0  ;;  %v1054_v2 = vpop.f32.mrf.mxu3 }
  0xd1   : > { %v1055_v3 = vadd.f32 %v3562_v27, %v1054_v2  ;;  %v979_v5 = vpop.f32.mrf.mxu0 }
  0xd2   : > { %v997_v6 = vadd.f32 %v988_v1, %v917_v63  ;;  %v980_v7 = vadd.f32 %v3562_v27, %v979_v5  ;;  %v1046_v8 = vpop.f32.mrf.mxu1 }
  0xd3   : > { %v1064_v9 = vadd.f32 %v1055_v3, %v917_v63  ;;  %v1047_v10 = vadd.f32 %v3562_v27, %v1046_v8 }
  0xd4   : > { %1005 = vst.msk [vmem:[#allocation3 + $0x30] sm:$0x1] %vm1004_vm2, %v997_v6  ;;  %v994_v11 = vadd.f32 %v980_v7, %v914_v4 }
  0xd5   : > { %1072 = vst.msk [vmem:[#allocation3 + $0x68] sm:$0x1] %vm1004_vm2, %v1064_v9  ;;  %v1061_v12 = vadd.f32 %v1047_v10, %v914_v4 }
  0xd6   : > { %1001 = vst.msk [vmem:[#allocation3 + $0x18] sm:$0xff] %vm901_vm0, %v994_v11 }
  0xd7   : > { %1069 = vst.msk [vmem:[#allocation3 + $0x50] sm:$0xff] %vm901_vm0, %v1061_v12  ;;  %v989_v13 = vpop.f32.mrf.mxu2 }
  0xd8   : > { %v1056_v14 = vpop.f32.mrf.mxu3 }
  0xd9 PF: > { %v3517_v15 = vld [vmem:[%s3966_s5 + $0x8] sm:$0xff]  ;;  %v3516_v16 = vld [vmem:[%s3966_s5] sm:$0xff]  ;;  %vm1098_vm3 = vcmask 261120   ;;  %s4889_s20 = sld [smem:[#allocation13_spill]]  ;;  %s3818_s5 = smov 88   ;;  %vm1125_vm4 = vcmask 64512   ;;  %v1116_v29 = vlaneseq }
  0xda   : > { %v4140_v17 = vld [vmem:[#allocation2] sm:$0xff]  ;;  %v4142_v18 = vld [vmem:[#allocation2 + $0x8] sm:$0xff]  ;;  %1108 = vmatpush.bf16.msra.mxu0 %v3517_v15  ;;  %s3819_s13 = smov 96   ;;  %s3820_s24 = smov 120   ;;  %v3822_v32 = vmov 0.0   ;;  %vm1667_vm6 = vcmask 130048  }
  0xdb   : > { %v1082_v19 = vpack.c.bf16 %v4142_v18, %v4140_v17  ;;  %s3821_s14 = smov 80   ;;  %v1117_v30 = vshrl.u32 %v1116_v29, 7  ;;  %v1119_v31 = vand.u32 127, %v1116_v29  ;;  %s3823_s25 = smov 64   ;;  %vm1670_vm7 = vcmask 195584  }
  0xdc   : > { %s3824_s29 = smov 56   ;;  %s3825_s28 = smov 112   ;;  %vm1879_vm9 = vcmask 523264   ;;  %vm1886_vm10 = vcmask 516096   ;;  %vm2050_vm1 = vcmask 400384   ;;  %vm2096_vm2 = vcmask 1040384  }
  0xdd   : > { %vm1120_vm5 = vcmp.gt.s32.totalorder %v1119_v31, %v1117_v30  ;;  %s3826_s4 = smov 72   ;;  %s3827_s7 = smov 104  }
  0xde   : > { %1109 = vmatpush.bf16.msra.mxu0 %v3516_v16  ;;  %v4176_v33 = vsel %vm1120_vm5, -inf, %v3822_v32  ;;  %s3828_s15 = smov 40  }
  0xdf   : > { %s4890_s22 = scalar_lea.vmem %s4889_s20, %s3956_s26  ;;  %s3829_s20 = smov 48  }
  0xe0   : > { %v3723_v20 = vld [vmem:[%s4890_s22] ss:$0 sm:$0xff]  ;;  %s3830_s22 = smov 8  }
  0xe1   : > { %3329 = vmatmul.msk.bf16.vlgmr.msra.gmra.mxu0 %vm1098_vm3, %v1082_v19 }
 0x15e   : > { %v1111_v21 = vpop.f32.mrf.mxu0 }
 0x15f   : > { %v4152_v22 = vadd.f32 %v3723_v20, %v1111_v21 }
 0x161   : > { %1253 = vrot.lane.b32.xlu1 %v4152_v22, %s3818_s5  ;;  %1123 = vrot.lane.b32.xlu0 %v4152_v22, %s3819_s13 }
 0x166   : > { %v1113_v23 = vpop.f32.mrf.mxu0 }
 0x167   : > { %v4158_v24 = vadd.f32 %v3723_v20, %v1113_v23 }
 0x169   : > { %1251 = vrot.lane.b32.xlu1 %v4152_v22, %s3820_s24  ;;  %1151 = vrot.lane.b32.xlu0 %v4158_v24, %s3819_s13  ;;  %v4186_v43 = vpack.i.bf16 %v4158_v24, %v4152_v22 }
 0x171   : > { %1279 = vrot.lane.b32.xlu1 %v4158_v24, %s3820_s24 }
 0x179   : > { %1383 = vrot.lane.b32.xlu1 %v4152_v22, %s3821_s14 }
 0x1d3   : > { %v1124_v25 = vpop.permute.xlu0 %1123  ;;  %v1254_v27 = vpop.permute.xlu1 %1253 }
 0x1d4   : > { %3330 = vmatpush.xpose.msk.msra.mxu1 %vm1125_vm4, %v1124_v25 }
 0x1d7   : > { %3331 = vmatmul.msk.f32.vlgmr.msra.gmra.mxu1 %vm1125_vm4, %v4152_v22 }
 0x1db   : > { %v1152_v26 = vpop.permute.xlu0 %1151  ;;  %v1252_v28 = vpop.permute.xlu1 %1251 }
 0x1dc   : > { %3332 = vmatpush.xpose.msk.msrb.mxu1 %vm1125_vm4, %v1152_v26 }
 0x1df   : > { %3333 = vmatmul.msk.f32.vlgmr.msrb.gmra.mxu1 %vm1125_vm4, %v4158_v24 }
 0x1e0   : > { %3336 = vmatpush.xpose.msk.msra.mxu1 %vm1125_vm4, %v1254_v27 }
 0x1e3   : > { %v1280_v60 = vpop.permute.xlu1 %1279 }
 0x1e7   : > { %3337 = vmatmul.msk.f32.vlgmr.msra.gmra.mxu1 %vm1125_vm4, %v1252_v28 }
 0x1eb   : > { %v1384_v0 = vpop.permute.xlu1 %1383 }
 0x254   : > { %v1147_v34 = vpop.f32.mrf.mxu1 }
 0x255   : > { %v1148_v35 = vadd.f32 %v1147_v34, %v4176_v33 }
 0x257   : > { %v1177_v36 = vsel %vm1125_vm4, %v1148_v35, -inf }
 0x258   : > { %1178 = vmax.xlane.f32.xlu2 %v1177_v36 }
 0x25c   : > { %v1174_v37 = vpop.f32.mrf.mxu1 }
 0x25d   : > { %v1175_v38 = vadd.f32 %v1174_v37, %v4176_v33 }
 0x25f   : > { %v1180_v39 = vsel %vm1125_vm4, %v1175_v38, -inf }
 0x260   : > { %1181 = vmax.xlane.f32.xlu2 %v1180_v39 }
 0x264   : > { %v1276_v40 = vpop.f32.mrf.mxu1 }
 0x265   : > { %v1277_v41 = vadd.f32 %v1276_v40, %v4176_v33 }
 0x267   : > { %v1307_v42 = vsel %vm1125_vm4, %v1277_v41, -inf }
 0x268   : > { %1308 = vmax.xlane.f32.xlu0 %v1307_v42 }
 0x278   : > { %3564 = vrot.lane.b32.xlu2 %v4186_v43, %s3823_s25  ;;  %s3831_s25 = smov 16  }
 0x27c   : > { %1281 = vrot.lane.b32.xlu0 %v4158_v24, %s3818_s5 }
 0x284   : > { %1329 = vrot.lane.b32.xlu0 %v4152_v22, %s3824_s29 }
 0x28c   : > { %1381 = vrot.lane.b32.xlu0 %v4152_v22, %s3825_s28 }
 0x294   : > { %1409 = vrot.lane.b32.xlu0 %v4158_v24, %s3825_s28 }
 0x29c   : > { %1541 = vrot.lane.b32.xlu0 %v4158_v24, %s3826_s4 }
 0x2cb   : > { %v1179_v44 = vpop.xlane.xlu2 %1178 }
 0x2cc   : > { %v1183_v45 = vsub.f32 %v1148_v35, %v1179_v44 }
 0x2ce   : > { %v1185_v46 = vmul.f32 1.442695, %v1183_v45 }
 0x2d0   : > { %3730 = vpow2.f32 %v1185_v46 }
 0x2d3   : > { %v1182_v47 = vpop.xlane.xlu2 %1181 }
 0x2d4   : > { %v1184_v48 = vsub.f32 %v1175_v38, %v1182_v47 }
 0x2d6   : > { %v3731_v49 = vpop.eup %3730  ;;  %v1187_v50 = vmul.f32 1.442695, %v1184_v48 }
 0x2d7   : > { %v1189_v51 = vsel %vm1125_vm4, %v3731_v49, 0.0 }
 0x2d8   : > { %3732 = vpow2.f32 %v1187_v50  ;;  %1190 = vadd.xlane.f32.xlu1 %v1189_v51 }
 0x2db   : > { %v1309_v52 = vpop.xlane.xlu0 %1308  ;;  %v3565_v53 = vpop.permute.xlu2 %3564 }
 0x2dc   : > { %v1313_v54 = vsub.f32 %v1277_v41, %v1309_v52  ;;  %v3566_v55 = vunpack.i.l.bf16 %v3565_v53  ;;  %v3567_v56 = vunpack.i.h.bf16 %v3565_v53 }
 0x2de   : > { %v3733_v57 = vpop.eup %3732  ;;  %v1315_v58 = vmul.f32 1.442695, %v1313_v54  ;;  %1220 = vmatpush.msra.mxu3 %v3566_v55 }
 0x2df   : > { %v1192_v59 = vsel %vm1125_vm4, %v3733_v57, 0.0 }
 0x2e0   : > { %1246 = vmatpush.msrb.mxu3 %v3567_v56  ;;  %3734 = vpow2.f32 %v1315_v58  ;;  %1193 = vadd.xlane.f32.xlu2 %v1192_v59 }
 0x2e6   : > { %v3735_v61 = vpop.eup %3734 }
 0x2e7   : > { %v1319_v62 = vsel %vm1125_vm4, %v3735_v61, 0.0 }
 0x2e8   : > { %1320 = vadd.xlane.f32.xlu2 %v1319_v62 }
 0x2ee   : > { %v1282_v63 = vpop.permute.xlu0 %1281 }
 0x2ef   : > { %3338 = vmatpush.xpose.msk.msra.mxu2 %vm1125_vm4, %v1282_v63 }
 0x2f1   : > { %1513 = vrot.lane.b32.xlu1 %v4152_v22, %s3826_s4 }
 0x2f2   : > { %3339 = vmatmul.msk.f32.vlgmr.msra.gmra.mxu2 %vm1125_vm4, %v1280_v60 }
 0x2f3   : > { %3342 = vmatpush.xpose.msk.msrb.mxu2 %vm1125_vm4, %v1384_v0 }
 0x2f6   : > { %v1330_v1 = vpop.permute.xlu0 %1329 }
 0x2f9   : > { %1511 = vrot.lane.b32.xlu1 %v4152_v22, %s3827_s7 }
 0x2fe   : > { %v1382_v2 = vpop.permute.xlu0 %1381 }
 0x2ff   : > { %3343 = vmatmul.msk.f32.vlgmr.msrb.gmra.mxu2 %vm1125_vm4, %v1382_v2 }
 0x300   : > { %1411 = vrot.lane.b32.xlu2 %v4158_v24, %s3821_s14 }
 0x301   : > { %1539 = vrot.lane.b32.xlu1 %v4158_v24, %s3827_s7 }
 0x306   : > { %v1410_v3 = vpop.permute.xlu0 %1409 }
 0x30e   : > { %v1542_v4 = vpop.permute.xlu0 %1541 }
 0x30f   : > { %3350 = vmatpush.xpose.msk.msrb.mxu0 %vm1125_vm4, %v1542_v4 }
 0x34b   : > { %v1191_v5 = vpop.xlane.xlu1 %1190 }
 0x34c   : > { %3736 = vrcp.f32 %v1191_v5 }
 0x352   : > { %v3737_v6 = vpop.eup %3736 }
 0x353   : > { %v1194_v7 = vpop.xlane.xlu2 %1193  ;;  %v1197_v8 = vmul.f32 %v3737_v6, %v3731_v49 }
 0x354   : > { %3738 = vrcp.f32 %v1194_v7 }
 0x355   : > { %3334 = vmatmul.msk.f32.vlgmr.msra.gmra.mxu3 %vm1125_vm4, %v1197_v8 }
 0x356   : > { %1350 = vmatpush.msra.mxu3 %v1330_v1 }
 0x35a   : > { %v3739_v9 = vpop.eup %3738 }
 0x35b   : > { %v1321_v10 = vpop.xlane.xlu2 %1320  ;;  %v1198_v11 = vmul.f32 %v3739_v9, %v3733_v57 }
 0x35c   : > { %3740 = vrcp.f32 %v1321_v10 }
 0x35d   : > { %3335 = vmatmul.msk.f32.vlgmr.msrb.gmra.mxu3 %vm1125_vm4, %v1198_v11 }
 0x362   : > { %v3741_v12 = vpop.eup %3740 }
 0x363   : > { %v1327_v13 = vmul.f32 %v3741_v12, %v3735_v61  ;;  %v1514_v14 = vpop.permute.xlu1 %1513  ;;  %v1412_v15 = vpop.permute.xlu2 %1411 }
 0x364   : > { %3344 = vmatpush.xpose.msk.msrb.mxu3 %vm1125_vm4, %v1412_v15  ;;  %3348 = vmatpush.xpose.msk.msra.mxu2 %vm1125_vm4, %v1514_v14 }
 0x365   : > { %3340 = vmatmul.msk.f32.vlgmr.msra.gmra.mxu3 %vm1125_vm4, %v1327_v13 }
 0x36b   : > { %v1512_v16 = vpop.permute.xlu1 %1511 }
 0x36c   : > { %3349 = vmatmul.msk.f32.vlgmr.msra.gmra.mxu2 %vm1125_vm4, %v1512_v16 }
 0x36d   : > { %3345 = vmatmul.msk.f32.vlgmr.msrb.gmra.mxu3 %vm1125_vm4, %v1410_v3 }
 0x373   : > { %v1540_v19 = vpop.permute.xlu1 %1539 }
 0x374   : > { %3351 = vmatmul.msk.f32.vlgmr.msrb.gmra.mxu0 %vm1125_vm4, %v1540_v19 }
 0x375   : > { %v1304_v20 = vpop.f32.mrf.mxu2 }
 0x376   : > { %v1305_v21 = vadd.f32 %v1304_v20, %v4176_v33 }
 0x378   : > { %v1310_v23 = vsel %vm1125_vm4, %v1305_v21, -inf }
 0x379   : > { %1311 = vmax.xlane.f32.xlu0 %v1310_v23 }
 0x382   : > { %v1406_v25 = vpop.f32.mrf.mxu2 }
 0x383   : > { %v1407_v26 = vadd.f32 %v1406_v25, %v4176_v33 }
 0x385   : > { %v1437_v27 = vsel %vm1125_vm4, %v1407_v26, -inf }
 0x386   : > { %1438 = vmax.xlane.f32.xlu2 %v1437_v27 }
 0x3d8   : > { %v4227_v28 = vpop.f32.mrf.mxu3 }
 0x3e0   : > { %v4229_v29 = vpop.f32.mrf.mxu3 }
 0x3e8   : > { %v4231_v30 = vpop.f32.mrf.mxu3 }
 0x3ec   : > { %v1312_v31 = vpop.xlane.xlu0 %1311 }
 0x3ed   : > { %v1314_v32 = vsub.f32 %v1305_v21, %v1312_v31 }
 0x3ef   : > { %v1317_v34 = vmul.f32 1.442695, %v1314_v32  ;;  %v1536_v35 = vpop.f32.mrf.mxu2 }
 0x3f0   : > { %v1537_v36 = vadd.f32 %v1536_v35, %v4176_v33  ;;  %v1434_v37 = vpop.f32.mrf.mxu3 }
 0x3f1   : > { %v1435_v38 = vadd.f32 %v1434_v37, %v4176_v33  ;;  %v1564_v39 = vpop.f32.mrf.mxu0  ;;  %3742 = vpow2.f32 %v1317_v34  ;;  %v3518_v37 = vld [vmem:[%s3971_s1] sm:$0xff] }
 0x3f2   : > { %v1565_v40 = vadd.f32 %v1564_v39, %v4176_v33  ;;  %v1567_v41 = vsel %vm1125_vm4, %v1537_v36, -inf }
 0x3f3   : > { %1568 = vmax.xlane.f32.xlu0 %v1567_v41  ;;  %v1440_v42 = vsel %vm1125_vm4, %v1435_v38, -inf }
 0x3f4   : > { %1441 = vmax.xlane.f32.xlu1 %v1440_v42  ;;  %v1570_v44 = vsel %vm1125_vm4, %v1565_v40, -inf }
 0x3f5   : > { %1571 = vmax.xlane.f32.xlu2 %v1570_v44 }
 0x3f7   : > { %v3743_v45 = vpop.eup %3742 }
 0x3f8   : > { %v1322_v48 = vsel %vm1125_vm4, %v3743_v45, 0.0 }
 0x3f9   : > { %v1439_v46 = vpop.xlane.xlu2 %1438 }
 0x3fa   : > { %v1443_v47 = vsub.f32 %v1407_v26, %v1439_v46 }
 0x3fc   : > { %v1445_v49 = vmul.f32 1.442695, %v1443_v47  ;;  %1323 = vadd.xlane.f32.xlu1 %v1322_v48 }
 0x3fe   : > { %3744 = vpow2.f32 %v1445_v49 }
 0x404   : > { %v3745_v50 = vpop.eup %3744 }
 0x405   : > { %v1449_v33 = vsel %vm1125_vm4, %v3745_v50, 0.0 }
 0x406   : > { %1450 = vadd.xlane.f32.xlu0 %v1449_v33 }
 0x415   : > { %1355 = vrot.lane.b32.xlu1 %v4158_v24, %s3824_s29  ;;  %s3832_s29 = smov 24  }
 0x41d   : > { %1615 = vrot.lane.b32.xlu1 %v4158_v24, %s3828_s15 }
 0x466   : > { %v1569_v51 = vpop.xlane.xlu0 %1568 }
 0x467   : > { %v1573_v52 = vsub.f32 %v1537_v36, %v1569_v51  ;;  %v1442_v53 = vpop.xlane.xlu1 %1441  ;;  %v3519_v36 = vld [vmem:[%s3971_s1 + $0x8] sm:$0xff] }
 0x468   : > { %v1444_v54 = vsub.f32 %v1435_v38, %v1442_v53  ;;  %v1572_v55 = vpop.xlane.xlu2 %1571  ;;  %1703 = vmatpush.bf16.msrb.mxu2 %v3519_v36  ;;  %v3523_v53 = vld [vmem:[%s3989_s6 + $0x8] sm:$0xff] }
 0x469   : > { %v1575_v56 = vmul.f32 1.442695, %v1573_v52  ;;  %v1574_v57 = vsub.f32 %v1565_v40, %v1572_v55  ;;  %v1814_v55 = vld [vmem:[#allocation3 + $0x8] sm:$0xff] }
 0x46a   : > { %v1447_v58 = vmul.f32 1.442695, %v1444_v54  ;;  %v1813_v54 = vld [vmem:[#allocation3] sm:$0xff] }
 0x46b   : > { %3746 = vpow2.f32 %v1575_v56  ;;  %v1577_v59 = vmul.f32 1.442695, %v1574_v57 }
 0x46c   : > { %3748 = vpow2.f32 %v1447_v58  ;;  %1704 = vmatpush.bf16.msrb.mxu2 %v3518_v37 }
 0x46d   : > { %3750 = vpow2.f32 %v1577_v59 }
 0x46f   : > { %v1324_v1 = vpop.xlane.xlu1 %1323 }
 0x470   : > { %3752 = vrcp.f32 %v1324_v1  ;;  %v1815_v1 = vld [vmem:[#allocation3 + $0x10] sm:$0xff] }
 0x471   : > { %v3747_v60 = vpop.eup %3746 }
 0x472   : > { %v3749_v61 = vpop.eup %3748  ;;  %v1579_v62 = vsel %vm1125_vm4, %v3747_v60, 0.0 }
 0x473   : > { %1580 = vadd.xlane.f32.xlu0 %v1579_v62  ;;  %v1452_v63 = vsel %vm1125_vm4, %v3749_v61, 0.0  ;;  %v3751_v24 = vpop.eup %3750 }
 0x474   : > { %1453 = vadd.xlane.f32.xlu2 %v1452_v63  ;;  %v1582_v0 = vsel %vm1125_vm4, %v3751_v24, 0.0 }
 0x476   : > { %v3753_v2 = vpop.eup %3752 }
 0x477   : > { %v1328_v3 = vmul.f32 %v3753_v2, %v3743_v45  ;;  %v1816_v2 = vld [vmem:[#allocation3 + $0x18] sm:$0xff] }
 0x479   : > { %v1451_v5 = vpop.xlane.xlu0 %1450 }
 0x47a   : > { %3754 = vrcp.f32 %v1451_v5 }
 0x47b   : > { %1583 = vadd.xlane.f32.xlu0 %v1582_v0  ;;  %v3833_v0 = vmov 32.0  }
 0x480   : > { %v3755_v8 = vpop.eup %3754 }
 0x481   : > { %v1457_v14 = vmul.f32 %v3755_v8, %v3745_v50 }
 0x487   : > { %v1356_v4 = vpop.permute.xlu1 %1355 }
 0x488   : > { %1376 = vmatpush.msrb.mxu1 %v1356_v4 }
 0x489   : > { %3341 = vmatmul.msk.f32.vlgmr.msrb.gmra.mxu1 %vm1125_vm4, %v1328_v3  ;;  %v1821_v3 = vpack.c.bf16 %v1816_v2, %v1815_v1 }
 0x48c   : > { %3569 = vrot.lane.b32.xlu2 %v4186_v43, %s3829_s20  ;;  %s4891_s20 = scalar_lea.vmem %s4835_s8, %s3956_s26 }
 0x48d   : > { %v3724_v56 = vld [vmem:[%s4891_s20] ss:$0 sm:$0xff] }
 0x48f   : > { %1589 = vrot.lane.b32.xlu0 %v4152_v22, %s3828_s15  ;;  %v1616_v43 = vpop.permute.xlu1 %1615  ;;  %s4892_s15 = scalar_lea.vmem %s4839_s12, %s3956_s26 }
 0x4e6   : > { %v1581_v6 = vpop.xlane.xlu0 %1580 }
 0x4e7   : > { %v1454_v7 = vpop.xlane.xlu2 %1453 }
 0x4e8   : > { %3756 = vrcp.f32 %v1454_v7 }
 0x4ee   : > { %v3757_v9 = vpop.eup %3756  ;;  %v1584_v10 = vpop.xlane.xlu0 %1583 }
 0x4ef   : > { %v3570_v11 = vpop.permute.xlu2 %3569  ;;  %3758 = vrcp.f32 %v1584_v10  ;;  %v1458_v15 = vmul.f32 %v3757_v9, %v3749_v61  ;;  %v1817_v9 = vld [vmem:[#allocation3 + $0x20] sm:$0xff]  ;;  %v1818_v10 = vld [vmem:[#allocation3 + $0x28] sm:$0xff] }
 0x4f0   : > { %v3572_v12 = vunpack.i.h.bf16 %v3570_v11  ;;  %v3571_v13 = vunpack.i.l.bf16 %v3570_v11  ;;  %3760 = vrcp.f32 %v1581_v6  ;;  %v1890_v6 = vld [vmem:[#allocation3 + $0x40] sm:$0xff]  ;;  %v1822_v11 = vpack.c.bf16 %v1818_v10, %v1817_v9  ;;  %v1075_v10 = vld [vmem:[%s4027_s27] sm:$0x7] }
 0x4f1   : > { %3762 = vrcp.f32 %v3833_v0 }
 0x4f2   : > { %1480 = vmatpush.msra.mxu3 %v3571_v13  ;;  %1506 = vmatpush.msra.mxu1 %v3572_v12  ;;  %v1891_v13 = vld [vmem:[#allocation3 + $0x48] sm:$0xff] }
 0x4f3   : > { %3346 = vmatmul.msk.f32.vlgmr.msra.gmra.mxu3 %vm1125_vm4, %v1457_v14  ;;  %3347 = vmatmul.msk.f32.vlgmr.msra.gmra.mxu1 %vm1125_vm4, %v1458_v15  ;;  %v1892_v14 = vld [vmem:[#allocation3 + $0x50] sm:$0xff] }
 0x4f4   : > { %1636 = vmatpush.msrb.mxu1 %v1616_v43 }
 0x4f5   : > { %v3759_v22 = vpop.eup %3758 }
 0x4f6   : > { %v1588_v16 = vmul.f32 %v3759_v22, %v3751_v24  ;;  %v3761_v19 = vpop.eup %3760  ;;  %1918 = vmatpush.bf16.msra.mxu1 %v3523_v53  ;;  %v1897_v22 = vpack.c.bf16 %v1892_v14, %v1891_v13 }
 0x4f7   : > { %v1587_v20 = vmul.f32 %v3761_v19, %v3747_v60  ;;  %v3763_v4 = vpop.eup %3762 }
 0x4f8   : > { %v1720_v5 = vmul.f32 32.0, %v3763_v4  ;;  %vm1724_vm8 = vweird.f32 %v3763_v4 }
 0x4fa   : > { %v1721_v7 = vsub.f32 1.0, %v1720_v5 }
 0x4fb   : > { %3353 = vmatmul.msk.f32.vlgmr.msrb.gmra.mxu1 %vm1125_vm4, %v1588_v16 }
 0x501   : > { %v1590_v21 = vpop.permute.xlu0 %1589 }
 0x502   : > { %1610 = vmatpush.msrb.mxu3 %v1590_v21 }
 0x503   : > { %3352 = vmatmul.msk.f32.vlgmr.msrb.gmra.mxu3 %vm1125_vm4, %v1587_v20  ;;  %v1819_v20 = vld [vmem:[#allocation3 + $0x30] sm:$0x1] }
 0x504   : > { %1857 = vmatpush.bf16.msra.mxu3 %v3523_v53  ;;  %v3520_v53 = vld [vmem:[%s3980_s3] sm:$0xff] }
 0x506   : > { %v1378_v23 = vpop.f32.mrf.mxu1 }
 0x507   : > { %v3573_v25 = vpack.i.bf16 %v1378_v23, %v4231_v30  ;;  %v1823_v23 = vpack.c.bf16 %v1819_v20, %v1819_v20  ;;  %v1076_v20 = vld [vmem:[%s4032_s30] sm:$0x7] }
 0x509   : > { %3574 = vrot.lane.b32.xlu2 %v3573_v25, %s3830_s22 }
 0x563   : > { %v3575_v30 = vpop.permute.xlu2 %3574 }
 0x564   : > { %v3577_v38 = vunpack.i.h.bf16 %v3575_v30  ;;  %v3576_v39 = vunpack.i.l.bf16 %v3575_v30 }
 0x566   : > { %v1666_v45 = vsel %vm1125_vm4, %v4229_v29, %v3577_v38  ;;  %v1665_v46 = vsel %vm1125_vm4, %v4227_v28, %v3576_v39  ;;  %v3522_v29 = vld [vmem:[%s3989_s6] sm:$0xff]  ;;  %v1820_v28 = vpack.c.bf16 %v1814_v55, %v1813_v54  ;;  %v1895_v38 = vld [vmem:[#allocation3 + $0x68] sm:$0x1]  ;;  %s4893_s6 = scalar_lea.vmem %s4837_s10, %s3956_s26 }
 0x567   : > { %1858 = vmatpush.bf16.msra.mxu3 %v3522_v29  ;;  %1919 = vmatpush.bf16.msra.mxu1 %v3522_v29 }
 0x56a   : > { %3380 = vmatmul.msk.bf16.vlgmr.msra.gmra.mxu3 %vm1098_vm3, %v1820_v28 }
 0x570   : > { %v1508_v26 = vpop.f32.mrf.mxu1 }
 0x576   : > { %v1482_v27 = vpop.f32.mrf.mxu3 }
 0x577   : > { %v3578_v31 = vpack.i.bf16 %v1508_v26, %v1482_v27 }
 0x578   : > { %v1638_v32 = vpop.f32.mrf.mxu1 }
 0x579   : > { %3579 = vrot.lane.b32.xlu1 %v3578_v31, %s3831_s25 }
 0x57a   : > { %3381 = vmatmul.msk.bf16.gmra.mxu3 %vm1098_vm3, %v1821_v3 }
 0x586   : > { %v1612_v34 = vpop.f32.mrf.mxu3 }
 0x587   : > { %v3583_v35 = vpack.i.bf16 %v1638_v32, %v1612_v34  ;;  %v1893_v34 = vld [vmem:[#allocation3 + $0x58] sm:$0xff] }
 0x589   : > { %3584 = vrot.lane.b32.xlu2 %v3583_v35, %s3832_s29  ;;  %v1894_v35 = vld [vmem:[#allocation3 + $0x60] sm:$0xff] }
 0x58a   : > { %3382 = vmatmul.msk.bf16.gmra.mxu3 %vm1098_vm3, %v1822_v11  ;;  %v1898_v37 = vpack.c.bf16 %v1894_v35, %v1893_v34 }
 0x59a   : > { %3383 = vmatmul.msk.bf16.gmra.mxu3 %vm1098_vm3, %v1823_v23 }
 0x5e3   : > { %v3585_v40 = vpop.permute.xlu2 %3584 }
 0x5e4   : > { %v3587_v47 = vunpack.i.h.bf16 %v3585_v40  ;;  %v3586_v48 = vunpack.i.l.bf16 %v3585_v40  ;;  %v1899_v40 = vpack.c.bf16 %v1895_v38, %v1895_v38 }
 0x5eb   : > { %v3580_v41 = vpop.permute.xlu1 %3579 }
 0x5ec   : > { %v3582_v42 = vunpack.i.h.bf16 %v3580_v41  ;;  %v3581_v44 = vunpack.i.l.bf16 %v3580_v41 }
 0x5ed   : > { %v1860_v30 = vpop.f32.mrf.mxu3 }
 0x5ee   : > { %v1669_v49 = vsel %vm1667_vm6, %v1666_v45, %v3582_v42  ;;  %v1668_v50 = vsel %vm1667_vm6, %v1665_v46, %v3581_v44  ;;  %v4309_v44 = vld [vmem:[%s4892_s15] ss:$0 sm:$0xff]  ;;  %v3521_v46 = vld [vmem:[%s3980_s3 + $0x8] sm:$0xff] }
 0x5ef   : > { %v1672_v33 = vsel %vm1670_vm7, %v1669_v49, %v3587_v47  ;;  %v1671_v51 = vsel %vm1670_vm7, %v1668_v50, %v3586_v48  ;;  %v1861_v45 = vadd.f32 %v4309_v44, %v1860_v30  ;;  %1800 = vmatpush.bf16.msra.mxu0 %v3521_v46 }
 0x5f0   : > { %v1678_v52 = vpack.c.bf16 %v1672_v33, %v1671_v51 }
 0x5f1   : > { %1880 = vst.msk [vmem:[#allocation4] sm:$0xff] %vm1879_vm9, %v1861_v45 }
 0x5f2   : > { %3362 = vmatmul.msk.bf16.vlgmr.msrb.gmra.mxu2 %vm1098_vm3, %v1678_v52 }
 0x5f3   : > { %1801 = vmatpush.bf16.msra.mxu0 %v3520_v53 }
 0x5f5   : > { %v1862_v39 = vpop.f32.mrf.mxu3 }
 0x5f6   : > { %v1863_v33 = vadd.f32 %v4309_v44, %v1862_v39 }
 0x5f8   : > { %1881 = vst.msk [vmem:[#allocation4 + $0x8] sm:$0xff] %vm1879_vm9, %v1863_v33 }
 0x5fd   : > { %v1865_v41 = vpop.f32.mrf.mxu3 }
 0x5fe   : > { %v1866_v51 = vadd.f32 %v4309_v44, %v1865_v41 }
 0x5ff   : > { %v4384_v41 = vld [vmem:[#allocation4 + $0x8] sm:$0xff] }
 0x600   : > { %1882 = vst.msk [vmem:[#allocation4 + $0x10] sm:$0xff] %vm1879_vm9, %v1866_v51 }
 0x605   : > { %v1867_v42 = vpop.f32.mrf.mxu3 }
 0x606   : > { %v1868_v52 = vadd.f32 %v4309_v44, %v1867_v42 }
 0x608   : > { %1883 = vst.msk [vmem:[#allocation4 + $0x18] sm:$0xff] %vm1879_vm9, %v1868_v52 }
 0x60d   : > { %v1870_v49 = vpop.f32.mrf.mxu3 }
 0x60e   : > { %v1871_v29 = vadd.f32 %v4309_v44, %v1870_v49 }
 0x60f   : > { %v4359_v34 = vld [vmem:[#allocation4 + $0x18] sm:$0xff] }
 0x610   : > { %1884 = vst.msk [vmem:[#allocation4 + $0x20] sm:$0xff] %vm1879_vm9, %v1871_v29 }
 0x675   : > { %v1706_v57 = vpop.f32.mrf.mxu2 }
 0x676   : > { %v1707_v58 = vadd.f32 %v3724_v56, %v1706_v57  ;;  %v1872_v57 = vpop.f32.mrf.mxu3 }
 0x678   : > { %v1711_v59 = vadd.f32 %v1707_v58, %v4140_v17  ;;  %v1889_v17 = vld [vmem:[#allocation3 + $0x38] sm:$0xff] }
 0x679   : > { %v1896_v8 = vpack.c.bf16 %v1890_v6, %v1889_v17 }
 0x67a   : > { %v1713_v60 = vsel %vm1098_vm3, %v1711_v59, 0.0 }
 0x67b   : > { %1714 = vadd.xlane.f32.xlu0 %v1713_v60  ;;  %3384 = vmatmul.msk.bf16.vlgmr.msra.gmra.mxu1 %vm1098_vm3, %v1896_v8  ;;  %v1873_v60 = vadd.f32 %v4309_v44, %v1872_v57  ;;  %v4337_v8 = vld [vmem:[#allocation4 + $0x20] sm:$0xff] }
 0x67d   : > { %v1708_v61 = vpop.f32.mrf.mxu2  ;;  %1885 = vst.msk [vmem:[#allocation4 + $0x28] sm:$0xff] %vm1879_vm9, %v1873_v60 }
 0x67e   : > { %v1709_v62 = vadd.f32 %v3724_v56, %v1708_v61  ;;  %v1875_v2 = vpop.f32.mrf.mxu3 }
 0x680   : > { %v1712_v63 = vadd.f32 %v1709_v62, %v4142_v18  ;;  %v1722_v18 = vmul.f32 %v3763_v4, %v1721_v7 }
 0x682   : > { %v1716_v24 = vsel %vm1098_vm3, %v1712_v63, 0.0  ;;  %v1723_v12 = vadd.f32 %v3763_v4, %v1722_v18 }
 0x683   : > { %1717 = vadd.xlane.f32.xlu1 %v1716_v24 }
 0x684   : > { %v4286_v15 = vsel %vm1724_vm8, %v3763_v4, %v1723_v12  ;;  %v1876_v4 = vadd.f32 %v4309_v44, %v1875_v2  ;;  %v4332_v6 = vld [vmem:[#allocation4 + $0x28] sm:$0xff] }
 0x685   : > { %v4343_v14 = vpack.i.bf16 %v4337_v8, %v4332_v6 }
 0x686   : > { %1887 = vst.msk [vmem:[#allocation4 + $0x30] sm:$0x1] %vm1886_vm10, %v1876_v4 }
 0x68b   : > { %3385 = vmatmul.msk.bf16.gmra.mxu1 %vm1098_vm3, %v1897_v22  ;;  %v1764_v22 = vperm.slane %v1075_v10, 0 }
 0x68d   : > { %v4348_v23 = vld [vmem:[#allocation4 + $0x30] sm:$0x1] }
 0x68e   : > { %3388 = vmatpush.xpose.msk.msra.mxu2 %vm1125_vm4, %v4348_v23 }
 0x692   : > { %3389 = vmatpush.xpose.msk.msra.mxu2 %vm1125_vm4, %v4332_v6 }
 0x696   : > { %3390 = vmatpush.xpose.msk.msra.mxu2 %vm1125_vm4, %v4337_v8 }
 0x69a   : > { %3391 = vmatpush.xpose.msk.msra.mxu2 %vm1125_vm4, %v4359_v34 }
 0x69b   : > { %3386 = vmatmul.msk.bf16.gmra.mxu1 %vm1098_vm3, %v1898_v37 }
 0x6ab   : > { %3387 = vmatmul.msk.bf16.gmra.mxu1 %vm1098_vm3, %v1899_v40  ;;  %v4382_v40 = vld [vmem:[#allocation4] sm:$0xff] }
 0x6ac   : > { %v4391_v46 = vpack.i.bf16 %v4382_v40, %v4384_v41 }
 0x6ee   : > { %v1715_v43 = vpop.xlane.xlu0 %1714 }
 0x6ef   : > { %v1726_v16 = vmul.f32 %v4286_v15, %v1715_v43  ;;  %v1877_v43 = vpop.f32.mrf.mxu3 }
 0x6f1   : > { %v4289_v19 = vsub.f32 %v1711_v59, %v1726_v16 }
 0x6f3   : > { %v1730_v21 = vmul.f32 %v4289_v19, %v4289_v19 }
 0x6f5   : > { %v1732_v25 = vsel %vm1098_vm3, %v1730_v21, 0.0 }
 0x6f6   : > { %v1718_v26 = vpop.xlane.xlu1 %1717  ;;  %1733 = vadd.xlane.f32.xlu2 %v1732_v25 }
 0x6f7   : > { %v1727_v27 = vmul.f32 %v4286_v15, %v1718_v26  ;;  %v1767_v26 = vperm.slane %v1076_v20, 0 }
 0x6f8   : > { %v1921_v54 = vpop.f32.mrf.mxu1 }
 0x6f9   : > { %v4297_v31 = vsub.f32 %v1712_v63, %v1727_v27  ;;  %v1922_v28 = vadd.f32 %v4309_v44, %v1921_v54 }
 0x6fb   : > { %v1731_v32 = vmul.f32 %v4297_v31, %v4297_v31  ;;  %1941 = vst.msk [vmem:[#allocation4 + $0x38] sm:$0xff] %vm1879_vm9, %v1922_v28  ;;  %v3726_v28 = vld [vmem:[%s4893_s6] ss:$0 sm:$0xff] }
 0x6fd   : > { %v1735_v36 = vsel %vm1098_vm3, %v1731_v32, 0.0  ;;  %v4357_v32 = vld [vmem:[#allocation4 + $0x10] sm:$0xff] }
 0x6fe   : > { %1736 = vadd.xlane.f32.xlu0 %v1735_v36  ;;  %v4366_v30 = vpack.i.bf16 %v4357_v32, %v4359_v34  ;;  %3392 = vmatpush.xpose.msk.msra.mxu2 %vm1125_vm4, %v4357_v32 }
 0x700   : > { %v1923_v63 = vpop.f32.mrf.mxu1 }
 0x701   : > { %v1924_v0 = vadd.f32 %v4309_v44, %v1923_v63 }
 0x702   : > { %3393 = vmatpush.xpose.msk.msra.mxu2 %vm1125_vm4, %v4384_v41 }
 0x703   : > { %1942 = vst.msk [vmem:[#allocation4 + $0x40] sm:$0xff] %vm1879_vm9, %v1924_v0 }
 0x706   : > { %3394 = vmatpush.xpose.msk.msra.mxu2 %vm1125_vm4, %v4382_v40 }
 0x708   : > { %v1926_v9 = vpop.f32.mrf.mxu1 }
 0x709   : > { %v1927_v12 = vadd.f32 %v4309_v44, %v1926_v9 }
 0x70a   : > { %v4434_v54 = vld [vmem:[#allocation4 + $0x40] sm:$0xff] }
 0x70b   : > { %1943 = vst.msk [vmem:[#allocation4 + $0x48] sm:$0xff] %vm1879_vm9, %v1927_v12 }
 0x70e   : > { %2178 = vrot.lane.b32.xlu2 %v4348_v23, %s3820_s24 }
 0x710   : > { %v1928_v35 = vpop.f32.mrf.mxu1 }
 0x711   : > { %v1929_v36 = vadd.f32 %v4309_v44, %v1928_v35 }
 0x712   : > { %2176 = vrot.lane.b32.xlu0 %v4332_v6, %s3820_s24  ;;  %v4430_v29 = vld [vmem:[#allocation4 + $0x48] sm:$0xff] }
 0x713   : > { %1944 = vst.msk [vmem:[#allocation4 + $0x50] sm:$0xff] %vm1879_vm9, %v1929_v36 }
 0x716   : > { %2174 = vrot.lane.b32.xlu2 %v4337_v8, %s3820_s24 }
 0x718   : > { %v1931_v42 = vpop.f32.mrf.mxu1 }
 0x719   : > { %v1932_v45 = vadd.f32 %v4309_v44, %v1931_v42 }
 0x71a   : > { %3589 = vrot.lane.b32.xlu0 %v4343_v14, %s3819_s13 }
 0x71b   : > { %1945 = vst.msk [vmem:[#allocation4 + $0x58] sm:$0xff] %vm1879_vm9, %v1932_v45 }
 0x71e   : > { %2172 = vrot.lane.b32.xlu2 %v4359_v34, %s3820_s24 }
 0x722   : > { %3594 = vrot.lane.b32.xlu0 %v4366_v30, %s3819_s13  ;;  %v4422_v53 = vld [vmem:[#allocation4 + $0x58] sm:$0xff] }
 0x726   : > { %2170 = vrot.lane.b32.xlu2 %v4357_v32, %s3820_s24 }
 0x72a   : > { %3599 = vrot.lane.b32.xlu0 %v4391_v46, %s3819_s13 }
 0x72e   : > { %2166 = vrot.lane.b32.xlu2 %v4382_v40, %s3820_s24 }
 0x732   : > { %2168 = vrot.lane.b32.xlu0 %v4384_v41, %s3820_s24 }
 0x769   : > { %v1734_v47 = vpop.xlane.xlu2 %1733 }
 0x76a   : > { %v1738_v48 = vmul.f32 %v1734_v47, %v4286_v15  ;;  %v1933_v47 = vpop.f32.mrf.mxu1 }
 0x76c   : > { %v1740_v50 = vadd.f32 1e-05, %v1738_v48  ;;  %v1934_v48 = vadd.f32 %v4309_v44, %v1933_v47 }
 0x76e   : > { %3764 = vrsqrt.f32 %v1740_v50  ;;  %vm1748_vm12 = vweird.f32 %v1740_v50  ;;  %1946 = vst.msk [vmem:[#allocation4 + $0x60] sm:$0xff] %vm1879_vm9, %v1934_v48 }
 0x771   : > { %v1737_v55 = vpop.xlane.xlu0 %1736 }
 0x772   : > { %v1739_v56 = vmul.f32 %v1737_v55, %v4286_v15  ;;  %v1936_v49 = vpop.f32.mrf.mxu1  ;;  %v4438_v55 = vld [vmem:[#allocation4 + $0x38] sm:$0xff] }
 0x773   : > { %v4494_v0 = vpack.i.bf16 %v4438_v55, %v4434_v54 }
 0x774   : > { %v3765_v58 = vpop.eup %3764  ;;  %v1741_v59 = vadd.f32 1e-05, %v1739_v56 }
 0x775   : > { %v1743_v61 = vmul.f32 %v3765_v58, %v1740_v50  ;;  %vm1749_vm11 = vweird.f32 %v3765_v58  ;;  %v1937_v50 = vadd.f32 %v4309_v44, %v1936_v49  ;;  %v4418_v52 = vld [vmem:[#allocation4 + $0x60] sm:$0xff]  ;;  %v4426_v44 = vld [vmem:[#allocation4 + $0x50] sm:$0xff] }
 0x776   : > { %3766 = vrsqrt.f32 %v1741_v59  ;;  %vm1750_vm13 = vmor %vm1748_vm12, %vm1749_vm11  ;;  %vm1758_vm15 = vweird.f32 %v1741_v59  ;;  %v4461_v60 = vpack.i.bf16 %v4430_v29, %v4426_v44  ;;  %v4525_v35 = vpack.i.bf16 %v4422_v53, %v4418_v52 }
 0x777   : > { %v1744_v62 = vmul.f32 %v3765_v58, %v1743_v61  ;;  %1947 = vst.msk [vmem:[#allocation4 + $0x68] sm:$0x1] %vm1886_vm10, %v1937_v50 }
 0x779   : > { %v1745_v24 = vmul.f32 0.5, %v1744_v62 }
 0x77a   : > { %v1938_v33 = vpop.f32.mrf.mxu1 }
 0x77b   : > { %v1746_v1 = vsub.f32 1.5, %v1745_v24 }
 0x77c   : > { %v3767_v3 = vpop.eup %3766 }
 0x77d   : > { %v1747_v5 = vmul.f32 %v3765_v58, %v1746_v1  ;;  %v1753_v17 = vmul.f32 %v3767_v3, %v1741_v59  ;;  %vm1759_vm14 = vweird.f32 %v3767_v3 }
 0x77e   : > { %vm1760_vm0 = vmor %vm1758_vm15, %vm1759_vm14  ;;  %v4414_v51 = vld [vmem:[#allocation4 + $0x68] sm:$0x1] }
 0x77f   : > { %v1754_v7 = vmul.f32 %v3767_v3, %v1753_v17  ;;  %v1751_v18 = vsel %vm1750_vm13, %v3765_v58, %v1747_v5  ;;  %3396 = vmatpush.xpose.msk.msrb.mxu0 %vm1125_vm4, %v4414_v51 }
 0x780   : > { %v1762_v16 = vmul.f32 %v1751_v18, %v4289_v19 }
 0x781   : > { %v1755_v11 = vmul.f32 0.5, %v1754_v7 }
 0x782   : > { %v1765_v27 = vmul.f32 %v1764_v22, %v1762_v16 }
 0x783   : > { %v1756_v13 = vsub.f32 1.5, %v1755_v11  ;;  %3397 = vmatpush.xpose.msk.msrb.mxu0 %vm1125_vm4, %v4418_v52 }
 0x784   : > { %v4369_v38 = vadd.f32 %v1767_v26, %v1765_v27  ;;  %v2177_v1 = vpop.permute.xlu0 %2176 }
 0x785   : > { %v1757_v21 = vmul.f32 %v3767_v3, %v1756_v13  ;;  %v2179_v13 = vpop.permute.xlu2 %2178 }
 0x787   : > { %v1761_v25 = vsel %vm1760_vm0, %v3767_v3, %v1757_v21  ;;  %3398 = vmatpush.xpose.msk.msrb.mxu0 %vm1125_vm4, %v4422_v53 }
 0x788   : > { %v1763_v19 = vmul.f32 %v1761_v25, %v4297_v31 }
 0x78a   : > { %v1766_v37 = vmul.f32 %v1764_v22, %v1763_v19 }
 0x78b   : > { %3399 = vmatpush.xpose.msk.msrb.mxu0 %vm1125_vm4, %v4426_v44 }
 0x78c   : > { %v4371_v31 = vadd.f32 %v1767_v26, %v1766_v37  ;;  %v3590_v2 = vpop.permute.xlu0 %3589 }
 0x78d   : > { %v3591_v22 = vunpack.i.l.bf16 %v3590_v2  ;;  %v2175_v20 = vpop.permute.xlu2 %2174 }
 0x78e   : > { %v1775_v39 = vpack.c.bf16 %v4371_v31, %v4369_v38 }
 0x78f   : > { %3400 = vmatpush.xpose.msk.msrb.mxu0 %vm1125_vm4, %v4430_v29 }
 0x790   : > { %3371 = vmatmul.msk.bf16.vlgmr.msra.gmra.mxu0 %vm1098_vm3, %v1775_v39 }
 0x793   : > { %3401 = vmatpush.xpose.msk.msrb.mxu0 %vm1125_vm4, %v4434_v54 }
 0x794   : > { %v3595_v3 = vpop.permute.xlu0 %3594 }
 0x795   : > { %v3596_v16 = vunpack.i.l.bf16 %v3595_v3  ;;  %v3597_v21 = vunpack.i.h.bf16 %v3595_v3  ;;  %v2173_v27 = vpop.permute.xlu2 %2172 }
 0x797   : > { %3402 = vmatpush.xpose.msk.msrb.mxu0 %vm1125_vm4, %v4438_v55 }
 0x79c   : > { %v3600_v4 = vpop.permute.xlu0 %3599 }
 0x79d   : > { %v3601_v25 = vunpack.i.l.bf16 %v3600_v4  ;;  %v3602_v26 = vunpack.i.h.bf16 %v3600_v4  ;;  %v2171_v19 = vpop.permute.xlu2 %2170 }
 0x7a4   : > { %v2169_v5 = vpop.permute.xlu0 %2168 }
 0x7a5   : > { %v2167_v36 = vpop.permute.xlu2 %2166 }
 0x80d   : > { %v1803_v56 = vpop.f32.mrf.mxu0 }
 0x80e   : > { %v4447_v57 = vadd.f32 %v3726_v28, %v1803_v56 }
 0x810   : > { %2164 = vrot.lane.b32.xlu0 %v4447_v57, %s3820_s24  ;;  %3395 = vmatmul.msk.f32.vlgmr.msra.gmra.mxu2 %vm1125_vm4, %v4447_v57 }
 0x815   : > { %v1805_v58 = vpop.f32.mrf.mxu0 }
 0x816   : > { %v4453_v59 = vadd.f32 %v3726_v28, %v1805_v58 }
 0x818   : > { %3403 = vmatmul.msk.f32.vlgmr.msrb.gmra.mxu0 %vm1125_vm4, %v4453_v59  ;;  %2131 = vrot.lane.b32.xlu0 %v4414_v51, %s3819_s13 }
 0x820   : > { %3609 = vrot.lane.b32.xlu0 %v4461_v60, %s3819_s13 }
 0x828   : > { %2220 = vrot.lane.b32.xlu0 %v4434_v54, %s3820_s24 }
 0x830   : > { %2444 = vrot.lane.b32.xlu0 %v4418_v52, %s3825_s28 }
 0x838   : > { %2394 = vrot.lane.b32.xlu0 %v4348_v23, %s3825_s28 }
 0x840   : > { %2442 = vrot.lane.b32.xlu0 %v4422_v53, %s3825_s28 }
 0x848   : > { %2440 = vrot.lane.b32.xlu0 %v4426_v44, %s3825_s28 }
 0x850   : > { %2390 = vrot.lane.b32.xlu0 %v4337_v8, %s3825_s28 }
 0x858   : > { %2438 = vrot.lane.b32.xlu0 %v4430_v29, %s3825_s28 }
 0x882   : > { %v4506_v17 = vpop.permute.xlu0 %2164 }
 0x88a   : > { %v2132_v7 = vpop.permute.xlu0 %2131 }
 0x88b   : > { %3406 = vmatpush.msk.msra.mxu0 %vm2096_vm2, %v2132_v7 }
 0x892   : > { %v3610_v37 = vpop.permute.xlu0 %3609 }
 0x893   : > { %v2003_v61 = vpop.f32.mrf.mxu2 }
 0x894   : > { %v2051_v62 = vsel %vm2050_vm1, %v2003_v61, -inf }
 0x895   : > { %v4480_v63 = vpop.f32.mrf.mxu0  ;;  %2052 = vmax.xlane.f32.xlu1 %v2051_v62 }
 0x896   : > { %v2054_v24 = vsel %vm2050_vm1, %v4480_v63, -inf }
 0x897   : > { %2055 = vmax.xlane.f32.xlu2 %v2054_v24 }
 0x89a   : > { %v2221_v39 = vpop.permute.xlu0 %2220 }
 0x8a2   : > { %v2445_v47 = vpop.permute.xlu0 %2444 }
 0x8aa   : > { %v4535_v49 = vpop.permute.xlu0 %2394 }
 0x8ae   : > { %2085 = vrot.lane.b32.xlu1 %v4348_v23, %s3819_s13 }
 0x8af   : > { %2226 = vrot.lane.b32.xlu2 %v4422_v53, %s3820_s24 }
 0x8b2   : > { %v2443_v56 = vpop.permute.xlu0 %2442 }
 0x8b7   : > { %2222 = vrot.lane.b32.xlu2 %v4430_v29, %s3820_s24 }
 0x8bf   : > { %2446 = vrot.lane.b32.xlu2 %v4414_v51, %s3825_s28 }
 0x8c7   : > { %3614 = vrot.lane.b32.xlu2 %v4494_v0, %s3819_s13 }
 0x8cf   : > { %2218 = vrot.lane.b32.xlu2 %v4438_v55, %s3820_s24 }
 0x8d7   : > { %2216 = vrot.lane.b32.xlu2 %v4453_v59, %s3820_s24 }
 0x8df   : > { %2392 = vrot.lane.b32.xlu2 %v4332_v6, %s3825_s28 }
 0x8e7   : > { %3619 = vrot.lane.b32.xlu2 %v4343_v14, %s3818_s5  ;;  %v3592_v14 = vunpack.i.h.bf16 %v3590_v2 }
 0x908   : > { %v2053_v9 = vpop.xlane.xlu1 %2052 }
 0x909   : > { %v2057_v10 = vsub.f32 %v2003_v61, %v2053_v9  ;;  %v2441_v61 = vpop.permute.xlu0 %2440 }
 0x90a   : > { %v2056_v42 = vpop.xlane.xlu2 %2055 }
 0x90b   : > { %v2059_v18 = vmul.f32 1.442695, %v2057_v10  ;;  %v2058_v45 = vsub.f32 %v4480_v63, %v2056_v42 }
 0x90d   : > { %3768 = vpow2.f32 %v2059_v18  ;;  %v2061_v48 = vmul.f32 1.442695, %v2058_v45 }
 0x90f   : > { %3770 = vpow2.f32 %v2061_v48 }
 0x912   : > { %v2227_v33 = vpop.permute.xlu2 %2226 }
 0x913   : > { %v3769_v11 = vpop.eup %3768 }
 0x914   : > { %v2063_v12 = vsel %vm2050_vm1, %v3769_v11, 0.0 }
 0x915   : > { %2064 = vadd.xlane.f32.xlu1 %v2063_v12  ;;  %v4537_v50 = vpop.eup %3770 }
 0x916   : > { %v2066_v28 = vsel %vm2050_vm1, %v4537_v50, 0.0 }
 0x91a   : > { %v2223_v58 = vpop.permute.xlu2 %2222 }
 0x920   : > { %v2086_v43 = vpop.permute.xlu1 %2085 }
 0x921   : > { %3404 = vmatpush.msk.msrb.mxu2 %vm2096_vm2, %v2086_v43  ;;  %v3612_v43 = vunpack.i.h.bf16 %v3610_v37 }
 0x922   : > { %v2447_v63 = vpop.permute.xlu2 %2446 }
 0x923   : > { %2109 = vmatpush.msrb.mxu2 %v3591_v22 }
 0x925   : > { %2110 = vmatpush.msrb.mxu2 %v3592_v14 }
 0x927   : > { %2111 = vmatpush.msrb.mxu2 %v3596_v16 }
 0x929   : > { %2112 = vmatpush.msrb.mxu2 %v3597_v21 }
 0x92a   : > { %v3615_v2 = vpop.permute.xlu2 %3614 }
 0x92b   : > { %2113 = vmatpush.msrb.mxu2 %v3601_v25  ;;  %v3616_v14 = vunpack.i.l.bf16 %v3615_v2  ;;  %v3617_v16 = vunpack.i.h.bf16 %v3615_v2 }
 0x92d   : > { %2114 = vmatpush.msrb.mxu2 %v3602_v26 }
 0x92e   : > { %2230 = vrot.lane.b32.xlu1 %v4414_v51, %s3820_s24 }
 0x92f   : > { %3408 = vmatpush.xpose.msk.msra.mxu2 %vm1125_vm4, %v2179_v13  ;;  %v3611_v13 = vunpack.i.l.bf16 %v3610_v37 }
 0x933   : > { %3409 = vmatpush.xpose.msk.msra.mxu2 %vm1125_vm4, %v2177_v1  ;;  %v4544_v1 = vpop.permute.xlu0 %2390 }
 0x936   : > { %2228 = vrot.lane.b32.xlu1 %v4418_v52, %s3820_s24 }
 0x937   : > { %3410 = vmatpush.xpose.msk.msra.mxu2 %vm1125_vm4, %v2175_v20 }
 0x93b   : > { %3411 = vmatpush.xpose.msk.msra.mxu2 %vm1125_vm4, %v2173_v27  ;;  %v2439_v4 = vpop.permute.xlu0 %2438 }
 0x93e   : > { %2224 = vrot.lane.b32.xlu1 %v4426_v44, %s3820_s24 }
 0x93f   : > { %3412 = vmatpush.xpose.msk.msra.mxu2 %vm1125_vm4, %v2171_v19 }
 0x943   : > { %3413 = vmatpush.xpose.msk.msra.mxu2 %vm1125_vm4, %v2169_v5  ;;  %v2219_v5 = vpop.permute.xlu2 %2218 }
 0x946   : > { %3604 = vrot.lane.b32.xlu1 %v4525_v35, %s3819_s13  ;;  %s4894_s13 = sld [smem:[#allocation18_spill]] }
 0x947   : > { %3414 = vmatpush.xpose.msk.msra.mxu2 %vm1125_vm4, %v2167_v36 }
 0x94c   : > { %s4895_s24 = scalar_lea.vmem %s4894_s13, %s3956_s26 }
 0x94e   : > { %2302 = vrot.lane.b32.xlu1 %v4348_v23, %s3818_s5 }
 0x956   : > { %3624 = vrot.lane.b32.xlu1 %v4366_v30, %s3818_s5 }
 0x980   : > { %2067 = vadd.xlane.f32.xlu1 %v2066_v28 }
 0x988   : > { %v2065_v30 = vpop.xlane.xlu1 %2064 }
 0x989   : > { %3772 = vrcp.f32 %v2065_v30 }
 0x98f   : > { %v3773_v62 = vpop.eup %3772 }
 0x990   : > { %v2071_v24 = vmul.f32 %v3773_v62, %v3769_v11 }
 0x992   : > { %3405 = vmatmul.msk.f32.vlgmr.msrb.gmra.mxu2 %vm2050_vm1, %v2071_v24 }
 0x993   : > { %3436 = vmatpush.xpose.msk.msrb.mxu2 %vm1125_vm4, %v2447_v63 }
 0x997   : > { %3437 = vmatpush.xpose.msk.msrb.mxu2 %vm1125_vm4, %v2445_v47 }
 0x999   : > { %2436 = vrot.lane.b32.xlu1 %v4434_v54, %s3825_s28 }
 0x99a   : > { %3415 = vmatmul.msk.f32.vlgmr.msra.gmra.mxu2 %vm1125_vm4, %v4506_v17  ;;  %v2217_v17 = vpop.permute.xlu2 %2216 }
 0x99b   : > { %3438 = vmatpush.xpose.msk.msrb.mxu2 %vm1125_vm4, %v2443_v56 }
 0x99f   : > { %3439 = vmatpush.xpose.msk.msrb.mxu2 %vm1125_vm4, %v2441_v61 }
 0x9a0   : > { %v2231_v3 = vpop.permute.xlu1 %2230 }
 0x9a1   : > { %2386 = vrot.lane.b32.xlu1 %v4357_v32, %s3825_s28  ;;  %3416 = vmatpush.xpose.msk.msrb.mxu3 %vm1125_vm4, %v2231_v3 }
 0x9a2   : > { %v4564_v18 = vpop.permute.xlu2 %2392 }
 0x9a3   : > { %3440 = vmatpush.xpose.msk.msrb.mxu2 %vm1125_vm4, %v2439_v4 }
 0x9a8   : > { %v2229_v7 = vpop.permute.xlu1 %2228 }
 0x9a9   : > { %2384 = vrot.lane.b32.xlu1 %v4384_v41, %s3825_s28  ;;  %3417 = vmatpush.xpose.msk.msrb.mxu3 %vm1125_vm4, %v2229_v7 }
 0x9aa   : > { %v3620_v20 = vpop.permute.xlu2 %3619 }
 0x9ab   : > { %v3621_v21 = vunpack.i.l.bf16 %v3620_v20  ;;  %v3622_v25 = vunpack.i.h.bf16 %v3620_v20 }
 0x9ad   : > { %3418 = vmatpush.xpose.msk.msrb.mxu3 %vm1125_vm4, %v2227_v33 }
 0x9b0   : > { %v2225_v9 = vpop.permute.xlu1 %2224 }
 0x9b1   : > { %2380 = vrot.lane.b32.xlu1 %v4447_v57, %s3825_s28  ;;  %3419 = vmatpush.xpose.msk.msrb.mxu3 %vm1125_vm4, %v2225_v9 }
 0x9b5   : > { %3420 = vmatpush.xpose.msk.msrb.mxu3 %vm1125_vm4, %v2223_v58 }
 0x9b8   : > { %v3605_v10 = vpop.permute.xlu1 %3604 }
 0x9b9   : > { %v3607_v11 = vunpack.i.h.bf16 %v3605_v10  ;;  %v3606_v12 = vunpack.i.l.bf16 %v3605_v10  ;;  %3634 = vrot.lane.b32.xlu1 %v4525_v35, %s3818_s5  ;;  %3421 = vmatpush.xpose.msk.msrb.mxu3 %vm1125_vm4, %v2221_v39 }
 0x9bb   : > { %2154 = vmatpush.msra.mxu0 %v3606_v12 }
 0x9bd   : > { %2155 = vmatpush.msra.mxu0 %v3607_v11  ;;  %3422 = vmatpush.xpose.msk.msrb.mxu3 %vm1125_vm4, %v2219_v5 }
 0x9bf   : > { %2156 = vmatpush.msra.mxu0 %v3611_v13 }
 0x9c0   : > { %v2303_v22 = vpop.permute.xlu1 %2302  ;;  %3423 = vmatmul.msk.f32.vlgmr.msrb.gmra.mxu3 %vm1125_vm4, %v2217_v17 }
 0x9c1   : > { %3644 = vrot.lane.b32.xlu1 %v4494_v0, %s3818_s5  ;;  %2157 = vmatpush.msra.mxu0 %v3612_v43  ;;  %v3668_v0 = vpack.i.bf16 %v4434_v54, %v4384_v41 }
 0x9c3   : > { %2158 = vmatpush.msra.mxu0 %v3616_v14 }
 0x9c5   : > { %2159 = vmatpush.msra.mxu0 %v3617_v16 }
 0x9c7   : > { %3424 = vmatpush.msk.msrb.mxu0 %vm2096_vm2, %v2303_v22 }
 0x9c8   : > { %v3625_v26 = vpop.permute.xlu1 %3624 }
 0x9c9   : > { %2325 = vmatpush.msrb.mxu0 %v3621_v21  ;;  %v3626_v27 = vunpack.i.l.bf16 %v3625_v26  ;;  %2610 = vrot.lane.b32.xlu1 %v4348_v23, %s3827_s7  ;;  %v3627_v19 = vunpack.i.h.bf16 %v3625_v26  ;;  %v3648_v21 = vpack.i.bf16 %v4418_v52, %v4332_v6 }
 0x9cb   : > { %2326 = vmatpush.msrb.mxu0 %v3622_v25  ;;  %v3653_v25 = vpack.i.bf16 %v4422_v53, %v4337_v8 }
 0x9cd   : > { %2327 = vmatpush.msrb.mxu0 %v3626_v27  ;;  %v3658_v27 = vpack.i.bf16 %v4426_v44, %v4359_v34 }
 0x9cf   : > { %2328 = vmatpush.msrb.mxu0 %v3627_v19 }
 0x9d1   : > { %2608 = vrot.lane.b32.xlu1 %v4332_v6, %s3827_s7 }
 0x9d9   : > { %2518 = vrot.lane.b32.xlu1 %v4348_v23, %s3821_s14 }
 0x9e1   : > { %2606 = vrot.lane.b32.xlu1 %v4337_v8, %s3827_s7 }
 0x9e9   : > { %3669 = vrot.lane.b32.xlu1 %v3668_v0, %s3821_s14 }
 0x9f3   : > { %v2068_v36 = vpop.xlane.xlu1 %2067 }
 0x9f4   : > { %3774 = vrcp.f32 %v2068_v36 }
 0x9fa   : > { %v3775_v37 = vpop.eup %3774 }
 0x9fb   : > { %v2072_v39 = vmul.f32 %v3775_v37, %v4537_v50  ;;  %v3663_v37 = vpack.i.bf16 %v4430_v29, %v4357_v32 }
 0x9fd   : > { %3407 = vmatmul.msk.f32.vlgmr.msra.gmra.mxu0 %vm2050_vm1, %v2072_v39  ;;  %v3673_v39 = vpack.i.bf16 %v4438_v55, %v4382_v40 }
 0xa0b   : > { %v2437_v42 = vpop.permute.xlu1 %2436 }
 0xa0c   : > { %3441 = vmatpush.xpose.msk.msrb.mxu2 %vm1125_vm4, %v2437_v42 }
 0xa13   : > { %v2387_v45 = vpop.permute.xlu1 %2386 }
 0xa15   : > { %v4588_v47 = vpop.f32.mrf.mxu2 }
 0xa1b   : > { %v2385_v48 = vpop.permute.xlu1 %2384 }
 0xa1d   : > { %v2213_v33 = vpop.f32.mrf.mxu2 }
 0xa1e   : > { %v2268_v28 = vsel %vm2050_vm1, %v2213_v33, -inf }
 0xa1f   : > { %2269 = vmax.xlane.f32.xlu0 %v2268_v28 }
 0xa23   : > { %v4591_v56 = vpop.permute.xlu1 %2380 }
 0xa2b   : > { %v3635_v58 = vpop.permute.xlu1 %3634 }
 0xa2c   : > { %v3636_v16 = vunpack.i.l.bf16 %v3635_v58  ;;  %v3637_v20 = vunpack.i.h.bf16 %v3635_v58 }
 0xa33   : > { %v4593_v30 = vpop.permute.xlu1 %3644  ;;  %2388 = vrot.lane.b32.xlu0 %v4359_v34, %s3825_s28 }
 0xa3b   : > { %v4597_v50 = vpop.permute.xlu1 %2610  ;;  %3629 = vrot.lane.b32.xlu0 %v4391_v46, %s3818_s5 }
 0xa43   : > { %v4601_v61 = vpop.permute.xlu1 %2608  ;;  %2434 = vrot.lane.b32.xlu0 %v4438_v55, %s3825_s28  ;;  %v2265_v24 = vpop.f32.mrf.mxu3 }
 0xa44   : > { %v2271_v63 = vsel %vm2050_vm1, %v2265_v24, -inf }
 0xa4b   : > { %v2519_v62 = vpop.permute.xlu1 %2518  ;;  %2432 = vrot.lane.b32.xlu0 %v4453_v59, %s3825_s28 }
 0xa4c   : > { %3444 = vmatpush.msk.msra.mxu3 %vm2096_vm2, %v2519_v62 }
 0xa75   : > { %2272 = vmax.xlane.f32.xlu0 %v2271_v63 }
 0xa89   : > { %2347 = vrot.lane.b32.xlu0 %v4414_v51, %s3818_s5 }
 0xa92   : > { %v2270_v2 = vpop.xlane.xlu0 %2269 }
 0xa93   : > { %v2274_v3 = vsub.f32 %v2213_v33, %v2270_v2 }
 0xa95   : > { %v2276_v4 = vmul.f32 1.442695, %v2274_v3 }
 0xa97   : > { %3776 = vpow2.f32 %v2276_v4 }
 0xa9d   : > { %v3777_v5 = vpop.eup %3776 }
 0xa9e   : > { %v2280_v7 = vsel %vm2050_vm1, %v3777_v5, 0.0 }
 0xa9f   : > { %2281 = vadd.xlane.f32.xlu2 %v2280_v7 }
 0xaa5   : > { %v2389_v17 = vpop.permute.xlu0 %2388 }
 0xaad   : > { %v3630_v9 = vpop.permute.xlu0 %3629 }
 0xaae   : > { %v3631_v10 = vunpack.i.l.bf16 %v3630_v9  ;;  %v3632_v11 = vunpack.i.h.bf16 %v3630_v9 }
 0xab0   : > { %2329 = vmatpush.msrb.mxu0 %v3631_v10 }
 0xab2   : > { %2330 = vmatpush.msrb.mxu0 %v3632_v11 }
 0xab4   : > { %3428 = vmatpush.xpose.msk.msra.mxu0 %vm1125_vm4, %v4535_v49 }
 0xab5   : > { %v2435_v12 = vpop.permute.xlu0 %2434 }
 0xab6   : > { %3442 = vmatpush.xpose.msk.msrb.mxu2 %vm1125_vm4, %v2435_v12 }
 0xab7   : > { %2382 = vrot.lane.b32.xlu2 %v4382_v40, %s3825_s28 }
 0xab8   : > { %3429 = vmatpush.xpose.msk.msra.mxu0 %vm1125_vm4, %v4564_v18 }
 0xabc   : > { %3430 = vmatpush.xpose.msk.msra.mxu0 %vm1125_vm4, %v4544_v1 }
 0xabd   : > { %v2433_v13 = vpop.permute.xlu0 %2432 }
 0xabe   : > { %3443 = vmatmul.msk.f32.vlgmr.msrb.gmra.mxu2 %vm1125_vm4, %v2433_v13 }
 0xac0   : > { %3431 = vmatpush.xpose.msk.msra.mxu0 %vm1125_vm4, %v2389_v17 }
 0xac4   : > { %3432 = vmatpush.xpose.msk.msra.mxu0 %vm1125_vm4, %v2387_v45 }
 0xac8   : > { %3433 = vmatpush.xpose.msk.msra.mxu0 %vm1125_vm4, %v2385_v48 }
 0xae8   : > { %v2273_v49 = vpop.xlane.xlu0 %2272 }
 0xae9   : > { %v2275_v43 = vsub.f32 %v2265_v24, %v2273_v49  ;;  %v2607_v24 = vpop.permute.xlu1 %2606 }
 0xaeb   : > { %v2278_v22 = vmul.f32 1.442695, %v2275_v43 }
 0xaed   : > { %3778 = vpow2.f32 %v2278_v22 }
 0xaf1   : > { %v3670_v4 = vpop.permute.xlu1 %3669 }
 0xaf2   : > { %v3671_v17 = vunpack.i.l.bf16 %v3670_v4 }
 0xaf3   : > { %v4625_v14 = vpop.eup %3778 }
 0xaf4   : > { %v2283_v18 = vsel %vm2050_vm1, %v4625_v14, 0.0 }
 0xaf5   : > { %2284 = vadd.xlane.f32.xlu0 %v2283_v18 }
 0xafb   : > { %v2348_v1 = vpop.permute.xlu0 %2347 }
 0xafc   : > { %3426 = vmatpush.msk.msrb.mxu1 %vm2096_vm2, %v2348_v1 }
 0xafe   : > { %2370 = vmatpush.msrb.mxu1 %v3636_v16 }
 0xb00   : > { %2371 = vmatpush.msrb.mxu1 %v3637_v20 }
 0xb09   : > { %3649 = vrot.lane.b32.xlu0 %v3648_v21, %s3821_s14 }
 0xb11   : > { %3654 = vrot.lane.b32.xlu0 %v3653_v25, %s3821_s14 }
 0xb12   : > { %v2282_v26 = vpop.xlane.xlu2 %2281 }
 0xb13   : > { %3780 = vrcp.f32 %v2282_v26 }
 0xb19   : > { %v3781_v19 = vpop.eup %3780  ;;  %3659 = vrot.lane.b32.xlu0 %v3658_v27, %s3821_s14 }
 0xb1a   : > { %v2288_v0 = vmul.f32 %v3781_v19, %v3777_v5  ;;  %v2383_v36 = vpop.permute.xlu2 %2382 }
 0xb1b   : > { %3434 = vmatpush.xpose.msk.msra.mxu0 %vm1125_vm4, %v2383_v36 }
 0xb1c   : > { %3425 = vmatmul.msk.f32.vlgmr.msrb.gmra.mxu0 %vm2050_vm1, %v2288_v0 }
 0xb21   : > { %2604 = vrot.lane.b32.xlu0 %v4359_v34, %s3827_s7 }
 0xb24   : > { %3435 = vmatmul.msk.f32.vlgmr.msra.gmra.mxu0 %vm1125_vm4, %v4591_v56 }
 0xb29   : > { %2656 = vrot.lane.b32.xlu0 %v4426_v44, %s3827_s7 }
 0xb31   : > { %3664 = vrot.lane.b32.xlu0 %v3663_v37, %s3821_s14 }
 0xb39   : > { %2654 = vrot.lane.b32.xlu0 %v4430_v29, %s3827_s7 }
 0xb41   : > { %v2481_v42 = vpop.f32.mrf.mxu2  ;;  %3674 = vrot.lane.b32.xlu0 %v3673_v39, %s3821_s14 }
 0xb42   : > { %v2487_v45 = vsel %vm2050_vm1, %v2481_v42, -inf }
 0xb43   : > { %2488 = vmax.xlane.f32.xlu2 %v2487_v45 }
 0xb49   : > { %2600 = vrot.lane.b32.xlu0 %v4384_v41, %s3827_s7 }
 0xb51   : > { %2650 = vrot.lane.b32.xlu0 %v4438_v55, %s3827_s7 }
 0xb5b   : > { %3639 = vrot.lane.b32.xlu2 %v4461_v60, %s3818_s5 }
 0xb63   : > { %2662 = vrot.lane.b32.xlu2 %v4414_v51, %s3827_s7 }
 0xb68   : > { %v2285_v48 = vpop.xlane.xlu0 %2284 }
 0xb6b   : > { %2660 = vrot.lane.b32.xlu2 %v4418_v52, %s3827_s7  ;;  %v4672_v52 = vpop.f32.mrf.mxu0 }
 0xb73   : > { %2563 = vrot.lane.b32.xlu2 %v4414_v51, %s3821_s14 }
 0xb7b   : > { %2658 = vrot.lane.b32.xlu2 %v4422_v53, %s3827_s7  ;;  %v3650_v41 = vpop.permute.xlu0 %3649 }
 0xb7c   : > { %v3651_v33 = vunpack.i.l.bf16 %v3650_v41  ;;  %v3652_v19 = vunpack.i.h.bf16 %v3650_v41 }
 0xb7e   : > { %2541 = vmatpush.msra.mxu3 %v3651_v33 }
 0xb83   : > { %2602 = vrot.lane.b32.xlu2 %v4357_v32, %s3827_s7  ;;  %v3655_v60 = vpop.permute.xlu0 %3654 }
 0xb84   : > { %v3656_v28 = vunpack.i.l.bf16 %v3655_v60  ;;  %v3657_v0 = vunpack.i.h.bf16 %v3655_v60 }
 0xb86   : > { %2542 = vmatpush.msra.mxu3 %v3656_v28 }
 0xb8b   : > { %v3660_v56 = vpop.permute.xlu0 %3659 }
 0xb8c   : > { %v3661_v58 = vunpack.i.l.bf16 %v3660_v56  ;;  %v3662_v36 = vunpack.i.h.bf16 %v3660_v56 }
 0xb8e   : > { %2543 = vmatpush.msra.mxu3 %v3661_v58 }
 0xb93   : > { %v2605_v62 = vpop.permute.xlu0 %2604 }
 0xb99   : > { %v4674_v63 = vpop.f32.mrf.mxu0 }
 0xb9b   : > { %v4676_v2 = vpop.permute.xlu0 %2656 }
 0xba1   : > { %v4678_v53 = vpop.f32.mrf.mxu0 }
 0xba2   : > { %v2484_v3 = vsel %vm2050_vm1, %v4678_v53, -inf }
 0xba3   : > { %v3665_v5 = vpop.permute.xlu0 %3664  ;;  %2485 = vmax.xlane.f32.xlu1 %v2484_v3 }
 0xba4   : > { %v3666_v7 = vunpack.i.l.bf16 %v3665_v5 }
 0xba6   : > { %2544 = vmatpush.msra.mxu3 %v3666_v7 }
 0xba8   : > { %2545 = vmatpush.msra.mxu3 %v3671_v17 }
 0xbab   : > { %v2655_v9 = vpop.permute.xlu0 %2654 }
 0xbb3   : > { %v3675_v10 = vpop.permute.xlu0 %3674 }
 0xbb4   : > { %v3676_v11 = vunpack.i.l.bf16 %v3675_v10  ;;  %v3677_v39 = vunpack.i.h.bf16 %v3675_v10 }
 0xbb6   : > { %v2489_v12 = vpop.xlane.xlu2 %2488  ;;  %2546 = vmatpush.msra.mxu3 %v3676_v11 }
 0xbb7   : > { %v2491_v13 = vsub.f32 %v2481_v42, %v2489_v12 }
 0xbb8   : > { %3448 = vmatpush.xpose.msk.msrb.mxu3 %vm1125_vm4, %v4597_v50  ;;  %v3646_v50 = vunpack.i.l.bf16 %v4593_v30 }
 0xbb9   : > { %v2494_v49 = vmul.f32 1.442695, %v2491_v13 }
 0xbbb   : > { %3782 = vpow2.f32 %v2494_v49 }
 0xbbc   : > { %3449 = vmatpush.xpose.msk.msrb.mxu3 %vm1125_vm4, %v4601_v61  ;;  %2652 = vrot.lane.b32.xlu1 %v4434_v54, %s3827_s7  ;;  %3784 = vrcp.f32 %v2285_v48  ;;  %v3647_v61 = vunpack.i.h.bf16 %v4593_v30  ;;  %v3667_v30 = vunpack.i.h.bf16 %v3665_v5 }
 0xbbe   : > { %v3640_v43 = vpop.permute.xlu2 %3639 }
 0xbbf   : > { %v3641_v22 = vunpack.i.l.bf16 %v3640_v43  ;;  %v3642_v1 = vunpack.i.h.bf16 %v3640_v43 }
 0xbc0   : > { %3450 = vmatpush.xpose.msk.msrb.mxu3 %vm1125_vm4, %v2607_v24 }
 0xbc1   : > { %v3783_v18 = vpop.eup %3782  ;;  %2372 = vmatpush.msrb.mxu1 %v3641_v22 }
 0xbc2   : > { %v2499_v16 = vsel %vm2050_vm1, %v3783_v18, 0.0  ;;  %v3785_v20 = vpop.eup %3784 }
 0xbc3   : > { %2500 = vadd.xlane.f32.xlu2 %v2499_v16  ;;  %2373 = vmatpush.msrb.mxu1 %v3642_v1  ;;  %v2289_v21 = vmul.f32 %v3785_v20, %v4625_v14  ;;  %v3672_v14 = vunpack.i.h.bf16 %v3670_v4  ;;  %v3683_v20 = vpack.i.bf16 %v4332_v6, %v4426_v44 }
 0xbc4   : > { %3451 = vmatpush.xpose.msk.msrb.mxu3 %vm1125_vm4, %v2605_v62 }
 0xbc5   : > { %2374 = vmatpush.msrb.mxu1 %v3646_v50 }
 0xbc6   : > { %v2663_v25 = vpop.permute.xlu2 %2662 }
 0xbc7   : > { %2375 = vmatpush.msrb.mxu1 %v3647_v61  ;;  %v3698_v61 = vpack.i.bf16 %v4357_v32, %v4438_v55 }
 0xbc8   : > { %3427 = vmatmul.msk.f32.vlgmr.msrb.gmra.mxu1 %vm2050_vm1, %v2289_v21  ;;  %v3688_v21 = vpack.i.bf16 %v4337_v8, %v4430_v29 }
 0xbce   : > { %v2661_v26 = vpop.permute.xlu2 %2660 }
 0xbd6   : > { %v2564_v27 = vpop.permute.xlu2 %2563 }
 0xbd7   : > { %3446 = vmatpush.msk.msra.mxu1 %vm2096_vm2, %v2564_v27 }
 0xbd9   : > { %2586 = vmatpush.msra.mxu1 %v3652_v19 }
 0xbdb   : > { %2598 = vrot.lane.b32.xlu2 %v4382_v40, %s3827_s7  ;;  %2587 = vmatpush.msra.mxu1 %v3657_v0  ;;  %v2601_v40 = vpop.permute.xlu0 %2600 }
 0xbdd   : > { %2588 = vmatpush.msra.mxu1 %v3662_v36 }
 0xbde   : > { %v2659_v37 = vpop.permute.xlu2 %2658 }
 0xbdf   : > { %2589 = vmatpush.msra.mxu1 %v3667_v30 }
 0xbe1   : > { %2590 = vmatpush.msra.mxu1 %v3672_v14 }
 0xbe3   : > { %2648 = vrot.lane.b32.xlu2 %v4453_v59, %s3827_s7  ;;  %2591 = vmatpush.msra.mxu1 %v3677_v39  ;;  %v2651_v60 = vpop.permute.xlu0 %2650 }
 0xbe5   : > { %3456 = vmatpush.xpose.msk.msrb.mxu1 %vm1125_vm4, %v2663_v25 }
 0xbe6   : > { %v2603_v42 = vpop.permute.xlu2 %2602 }
 0xbe7   : > { %3452 = vmatpush.xpose.msk.msrb.mxu3 %vm1125_vm4, %v2603_v42 }
 0xbe9   : > { %3457 = vmatpush.xpose.msk.msrb.mxu1 %vm1125_vm4, %v2661_v26 }
 0xbeb   : > { %2779 = vrot.lane.b32.xlu2 %v4414_v51, %s3826_s4  ;;  %3453 = vmatpush.xpose.msk.msrb.mxu3 %vm1125_vm4, %v2601_v40 }
 0xbed   : > { %3458 = vmatpush.xpose.msk.msrb.mxu1 %vm1125_vm4, %v2659_v37 }
 0xbf1   : > { %3459 = vmatpush.xpose.msk.msrb.mxu1 %vm1125_vm4, %v4676_v2 }
 0xbf3   : > { %3679 = vrot.lane.b32.xlu2 %v4525_v35, %s3826_s4 }
 0xbf5   : > { %3460 = vmatpush.xpose.msk.msrb.mxu1 %vm1125_vm4, %v2655_v9 }
 0xc16   : > { %v2486_v59 = vpop.xlane.xlu1 %2485 }
 0xc17   : > { %v2490_v45 = vsub.f32 %v4678_v53, %v2486_v59 }
 0xc19   : > { %v2492_v48 = vmul.f32 1.442695, %v2490_v45 }
 0xc1b   : > { %3786 = vpow2.f32 %v2492_v48 }
 0xc21   : > { %v3787_v41 = vpop.eup %3786 }
 0xc22   : > { %v2496_v51 = vsel %vm2050_vm1, %v3787_v41, 0.0 }
 0xc23   : > { %2497 = vadd.xlane.f32.xlu1 %v2496_v51 }
 0xc2e   : > { %v2653_v33 = vpop.permute.xlu1 %2652 }
 0xc2f   : > { %3461 = vmatpush.xpose.msk.msrb.mxu1 %vm1125_vm4, %v2653_v33 }
 0xc33   : > { %3462 = vmatpush.xpose.msk.msrb.mxu1 %vm1125_vm4, %v2651_v60  ;;  %v3525_v60 = vld [vmem:[%s3998_s21 + $0x8] sm:$0xff] }
 0xc36   : > { %v2501_v28 = vpop.xlane.xlu2 %2500 }
 0xc37   : > { %3788 = vrcp.f32 %v2501_v28 }
 0xc3c   : > { %2596 = vrot.lane.b32.xlu1 %v4447_v57, %s3827_s7 }
 0xc3d   : > { %v3789_v35 = vpop.eup %3788 }
 0xc3e   : > { %v2505_v56 = vmul.f32 %v3789_v35, %v3783_v18  ;;  %v2599_v58 = vpop.permute.xlu2 %2598 }
 0xc3f   : > { %3454 = vmatpush.xpose.msk.msrb.mxu3 %vm1125_vm4, %v2599_v58  ;;  %v3524_v58 = vld [vmem:[%s3998_s21] sm:$0xff] }
 0xc40   : > { %3447 = vmatmul.msk.f32.vlgmr.msra.gmra.mxu1 %vm2050_vm1, %v2505_v56 }
 0xc45   : > { %v2377_v17 = vpop.f32.mrf.mxu1 }
 0xc46   : > { %v2649_v62 = vpop.permute.xlu2 %2648  ;;  %v3708_v6 = vpack.i.bf16 %v2377_v17, %v4674_v63 }
 0xc48   : > { %3463 = vmatmul.msk.f32.vlgmr.msrb.gmra.mxu1 %vm1125_vm4, %v2649_v62 }
 0xc4e   : > { %v2780_v24 = vpop.permute.xlu2 %2779 }
 0xc4f   : > { %3466 = vmatpush.msk.msra.mxu2 %vm2096_vm2, %v2780_v24 }
 0xc56   : > { %v3680_v2 = vpop.permute.xlu2 %3679 }
 0xc57   : > { %v3681_v53 = vunpack.i.l.bf16 %v3680_v2  ;;  %v3682_v3 = vunpack.i.h.bf16 %v3680_v2 }
 0xc59   : > { %2802 = vmatpush.msra.mxu2 %v3681_v53 }
 0xc5b   : > { %2803 = vmatpush.msra.mxu2 %v3682_v3 }
 0xc96   : > { %v2498_v4 = vpop.xlane.xlu1 %2497 }
 0xc97   : > { %3790 = vrcp.f32 %v2498_v4 }
 0xc9d   : > { %v3791_v57 = vpop.eup %3790 }
 0xc9e   : > { %v2504_v5 = vmul.f32 %v3791_v57, %v3787_v41 }
 0xca0   : > { %3445 = vmatmul.msk.f32.vlgmr.msra.gmra.mxu3 %vm2050_vm1, %v2504_v5 }
 0xcae   : > { %v2597_v7 = vpop.permute.xlu1 %2596 }
 0xcaf   : > { %3455 = vmatmul.msk.f32.vlgmr.msrb.gmra.mxu3 %vm1125_vm4, %v2597_v7 }
 0xcbd   : > { %v2593_v9 = vpop.f32.mrf.mxu1 }
 0xcc5   : > { %v2697_v10 = vpop.f32.mrf.mxu1 }
 0xcc6   : > { %v2703_v11 = vsel %vm2050_vm1, %v2697_v10, -inf }
 0xcc7   : > { %2704 = vmax.xlane.f32.xlu0 %v2703_v11 }
 0xcdb   : > { %2734 = vrot.lane.b32.xlu0 %v4348_v23, %s3826_s4  ;;  %v3693_v23 = vpack.i.bf16 %v4359_v34, %v4434_v54 }
 0xd23   : > { %v2548_v12 = vpop.f32.mrf.mxu3 }
 0xd24   : > { %v3713_v34 = vpack.i.bf16 %v2593_v9, %v2548_v12 }
 0xd32   : > { %v2645_v13 = vpop.f32.mrf.mxu3 }
 0xd33   : > { %v2700_v49 = vsel %vm2050_vm1, %v2645_v13, -inf }
 0xd34   : > { %2701 = vmax.xlane.f32.xlu1 %v2700_v49 }
 0xd3a   : > { %v2705_v43 = vpop.xlane.xlu0 %2704 }
 0xd3b   : > { %v2707_v22 = vsub.f32 %v2697_v10, %v2705_v43 }
 0xd3d   : > { %v2710_v18 = vmul.f32 1.442695, %v2707_v22 }
 0xd3f   : > { %3792 = vpow2.f32 %v2710_v18 }
 0xd45   : > { %v3793_v1 = vpop.eup %3792 }
 0xd46   : > { %v2715_v16 = vsel %vm2050_vm1, %v3793_v1, 0.0 }
 0xd47   : > { %2716 = vadd.xlane.f32.xlu2 %v2715_v16 }
 0xd4d   : > { %v2735_v50 = vpop.permute.xlu0 %2734  ;;  %3684 = vrot.lane.b32.xlu1 %v3683_v20, %s3826_s4 }
 0xd4e   : > { %3464 = vmatpush.msk.msrb.mxu0 %vm2096_vm2, %v2735_v50 }
 0xd55   : > { %3694 = vrot.lane.b32.xlu1 %v3693_v23, %s3826_s4 }
 0xd5d   : > { %3699 = vrot.lane.b32.xlu1 %v3698_v61, %s3826_s4 }
 0xd5f   : > { %3689 = vrot.lane.b32.xlu2 %v3688_v21, %s3826_s4 }
 0xd65   : > { %3704 = vrot.lane.b32.xlu1 %v4391_v46, %s3826_s4  ;;  %s4897_s4 = scalar_lea.vmem %s4845_s18, %s3956_s26 }
 0xd67   : > { %3709 = vrot.lane.b32.xlu2 %v3708_v6, %s3830_s22 }
 0xd6d   : > { %3714 = vrot.lane.b32.xlu1 %v3713_v34, %s3831_s25 }
 0xda7   : > { %v2702_v44 = vpop.xlane.xlu1 %2701 }
 0xda8   : > { %v2706_v54 = vsub.f32 %v2645_v13, %v2702_v44 }
 0xdaa   : > { %v2708_v32 = vmul.f32 1.442695, %v2706_v54 }
 0xdac   : > { %3794 = vpow2.f32 %v2708_v32 }
 0xdb2   : > { %v3795_v55 = vpop.eup %3794 }
 0xdb3   : > { %v2712_v25 = vsel %vm2050_vm1, %v3795_v55, 0.0 }
 0xdb4   : > { %2713 = vadd.xlane.f32.xlu0 %v2712_v25 }
 0xdba   : > { %v2717_v8 = vpop.xlane.xlu2 %2716 }
 0xdbb   : > { %3796 = vrcp.f32 %v2717_v8 }
 0xdbf   : > { %v3685_v29 = vpop.permute.xlu1 %3684 }
 0xdc0   : > { %v3687_v26 = vunpack.i.h.bf16 %v3685_v29  ;;  %v3686_v63 = vunpack.i.l.bf16 %v3685_v29 }
 0xdc1   : > { %v3797_v37 = vpop.eup %3796 }
 0xdc2   : > { %v3690_v27 = vpop.permute.xlu2 %3689  ;;  %2757 = vmatpush.msrb.mxu0 %v3687_v26  ;;  %2804 = vmatpush.msra.mxu2 %v3686_v63  ;;  %v2721_v40 = vmul.f32 %v3797_v37, %v3793_v1  ;;  %v3526_v26 = vld [vmem:[%s4007_s0] sm:$0xff] }
 0xdc3   : > { %v3692_v46 = vunpack.i.h.bf16 %v3690_v27  ;;  %v3691_v19 = vunpack.i.l.bf16 %v3690_v27 }
 0xdc5   : > { %2758 = vmatpush.msrb.mxu0 %v3692_v46  ;;  %2805 = vmatpush.msra.mxu2 %v3691_v19 }
 0xdc7   : > { %v3695_v0 = vpop.permute.xlu1 %3694 }
 0xdc8   : > { %v3697_v36 = vunpack.i.h.bf16 %v3695_v0  ;;  %v3696_v30 = vunpack.i.l.bf16 %v3695_v0 }
 0xdca   : > { %2759 = vmatpush.msrb.mxu0 %v3697_v36  ;;  %2806 = vmatpush.msra.mxu2 %v3696_v30  ;;  %v3710_v62 = vpop.permute.xlu2 %3709 }
 0xdcb   : > { %v3712_v2 = vunpack.i.h.bf16 %v3710_v62  ;;  %v3711_v53 = vunpack.i.l.bf16 %v3710_v62 }
 0xdcd   : > { %v2837_v5 = vsel %vm1125_vm4, %v4672_v52, %v3712_v2  ;;  %v2836_v7 = vsel %vm1125_vm4, %v4588_v47, %v3711_v53  ;;  %v3727_v52 = vld [vmem:[%s4895_s24] ss:$0 sm:$0xff] }
 0xdcf   : > { %v3700_v14 = vpop.permute.xlu1 %3699 }
 0xdd0   : > { %v3702_v39 = vunpack.i.h.bf16 %v3700_v14  ;;  %v3701_v42 = vunpack.i.l.bf16 %v3700_v14 }
 0xdd2   : > { %2760 = vmatpush.msrb.mxu0 %v3702_v39  ;;  %2807 = vmatpush.msra.mxu2 %v3701_v42 }
 0xdd3   : > { %3467 = vmatmul.msk.f32.vlgmr.msra.gmra.mxu2 %vm2050_vm1, %v2721_v40 }
 0xdd7   : > { %v3705_v59 = vpop.permute.xlu1 %3704 }
 0xdd8   : > { %v3706_v45 = vunpack.i.l.bf16 %v3705_v59  ;;  %v3707_v48 = vunpack.i.h.bf16 %v3705_v59 }
 0xdda   : > { %2761 = vmatpush.msrb.mxu0 %v3706_v45 }
 0xddc   : > { %2762 = vmatpush.msrb.mxu0 %v3707_v48 }
 0xdde   : > { %2872 = vmatpush.bf16.msra.mxu0 %v3525_v60 }
 0xddf   : > { %v3715_v24 = vpop.permute.xlu1 %3714 }
 0xde0   : > { %v3717_v3 = vunpack.i.h.bf16 %v3715_v24  ;;  %v3716_v4 = vunpack.i.l.bf16 %v3715_v24 }
 0xde2   : > { %2873 = vmatpush.bf16.msra.mxu0 %v3524_v58  ;;  %v2839_v10 = vsel %vm1667_vm6, %v2837_v5, %v3717_v3  ;;  %v2838_v11 = vsel %vm1667_vm6, %v2836_v7, %v3716_v4  ;;  %v3531_v4 = vld [vmem:[%s4017_s2 + $0x18] sm:$0xff]  ;;  %v3529_v5 = vld [vmem:[%s4017_s2 + $0x8] sm:$0xff]  ;;  %v3528_v7 = vld [vmem:[%s4017_s2] sm:$0xff] }
 0xe27   : > { %v2714_v41 = vpop.xlane.xlu0 %2713 }
 0xe28   : > { %3798 = vrcp.f32 %v2714_v41  ;;  %v4780_v41 = vld [vmem:[%s4027_s27] sm:$0x7] }
 0xe2e   : > { %v3799_v51 = vpop.eup %3798 }
 0xe2f   : > { %v2720_v33 = vmul.f32 %v3799_v51, %v3795_v55  ;;  %v2926_v51 = vperm.slane %v4780_v41, 1 }
 0xe31   : > { %3465 = vmatmul.msk.f32.vlgmr.msrb.gmra.mxu0 %vm2050_vm1, %v2720_v33 }
 0xe32   : > { %3016 = vmatpush.bf16.msrb.mxu0 %v3531_v4 }
 0xe56   : > { %v2809_v28 = vpop.f32.mrf.mxu2 }
 0xeae   : > { %v2764_v35 = vpop.f32.mrf.mxu0 }
 0xeaf   : > { %v3718_v56 = vpack.i.bf16 %v2809_v28, %v2764_v35  ;;  %v4784_v35 = vld [vmem:[%s4032_s30] sm:$0x7]  ;;  %s4896_s30 = scalar_lea.vmem %s4843_s16, %s3956_s26  ;;  %s4898_s26 = sld [smem:[#allocation6_spill]] }
 0xeb1   : > { %3719 = vrot.lane.b32.xlu2 %v3718_v56, %s3832_s29  ;;  %v2929_v56 = vperm.slane %v4784_v35, 1 }
 0xeb5   : > { %p3503_p5 = scmp.ne.s32.totalorder %s4898_s26, 1 }
 0xeb6   : > { %s4899_s22 = sld [smem:[#allocation21_spill]] (!%p3503_p5) }
 0xf0b   : > { %v3720_v57 = vpop.permute.xlu2 %3719 }
 0xf0c   : > { %v3722_v17 = vunpack.i.h.bf16 %v3720_v57  ;;  %v3721_v9 = vunpack.i.l.bf16 %v3720_v57  ;;  %v3530_v57 = vld [vmem:[%s4017_s2 + $0x10] sm:$0xff] }
 0xf0d   : > { %3017 = vmatpush.bf16.msrb.mxu0 %v3530_v57 }
 0xf0e   : > { %v2841_v12 = vsel %vm1670_vm7, %v2839_v10, %v3722_v17  ;;  %v2840_v13 = vsel %vm1670_vm7, %v2838_v11, %v3721_v9  ;;  %v3728_v9 = vld [vmem:[%s4896_s30] ss:$0 sm:$0xff] }
 0xf0f   : > { %v2847_v49 = vpack.c.bf16 %v2841_v12, %v2840_v13 }
 0xf11   : > { %3476 = vmatmul.msk.bf16.vlgmr.msra.gmra.mxu0 %vm1098_vm3, %v2847_v49 }
 0xf12   : > { %3018 = vmatpush.bf16.msrb.mxu0 %v3529_v5 }
 0xf16   : > { %3019 = vmatpush.bf16.msrb.mxu0 %v3528_v7 }
 0xf8e   : > { %v2875_v43 = vpop.f32.mrf.mxu0 }
 0xf8f   : > { %v2876_v47 = vadd.f32 %v3727_v52, %v2875_v43  ;;  %v3729_v43 = vld [vmem:[%s4897_s4] ss:$0 sm:$0xff] }
 0xf91   : > { %v2880_v22 = vadd.f32 %v2876_v47, %v4369_v38 }
 0xf93   : > { %v2882_v18 = vsel %vm1098_vm3, %v2880_v22, 0.0 }
 0xf94   : > { %2883 = vadd.xlane.f32.xlu1 %v2882_v18 }
 0xf96   : > { %v2877_v1 = vpop.f32.mrf.mxu0 }
 0xf97   : > { %v2878_v16 = vadd.f32 %v3727_v52, %v2877_v1 }
 0xf99   : > { %v2881_v20 = vadd.f32 %v2878_v16, %v4371_v31  ;;  %v3527_v31 = vld [vmem:[%s4007_s0 + $0x8] sm:$0xff] }
 0xf9a   : > { %2962 = vmatpush.bf16.msrb.mxu2 %v3527_v31 }
 0xf9b   : > { %v2885_v50 = vsel %vm1098_vm3, %v2881_v20, 0.0 }
 0xf9c   : > { %2886 = vadd.xlane.f32.xlu2 %v2885_v50 }
 0xf9e   : > { %2963 = vmatpush.bf16.msrb.mxu2 %v3526_v26 }
0x1007   : > { %v2884_v23 = vpop.xlane.xlu1 %2883 }
0x1008   : > { %v2888_v61 = vmul.f32 %v2884_v23, %v4286_v15 }
0x100a   : > { %v2890_v21 = vsub.f32 %v2880_v22, %v2888_v61 }
0x100c   : > { %v2892_v6 = vmul.f32 %v2890_v21, %v2890_v21 }
0x100e   : > { %v2894_v34 = vsel %vm1098_vm3, %v2892_v6, 0.0 }
0x100f   : > { %v2887_v38 = vpop.xlane.xlu2 %2886  ;;  %2895 = vadd.xlane.f32.xlu0 %v2894_v34 }
0x1010   : > { %v2889_v44 = vmul.f32 %v2887_v38, %v4286_v15 }
0x1012   : > { %v2891_v54 = vsub.f32 %v2881_v20, %v2889_v44 }
0x1014   : > { %v2893_v32 = vmul.f32 %v2891_v54, %v2891_v54 }
0x1016   : > { %v2897_v55 = vsel %vm1098_vm3, %v2893_v32, 0.0 }
0x1017   : > { %2898 = vadd.xlane.f32.xlu0 %v2897_v55 }
0x1082   : > { %v2896_v25 = vpop.xlane.xlu0 %2895 }
0x1083   : > { %v2900_v8 = vmul.f32 %v2896_v25, %v4286_v15 }
0x1085   : > { %v2902_v29 = vadd.f32 1e-05, %v2900_v8 }
0x1087   : > { %3800 = vrsqrt.f32 %v2902_v29  ;;  %vm2910_vm5 = vweird.f32 %v2902_v29 }
0x108a   : > { %v2899_v63 = vpop.xlane.xlu0 %2898 }
0x108b   : > { %v2901_v27 = vmul.f32 %v2899_v63, %v4286_v15 }
0x108d   : > { %v3801_v46 = vpop.eup %3800  ;;  %v2903_v19 = vadd.f32 1e-05, %v2901_v27 }
0x108e   : > { %v2905_v0 = vmul.f32 %v3801_v46, %v2902_v29  ;;  %vm2911_vm4 = vweird.f32 %v3801_v46 }
0x108f   : > { %3802 = vrsqrt.f32 %v2903_v19  ;;  %vm2912_vm6 = vmor %vm2910_vm5, %vm2911_vm4  ;;  %vm2920_vm8 = vweird.f32 %v2903_v19 }
0x1090   : > { %v2906_v36 = vmul.f32 %v3801_v46, %v2905_v0 }
0x1092   : > { %v2907_v30 = vmul.f32 0.5, %v2906_v36 }
0x1094   : > { %v2908_v37 = vsub.f32 1.5, %v2907_v30 }
0x1095   : > { %v3803_v14 = vpop.eup %3802 }
0x1096   : > { %v2909_v39 = vmul.f32 %v3801_v46, %v2908_v37  ;;  %v2915_v42 = vmul.f32 %v3803_v14, %v2903_v19  ;;  %vm2921_vm7 = vweird.f32 %v3803_v14 }
0x1097   : > { %vm2922_vm10 = vmor %vm2920_vm8, %vm2921_vm7 }
0x1098   : > { %v2916_v40 = vmul.f32 %v3803_v14, %v2915_v42  ;;  %v2913_v59 = vsel %vm2912_vm6, %v3801_v46, %v2909_v39  ;;  %v3072_v42 = vperm.slane %v4780_v41, 2 }
0x1099   : > { %v2924_v33 = vmul.f32 %v2913_v59, %v2890_v21 }
0x109a   : > { %v2917_v45 = vmul.f32 0.5, %v2916_v40 }
0x109b   : > { %v2927_v58 = vmul.f32 %v2926_v51, %v2924_v33 }
0x109c   : > { %v2918_v48 = vsub.f32 1.5, %v2917_v45  ;;  %v3075_v45 = vperm.slane %v4784_v35, 2 }
0x109d   : > { %v2930_v2 = vadd.f32 %v2929_v56, %v2927_v58 }
0x109e   : > { %v2919_v60 = vmul.f32 %v3803_v14, %v2918_v48 }
0x10a0   : > { %v2923_v28 = vsel %vm2922_vm10, %v3803_v14, %v2919_v60 }
0x10a1   : > { %v2925_v62 = vmul.f32 %v2923_v28, %v2891_v54 }
0x10a3   : > { %v2928_v24 = vmul.f32 %v2926_v51, %v2925_v62 }
0x10a5   : > { %v2931_v53 = vadd.f32 %v2929_v56, %v2928_v24 }
0x10a7   : > { %v2937_v3 = vpack.c.bf16 %v2931_v53, %v2930_v2 }
0x10a9   : > { %3485 = vmatmul.msk.bf16.vlgmr.msrb.gmra.mxu2 %vm1098_vm3, %v2937_v3 }
0x112c   : > { %v2965_v17 = vpop.f32.mrf.mxu2 }
0x112d   : > { %v2966_v10 = vadd.f32 %v3728_v9, %v2965_v17 }
0x112f   : > { %v2970_v13 = vmax.f32 %v2966_v10, 0.0 }
0x1134   : > { %v2967_v11 = vpop.f32.mrf.mxu2 }
0x1135   : > { %v2968_v12 = vadd.f32 %v3728_v9, %v2967_v11 }
0x1137   : > { %v2971_v49 = vmax.f32 %v2968_v12, 0.0 }
0x1139   : > { %v2981_v52 = vpack.c.bf16 %v2971_v49, %v2970_v13 }
0x113b   : > { %3502 = vmatmul.msk.bf16.vlgmr.msrb.gmra.mxu0 %vm1879_vm9, %v2981_v52 }
0x11b8   : > { %v3021_v47 = vpop.f32.mrf.mxu0 }
0x11b9   : > { %v3022_v22 = vadd.f32 %v3729_v43, %v3021_v47 }
0x11bb   : > { %v3026_v18 = vadd.f32 %v3022_v22, %v2930_v2 }
0x11bd   : > { %v3028_v1 = vsel %vm1098_vm3, %v3026_v18, 0.0 }
0x11be   : > { %3029 = vadd.xlane.f32.xlu0 %v3028_v1 }
0x11c0   : > { %v3023_v16 = vpop.f32.mrf.mxu0 }
0x11c1   : > { %v3024_v20 = vadd.f32 %v3729_v43, %v3023_v16 }
0x11c3   : > { %v3027_v50 = vadd.f32 %v3024_v20, %v2931_v53 }
0x11c5   : > { %v3031_v23 = vsel %vm1098_vm3, %v3027_v50, 0.0 }
0x11c6   : > { %3032 = vadd.xlane.f32.xlu0 %v3031_v23 }
0x1231   : > { %v3030_v61 = vpop.xlane.xlu0 %3029 }
0x1232   : > { %v3034_v21 = vmul.f32 %v3030_v61, %v4286_v15 }
0x1234   : > { %v3036_v6 = vsub.f32 %v3026_v18, %v3034_v21 }
0x1236   : > { %v3038_v34 = vmul.f32 %v3036_v6, %v3036_v6 }
0x1238   : > { %v3040_v38 = vsel %vm1098_vm3, %v3038_v34, 0.0 }
0x1239   : > { %3041 = vadd.xlane.f32.xlu0 %v3040_v38  ;;  %v3033_v44 = vpop.xlane.xlu0 %3032 }
0x123a   : > { %v3035_v54 = vmul.f32 %v3033_v44, %v4286_v15 }
0x123c   : > { %v3037_v32 = vsub.f32 %v3027_v50, %v3035_v54 }
0x123e   : > { %v3039_v55 = vmul.f32 %v3037_v32, %v3037_v32 }
0x1240   : > { %v3043_v31 = vsel %vm1098_vm3, %v3039_v55, 0.0 }
0x1241   : > { %3044 = vadd.xlane.f32.xlu2 %v3043_v31 }
0x12ac   : > { %v3042_v25 = vpop.xlane.xlu0 %3041 }
0x12ad   : > { %v3046_v8 = vmul.f32 %v3042_v25, %v4286_v15 }
0x12af   : > { %v3048_v29 = vadd.f32 1e-05, %v3046_v8 }
0x12b1   : > { %3804 = vrsqrt.f32 %v3048_v29  ;;  %vm3056_vm11 = vweird.f32 %v3048_v29 }
0x12b4   : > { %v3045_v26 = vpop.xlane.xlu2 %3044 }
0x12b5   : > { %v3047_v63 = vmul.f32 %v3045_v26, %v4286_v15 }
0x12b7   : > { %v3805_v27 = vpop.eup %3804  ;;  %v3049_v46 = vadd.f32 1e-05, %v3047_v63 }
0x12b8   : > { %v3051_v19 = vmul.f32 %v3805_v27, %v3048_v29  ;;  %vm3057_vm9 = vweird.f32 %v3805_v27 }
0x12b9   : > { %3806 = vrsqrt.f32 %v3049_v46  ;;  %vm3058_vm12 = vmor %vm3056_vm11, %vm3057_vm9  ;;  %vm3066_vm14 = vweird.f32 %v3049_v46 }
0x12ba   : > { %v3052_v0 = vmul.f32 %v3805_v27, %v3051_v19 }
0x12bc   : > { %v3053_v36 = vmul.f32 0.5, %v3052_v0 }
0x12be   : > { %v3054_v30 = vsub.f32 1.5, %v3053_v36 }
0x12bf   : > { %v3807_v37 = vpop.eup %3806 }
0x12c0   : > { %v3055_v14 = vmul.f32 %v3805_v27, %v3054_v30  ;;  %v3061_v39 = vmul.f32 %v3807_v37, %v3049_v46  ;;  %vm3067_vm13 = vweird.f32 %v3807_v37 }
0x12c1   : > { %vm3068_vm15 = vmor %vm3066_vm14, %vm3067_vm13 }
0x12c2   : > { %v3059_v40 = vsel %vm3058_vm12, %v3805_v27, %v3055_v14  ;;  %v3062_v59 = vmul.f32 %v3807_v37, %v3061_v39 }
0x12c3   : > { %v3070_v15 = vmul.f32 %v3059_v40, %v3036_v6 }
0x12c4   : > { %v3063_v48 = vmul.f32 0.5, %v3062_v59 }
0x12c5   : > { %v3073_v51 = vmul.f32 %v3072_v42, %v3070_v15 }
0x12c6   : > { %v3064_v33 = vsub.f32 1.5, %v3063_v48 }
0x12c7   : > { %v3076_v60 = vadd.f32 %v3075_v45, %v3073_v51 }
0x12c8   : > { %v3065_v28 = vmul.f32 %v3807_v37, %v3064_v33 }
0x12c9   : > { %3078 = vst.msk [vmem:[#allocation2] sm:$0xff] %vm1098_vm3, %v3076_v60 }
0x12ca   : > { %v3069_v56 = vsel %vm3068_vm15, %v3807_v37, %v3065_v28 }
0x12cb   : > { %v3071_v58 = vmul.f32 %v3069_v56, %v3037_v32 }
0x12cd   : > { %v3074_v62 = vmul.f32 %v3072_v42, %v3071_v58  ;;  %3083 = sbr.rel (%p3503_p5) target bundleno = 4820 (0x12d4), region = 112 }
0x12cf   : > { %v3077_v41 = vadd.f32 %v3075_v45, %v3074_v62 }
0x12d1   : > { %3079 = vst.msk [vmem:[#allocation2 + $0x8] sm:$0xff] %vm1098_vm3, %v3077_v41 }
0x12d2   : > { %3084 = vst.msk [vmem:[%s4899_s22] sm:$0xff] %vm1098_vm3, %v3076_v60 }
0x12d3   : > { %3085 = vst.msk [vmem:[%s4899_s22 + $0x8] sm:$0xff] %vm1098_vm3, %v3077_v41 }
0x12d4 PF: > { %s4900_s1 = sld [smem:[#allocation5_spill]] }
0x12da   : > { %s31_s2 = sadd.s32 1, %s4900_s1  }
0x12db   : > { %p28_p6 = scmp.ge.s32.totalorder %s31_s2, 4  }
0x12dd   :  { %30 = sbr.rel (!%p28_p6) target bundleno = 16 (0x10), region = 187 }

</bundles_post_ra>
